<compile_context>
chip_gen: v6e
topology: v6e:2x2x1
jax: 0.10.0
libtpu: 0.0.40
codegen_flags: <defaults>
</compile_context>

<pallas_src>
import functools

import jax
import jax.numpy as jnp
from jax import lax
from jax.experimental import pallas as pl
from jax.experimental.pallas import tpu as pltpu

_LANES = 128


def _round_up(x, m):
    return (x + m - 1) // m * m


def _fused_conv_block_kernel(x_ref, w1_ref, s1_ref, b1_ref,
                             w2_ref, s2_ref, b2_ref, o_ref,
                             xpad_ref, mid_ref, acc_ref, *, H, W, Cin):
    """One batch element of ConvBlock, fully fused in VMEM.

    x_ref   : (1, H, W, Cin)       unpadded NHWC input (true channels)
    w1_ref  : (9, Cin_p, C_p)      conv1 taps (tap = 3*dy+dx), channel-padded
    w2_ref  : (9, C_p,  C_p)       conv2 taps
    s*_ref  : (1, C_p)             folded BN scale
    b*_ref  : (1, C_p)             folded BN shift (includes conv bias)
    o_ref   : (1, H, W, C_p)       lane-dense padded output
    xpad_ref: (H+2, W+2, Cin_p)    VMEM scratch: padded input
    mid_ref : (H+2, W+2, C_p)      VMEM scratch: padded stage-1 activation
    acc_ref : (H*W, C_p)           VMEM f32 accumulator (both stages)
    """
    Cp = o_ref.shape[-1]
    Cin_p = xpad_ref.shape[-1]

    # Zero scratch every invocation (safe under megacore grid splitting);
    # pure VMEM traffic, negligible next to the 18 matmul taps.
    xpad_ref[...] = jnp.zeros_like(xpad_ref)
    mid_ref[...] = jnp.zeros_like(mid_ref)

    # Place the true input channels into the first Cin lanes of the padded
    # scratch: zero spatial halo + zero channel padding come for free and the
    # HBM read stays at the true (small) channel width.
    xpad_ref[1:H + 1, 1:W + 1, :Cin] = x_ref[0].astype(xpad_ref.dtype)

    # ---- stage 1: 3x3 conv as 9 (H*W, Cin_p) x (Cin_p, C_p) MXU matmuls ----
    for t in range(9):
        dy, dx = t // 3, t % 3
        xs = xpad_ref[dy:dy + H, dx:dx + W, :].reshape(H * W, Cin_p)
        tap = jnp.dot(xs, w1_ref[t], preferred_element_type=jnp.float32)
        if t == 0:
            acc_ref[...] = tap
        else:
            acc_ref[...] += tap

    y1 = jnp.maximum(
        acc_ref[...] * s1_ref[0, :][None, :] + b1_ref[0, :][None, :], 0.0)
    mid_ref[1:H + 1, 1:W + 1, :] = y1.reshape(H, W, Cp)

    # ---- stage 2: same structure, reading the VMEM-resident activation ----
    for t in range(9):
        dy, dx = t // 3, t % 3
        ys = mid_ref[dy:dy + H, dx:dx + W, :].reshape(H * W, Cp)
        tap = jnp.dot(ys, w2_ref[t], preferred_element_type=jnp.float32)
        if t == 0:
            acc_ref[...] = tap
        else:
            acc_ref[...] += tap

    y2 = jnp.maximum(
        acc_ref[...] * s2_ref[0, :][None, :] + b2_ref[0, :][None, :], 0.0)
    o_ref[0] = y2.reshape(H, W, Cp).astype(o_ref.dtype)


def conv_block_forward(x_nchw, params, *, eps=1e-5):
    """ConvBlock forward.  x_nchw: (N, Cin, H, W) -> (N, Cout, H, W)."""
    N, Cin, H, W = x_nchw.shape
    Cout = params["w1"].shape[-1]
    Cin_p = _round_up(Cin, _LANES)
    C_p = _round_up(Cout, _LANES)

    # NCHW -> NHWC so channels sit on the 128-lane axis inside the kernel.
    x = jnp.transpose(x_nchw, (0, 2, 3, 1))

    # Fold BN (inference) + conv bias into per-channel scale/shift.
    def fold(b, g, beta, m, v):
        s = g / jnp.sqrt(v + eps)
        return s, (b - m) * s + beta

    s1, b1 = fold(params["b1"], params["g1"], params["beta1"],
                  params["m1"], params["v1"])
    s2, b2 = fold(params["b2"], params["g2"], params["beta2"],
                  params["m2"], params["v2"])

    # Channel-pad weights / scale / bias once (weights are tiny; activations
    # are never padded in HBM).
    def pad_w(w_hwio, ci_p, co_p):  # (3,3,ci,co) -> (9, ci_p, co_p)
        ci, co = w_hwio.shape[2], w_hwio.shape[3]
        w = w_hwio.reshape(9, ci, co).astype(jnp.float32)
        return jnp.pad(w, ((0, 0), (0, ci_p - ci), (0, co_p - co)))

    def pad_vec(v, c_p):
        return jnp.pad(v.astype(jnp.float32), (0, c_p - v.shape[0])).reshape(1, c_p)

    w1p = pad_w(params["w1"], Cin_p, C_p)
    w2p = pad_w(params["w2"], C_p, C_p)
    s1p, b1p = pad_vec(s1, C_p), pad_vec(b1, C_p)
    s2p, b2p = pad_vec(s2, C_p), pad_vec(b2, C_p)

    kernel = functools.partial(_fused_conv_block_kernel, H=H, W=W, Cin=Cin)

    flops = 2 * 9 * N * H * W * (Cin * Cout + Cout * Cout)
    bytes_accessed = 4 * (N * H * W * Cin + w1p.size + w2p.size
                          + 4 * C_p + N * H * W * C_p)

    out = pl.pallas_call(
        kernel,
        out_shape=jax.ShapeDtypeStruct((N, H, W, C_p), jnp.float32),
        grid_spec=pltpu.PrefetchScalarGridSpec(
            num_scalar_prefetch=0,
            grid=(N,),
            in_specs=[
                pl.BlockSpec((1, H, W, Cin), lambda n: (n, 0, 0, 0)),
                pl.BlockSpec((9, Cin_p, C_p), lambda n: (0, 0, 0)),
                pl.BlockSpec((1, C_p), lambda n: (0, 0)),
                pl.BlockSpec((1, C_p), lambda n: (0, 0)),
                pl.BlockSpec((9, C_p, C_p), lambda n: (0, 0, 0)),
                pl.BlockSpec((1, C_p), lambda n: (0, 0)),
                pl.BlockSpec((1, C_p), lambda n: (0, 0)),
            ],
            out_specs=pl.BlockSpec((1, H, W, C_p), lambda n: (n, 0, 0, 0)),
            scratch_shapes=[
                pltpu.VMEM((H + 2, W + 2, Cin_p), jnp.float32),  # padded input
                pltpu.VMEM((H + 2, W + 2, C_p), jnp.float32),    # stage-1 act
                pltpu.VMEM((H * W, C_p), jnp.float32),           # accumulator
            ],
        ),
        compiler_params=pltpu.CompilerParams(
            dimension_semantics=("parallel",),
            vmem_limit_bytes=32 * 1024 * 1024,
        ),
        cost_estimate=pl.CostEstimate(
            flops=flops, transcendentals=0, bytes_accessed=bytes_accessed),
    )(x, w1p, s1p, b1p, w2p, s2p, b2p)

    # Drop channel padding and return NCHW to match the PyTorch module.
    return jnp.transpose(out[..., :Cout], (0, 3, 1, 2))


def _reference_forward(x_nchw, params):
    """Pure-JAX reference using lax.conv_general_dilated (NCHW/OIHW)."""
    def conv_bn_relu(x, w_hwio, b, g, beta, m, v):
        w_oihw = jnp.transpose(w_hwio, (3, 2, 0, 1))
        y = lax.conv_general_dilated(
            x, w_oihw, window_strides=(1, 1), padding=((1, 1), (1, 1)),
            dimension_numbers=("NCHW", "OIHW", "NCHW"))
        y = y + b[None, :, None, None]
        y = (y - m[None, :, None, None]) / jnp.sqrt(v[None, :, None, None] + 1e-5)
        y = y * g[None, :, None, None] + beta[None, :, None, None]
        return jnp.maximum(y, 0.0)

    x = conv_bn_relu(x_nchw, params["w1"], params["b1"], params["g1"],
                     params["beta1"], params["m1"], params["v1"])
    x = conv_bn_relu(x, params["w2"], params["b2"], params["g2"],
                     params["beta2"], params["m2"], params["v2"])
    return x


if __name__ == "__main__":
    key = jax.random.PRNGKey(0)
    N, Cin, Cout, H, W = 2, 4, 8, 16, 16

    k = jax.random.split(key, 6)
    x = jax.random.normal(k[0], (N, Cin, H, W), dtype=jnp.float32)

    # Deterministic parameter init (conv weights in HWIO layout).
    params = {
        "w1": 0.1 * jax.random.normal(k[1], (3, 3, Cin, Cout), jnp.float32),
        "b1": 0.05 * jax.random.normal(k[2], (Cout,), jnp.float32),
        "g1": jnp.ones((Cout,), jnp.float32),
        "beta1": jnp.zeros((Cout,), jnp.float32),
        "m1": jnp.zeros((Cout,), jnp.float32),
        "v1": jnp.ones((Cout,), jnp.float32),
        "w2": 0.1 * jax.random.normal(k[3], (3, 3, Cout, Cout), jnp.float32),
        "b2": 0.05 * jax.random.normal(k[4], (Cout,), jnp.float32),
        "g2": jnp.ones((Cout,), jnp.float32),
        "beta2": jnp.zeros((Cout,), jnp.float32),
        "m2": jnp.zeros((Cout,), jnp.float32),
        "v2": jnp.ones((Cout,), jnp.float32),
    }

    out = jax.jit(conv_block_forward)(x, params)
    out = jax.block_until_ready(out)

    ref = _reference_forward(x, params)
    assert out.shape == (N, Cout, H, W)
    assert jnp.allclose(out, ref, rtol=1e-4, atol=1e-4), (
        float(jnp.max(jnp.abs(out - ref))))

    print("KERNEL_OK")
</pallas_src>

<mosaic_0001>
module attributes {stable_mosaic.version = 11 : i64} {
  func.func @_fused_conv_block_kernel(%arg0: i32, %arg1: memref<1x16x16x4xf32, #tpu.memory_space<vmem>>, %arg2: memref<9x128x128xf32, #tpu.memory_space<vmem>>, %arg3: memref<1x128xf32, #tpu.memory_space<vmem>>, %arg4: memref<1x128xf32, #tpu.memory_space<vmem>>, %arg5: memref<9x128x128xf32, #tpu.memory_space<vmem>>, %arg6: memref<1x128xf32, #tpu.memory_space<vmem>>, %arg7: memref<1x128xf32, #tpu.memory_space<vmem>>, %arg8: memref<1x16x16x128xf32, #tpu.memory_space<vmem>>, %arg9: memref<18x18x128xf32, #tpu.memory_space<vmem>>, %arg10: memref<18x18x128xf32, #tpu.memory_space<vmem>>, %arg11: memref<256x128xf32, #tpu.memory_space<vmem>>) attributes {dimension_semantics = [#tpu.dimension_semantics<parallel>], iteration_bounds = array<i64: 2>, scalar_prefetch = 0 : i64, scratch_operands = 3 : i64, tpu.core_type = #tpu.core_type<tc>, window_params = [{transform_indices = @transform_0, window_bounds = array<i64: 1, 16, 16, 4>}, {pipeline_mode = #tpu.pipeline_mode<synchronous>, transform_indices = @transform_1, window_bounds = array<i64: 9, 128, 128>}, {pipeline_mode = #tpu.pipeline_mode<synchronous>, transform_indices = @transform_2, window_bounds = array<i64: 1, 128>}, {pipeline_mode = #tpu.pipeline_mode<synchronous>, transform_indices = @transform_3, window_bounds = array<i64: 1, 128>}, {pipeline_mode = #tpu.pipeline_mode<synchronous>, transform_indices = @transform_4, window_bounds = array<i64: 9, 128, 128>}, {pipeline_mode = #tpu.pipeline_mode<synchronous>, transform_indices = @transform_5, window_bounds = array<i64: 1, 128>}, {pipeline_mode = #tpu.pipeline_mode<synchronous>, transform_indices = @transform_6, window_bounds = array<i64: 1, 128>}, {transform_indices = @transform_7, window_bounds = array<i64: 1, 16, 16, 128>}]} {
    %cst = arith.constant 0.000000e+00 : f32
    %0 = vector.broadcast %cst : f32 to vector<18x18x128xf32>
    %c0 = arith.constant 0 : index
    %c0_0 = arith.constant 0 : index
    %c0_1 = arith.constant 0 : index
    %1 = vector.load %arg9[%c0, %c0_0, %c0_1] : memref<18x18x128xf32, #tpu.memory_space<vmem>>, vector<18x18x128xf32>
    tpu.vector_store %arg9[%c0, %c0_0, %c0_1], %0 {strides = array<i32>} : memref<18x18x128xf32, #tpu.memory_space<vmem>>, vector<18x18x128xf32>,
    %cst_2 = arith.constant 0.000000e+00 : f32
    %2 = vector.broadcast %cst_2 : f32 to vector<18x18x128xf32>
    %c0_3 = arith.constant 0 : index
    %c0_4 = arith.constant 0 : index
    %c0_5 = arith.constant 0 : index
    %3 = vector.load %arg10[%c0_3, %c0_4, %c0_5] : memref<18x18x128xf32, #tpu.memory_space<vmem>>, vector<18x18x128xf32>
    tpu.vector_store %arg10[%c0_3, %c0_4, %c0_5], %2 {strides = array<i32>} : memref<18x18x128xf32, #tpu.memory_space<vmem>>, vector<18x18x128xf32>,
    %c0_6 = arith.constant 0 : index
    %c0_7 = arith.constant 0 : index
    %c0_8 = arith.constant 0 : index
    %c0_9 = arith.constant 0 : index
    %4 = vector.load %arg1[%c0_6, %c0_7, %c0_8, %c0_9] : memref<1x16x16x4xf32, #tpu.memory_space<vmem>>, vector<1x16x16x4xf32>
    %5 = vector.shape_cast %4 : vector<1x16x16x4xf32> to vector<16x16x4xf32>
    %c1 = arith.constant 1 : index
    %c1_10 = arith.constant 1 : index
    %c0_11 = arith.constant 0 : index
    %6 = vector.load %arg9[%c1, %c1_10, %c0_11] : memref<18x18x128xf32, #tpu.memory_space<vmem>>, vector<16x16x4xf32>
    tpu.vector_store %arg9[%c1, %c1_10, %c0_11], %5 {strides = array<i32>} : memref<18x18x128xf32, #tpu.memory_space<vmem>>, vector<16x16x4xf32>,
    %c0_12 = arith.constant 0 : index
    %c0_13 = arith.constant 0 : index
    %c0_14 = arith.constant 0 : index
    %7 = vector.load %arg9[%c0_12, %c0_13, %c0_14] : memref<18x18x128xf32, #tpu.memory_space<vmem>>, vector<16x16x128xf32>
    %8 = vector.shape_cast %7 : vector<16x16x128xf32> to vector<256x128xf32>
    %c0_15 = arith.constant 0 : index
    %c0_16 = arith.constant 0 : index
    %c0_17 = arith.constant 0 : index
    %9 = vector.load %arg2[%c0_15, %c0_16, %c0_17] : memref<9x128x128xf32, #tpu.memory_space<vmem>>, vector<1x128x128xf32>
    %10 = vector.shape_cast %9 : vector<1x128x128xf32> to vector<128x128xf32>
    %cst_18 = arith.constant dense<0.000000e+00> : vector<256x128xf32>
    %11 = tpu.matmul %8, %10, %cst_18 {dimension_numbers = #tpu.dot_dimension_numbers<[1], [0], [0], [1], [0, 0, 1, 1], [], []>} : vector<256x128xf32>, vector<128x128xf32>, vector<256x128xf32> -> vector<256x128xf32>
    %c0_19 = arith.constant 0 : index
    %c0_20 = arith.constant 0 : index
    %12 = vector.load %arg11[%c0_19, %c0_20] : memref<256x128xf32, #tpu.memory_space<vmem>>, vector<256x128xf32>
    tpu.vector_store %arg11[%c0_19, %c0_20], %11 {strides = array<i32>} : memref<256x128xf32, #tpu.memory_space<vmem>>, vector<256x128xf32>,
    %c0_21 = arith.constant 0 : index
    %c1_22 = arith.constant 1 : index
    %c0_23 = arith.constant 0 : index
    %13 = vector.load %arg9[%c0_21, %c1_22, %c0_23] : memref<18x18x128xf32, #tpu.memory_space<vmem>>, vector<16x16x128xf32>
    %14 = vector.shape_cast %13 : vector<16x16x128xf32> to vector<256x128xf32>
    %c1_24 = arith.constant 1 : index
    %c0_25 = arith.constant 0 : index
    %c0_26 = arith.constant 0 : index
    %15 = vector.load %arg2[%c1_24, %c0_25, %c0_26] : memref<9x128x128xf32, #tpu.memory_space<vmem>>, vector<1x128x128xf32>
    %16 = vector.shape_cast %15 : vector<1x128x128xf32> to vector<128x128xf32>
    %cst_27 = arith.constant dense<0.000000e+00> : vector<256x128xf32>
    %17 = tpu.matmul %14, %16, %cst_27 {dimension_numbers = #tpu.dot_dimension_numbers<[1], [0], [0], [1], [0, 0, 1, 1], [], []>} : vector<256x128xf32>, vector<128x128xf32>, vector<256x128xf32> -> vector<256x128xf32>
    %c0_28 = arith.constant 0 : index
    %c0_29 = arith.constant 0 : index
    %18 = vector.load %arg11[%c0_28, %c0_29] : memref<256x128xf32, #tpu.memory_space<vmem>>, vector<256x128xf32>
    %19 = arith.addf %18, %17 : vector<256x128xf32>
    %c0_30 = arith.constant 0 : index
    %c0_31 = arith.constant 0 : index
    %20 = vector.load %arg11[%c0_30, %c0_31] : memref<256x128xf32, #tpu.memory_space<vmem>>, vector<256x128xf32>
    tpu.vector_store %arg11[%c0_30, %c0_31], %19 {strides = array<i32>} : memref<256x128xf32, #tpu.memory_space<vmem>>, vector<256x128xf32>,
    %c0_32 = arith.constant 0 : index
    %c2 = arith.constant 2 : index
    %c0_33 = arith.constant 0 : index
    %21 = vector.load %arg9[%c0_32, %c2, %c0_33] : memref<18x18x128xf32, #tpu.memory_space<vmem>>, vector<16x16x128xf32>
    %22 = vector.shape_cast %21 : vector<16x16x128xf32> to vector<256x128xf32>
    %c2_34 = arith.constant 2 : index
    %c0_35 = arith.constant 0 : index
    %c0_36 = arith.constant 0 : index
    %23 = vector.load %arg2[%c2_34, %c0_35, %c0_36] : memref<9x128x128xf32, #tpu.memory_space<vmem>>, vector<1x128x128xf32>
    %24 = vector.shape_cast %23 : vector<1x128x128xf32> to vector<128x128xf32>
    %cst_37 = arith.constant dense<0.000000e+00> : vector<256x128xf32>
    %25 = tpu.matmul %22, %24, %cst_37 {dimension_numbers = #tpu.dot_dimension_numbers<[1], [0], [0], [1], [0, 0, 1, 1], [], []>} : vector<256x128xf32>, vector<128x128xf32>, vector<256x128xf32> -> vector<256x128xf32>
    %c0_38 = arith.constant 0 : index
    %c0_39 = arith.constant 0 : index
    %26 = vector.load %arg11[%c0_38, %c0_39] : memref<256x128xf32, #tpu.memory_space<vmem>>, vector<256x128xf32>
    %27 = arith.addf %26, %25 : vector<256x128xf32>
    %c0_40 = arith.constant 0 : index
    %c0_41 = arith.constant 0 : index
    %28 = vector.load %arg11[%c0_40, %c0_41] : memref<256x128xf32, #tpu.memory_space<vmem>>, vector<256x128xf32>
    tpu.vector_store %arg11[%c0_40, %c0_41], %27 {strides = array<i32>} : memref<256x128xf32, #tpu.memory_space<vmem>>, vector<256x128xf32>,
    %c1_42 = arith.constant 1 : index
    %c0_43 = arith.constant 0 : index
    %c0_44 = arith.constant 0 : index
    %29 = vector.load %arg9[%c1_42, %c0_43, %c0_44] : memref<18x18x128xf32, #tpu.memory_space<vmem>>, vector<16x16x128xf32>
    %30 = vector.shape_cast %29 : vector<16x16x128xf32> to vector<256x128xf32>
    %c3 = arith.constant 3 : index
    %c0_45 = arith.constant 0 : index
    %c0_46 = arith.constant 0 : index
    %31 = vector.load %arg2[%c3, %c0_45, %c0_46] : memref<9x128x128xf32, #tpu.memory_space<vmem>>, vector<1x128x128xf32>
    %32 = vector.shape_cast %31 : vector<1x128x128xf32> to vector<128x128xf32>
    %cst_47 = arith.constant dense<0.000000e+00> : vector<256x128xf32>
    %33 = tpu.matmul %30, %32, %cst_47 {dimension_numbers = #tpu.dot_dimension_numbers<[1], [0], [0], [1], [0, 0, 1, 1], [], []>} : vector<256x128xf32>, vector<128x128xf32>, vector<256x128xf32> -> vector<256x128xf32>
    %c0_48 = arith.constant 0 : index
    %c0_49 = arith.constant 0 : index
    %34 = vector.load %arg11[%c0_48, %c0_49] : memref<256x128xf32, #tpu.memory_space<vmem>>, vector<256x128xf32>
    %35 = arith.addf %34, %33 : vector<256x128xf32>
    %c0_50 = arith.constant 0 : index
    %c0_51 = arith.constant 0 : index
    %36 = vector.load %arg11[%c0_50, %c0_51] : memref<256x128xf32, #tpu.memory_space<vmem>>, vector<256x128xf32>
    tpu.vector_store %arg11[%c0_50, %c0_51], %35 {strides = array<i32>} : memref<256x128xf32, #tpu.memory_space<vmem>>, vector<256x128xf32>,
    %c1_52 = arith.constant 1 : index
    %c1_53 = arith.constant 1 : index
    %c0_54 = arith.constant 0 : index
    %37 = vector.load %arg9[%c1_52, %c1_53, %c0_54] : memref<18x18x128xf32, #tpu.memory_space<vmem>>, vector<16x16x128xf32>
    %38 = vector.shape_cast %37 : vector<16x16x128xf32> to vector<256x128xf32>
    %c4 = arith.constant 4 : index
    %c0_55 = arith.constant 0 : index
    %c0_56 = arith.constant 0 : index
    %39 = vector.load %arg2[%c4, %c0_55, %c0_56] : memref<9x128x128xf32, #tpu.memory_space<vmem>>, vector<1x128x128xf32>
    %40 = vector.shape_cast %39 : vector<1x128x128xf32> to vector<128x128xf32>
    %cst_57 = arith.constant dense<0.000000e+00> : vector<256x128xf32>
    %41 = tpu.matmul %38, %40, %cst_57 {dimension_numbers = #tpu.dot_dimension_numbers<[1], [0], [0], [1], [0, 0, 1, 1], [], []>} : vector<256x128xf32>, vector<128x128xf32>, vector<256x128xf32> -> vector<256x128xf32>
    %c0_58 = arith.constant 0 : index
    %c0_59 = arith.constant 0 : index
    %42 = vector.load %arg11[%c0_58, %c0_59] : memref<256x128xf32, #tpu.memory_space<vmem>>, vector<256x128xf32>
    %43 = arith.addf %42, %41 : vector<256x128xf32>
    %c0_60 = arith.constant 0 : index
    %c0_61 = arith.constant 0 : index
    %44 = vector.load %arg11[%c0_60, %c0_61] : memref<256x128xf32, #tpu.memory_space<vmem>>, vector<256x128xf32>
    tpu.vector_store %arg11[%c0_60, %c0_61], %43 {strides = array<i32>} : memref<256x128xf32, #tpu.memory_space<vmem>>, vector<256x128xf32>,
    %c1_62 = arith.constant 1 : index
    %c2_63 = arith.constant 2 : index
    %c0_64 = arith.constant 0 : index
    %45 = vector.load %arg9[%c1_62, %c2_63, %c0_64] : memref<18x18x128xf32, #tpu.memory_space<vmem>>, vector<16x16x128xf32>
    %46 = vector.shape_cast %45 : vector<16x16x128xf32> to vector<256x128xf32>
    %c5 = arith.constant 5 : index
    %c0_65 = arith.constant 0 : index
    %c0_66 = arith.constant 0 : index
    %47 = vector.load %arg2[%c5, %c0_65, %c0_66] : memref<9x128x128xf32, #tpu.memory_space<vmem>>, vector<1x128x128xf32>
    %48 = vector.shape_cast %47 : vector<1x128x128xf32> to vector<128x128xf32>
    %cst_67 = arith.constant dense<0.000000e+00> : vector<256x128xf32>
    %49 = tpu.matmul %46, %48, %cst_67 {dimension_numbers = #tpu.dot_dimension_numbers<[1], [0], [0], [1], [0, 0, 1, 1], [], []>} : vector<256x128xf32>, vector<128x128xf32>, vector<256x128xf32> -> vector<256x128xf32>
    %c0_68 = arith.constant 0 : index
    %c0_69 = arith.constant 0 : index
    %50 = vector.load %arg11[%c0_68, %c0_69] : memref<256x128xf32, #tpu.memory_space<vmem>>, vector<256x128xf32>
    %51 = arith.addf %50, %49 : vector<256x128xf32>
    %c0_70 = arith.constant 0 : index
    %c0_71 = arith.constant 0 : index
    %52 = vector.load %arg11[%c0_70, %c0_71] : memref<256x128xf32, #tpu.memory_space<vmem>>, vector<256x128xf32>
    tpu.vector_store %arg11[%c0_70, %c0_71], %51 {strides = array<i32>} : memref<256x128xf32, #tpu.memory_space<vmem>>, vector<256x128xf32>,
    %c2_72 = arith.constant 2 : index
    %c0_73 = arith.constant 0 : index
    %c0_74 = arith.constant 0 : index
    %53 = vector.load %arg9[%c2_72, %c0_73, %c0_74] : memref<18x18x128xf32, #tpu.memory_space<vmem>>, vector<16x16x128xf32>
    %54 = vector.shape_cast %53 : vector<16x16x128xf32> to vector<256x128xf32>
    %c6 = arith.constant 6 : index
    %c0_75 = arith.constant 0 : index
    %c0_76 = arith.constant 0 : index
    %55 = vector.load %arg2[%c6, %c0_75, %c0_76] : memref<9x128x128xf32, #tpu.memory_space<vmem>>, vector<1x128x128xf32>
    %56 = vector.shape_cast %55 : vector<1x128x128xf32> to vector<128x128xf32>
    %cst_77 = arith.constant dense<0.000000e+00> : vector<256x128xf32>
    %57 = tpu.matmul %54, %56, %cst_77 {dimension_numbers = #tpu.dot_dimension_numbers<[1], [0], [0], [1], [0, 0, 1, 1], [], []>} : vector<256x128xf32>, vector<128x128xf32>, vector<256x128xf32> -> vector<256x128xf32>
    %c0_78 = arith.constant 0 : index
    %c0_79 = arith.constant 0 : index
    %58 = vector.load %arg11[%c0_78, %c0_79] : memref<256x128xf32, #tpu.memory_space<vmem>>, vector<256x128xf32>
    %59 = arith.addf %58, %57 : vector<256x128xf32>
    %c0_80 = arith.constant 0 : index
    %c0_81 = arith.constant 0 : index
    %60 = vector.load %arg11[%c0_80, %c0_81] : memref<256x128xf32, #tpu.memory_space<vmem>>, vector<256x128xf32>
    tpu.vector_store %arg11[%c0_80, %c0_81], %59 {strides = array<i32>} : memref<256x128xf32, #tpu.memory_space<vmem>>, vector<256x128xf32>,
    %c2_82 = arith.constant 2 : index
    %c1_83 = arith.constant 1 : index
    %c0_84 = arith.constant 0 : index
    %61 = vector.load %arg9[%c2_82, %c1_83, %c0_84] : memref<18x18x128xf32, #tpu.memory_space<vmem>>, vector<16x16x128xf32>
    %62 = vector.shape_cast %61 : vector<16x16x128xf32> to vector<256x128xf32>
    %c7 = arith.constant 7 : index
    %c0_85 = arith.constant 0 : index
    %c0_86 = arith.constant 0 : index
    %63 = vector.load %arg2[%c7, %c0_85, %c0_86] : memref<9x128x128xf32, #tpu.memory_space<vmem>>, vector<1x128x128xf32>
    %64 = vector.shape_cast %63 : vector<1x128x128xf32> to vector<128x128xf32>
    %cst_87 = arith.constant dense<0.000000e+00> : vector<256x128xf32>
    %65 = tpu.matmul %62, %64, %cst_87 {dimension_numbers = #tpu.dot_dimension_numbers<[1], [0], [0], [1], [0, 0, 1, 1], [], []>} : vector<256x128xf32>, vector<128x128xf32>, vector<256x128xf32> -> vector<256x128xf32>
    %c0_88 = arith.constant 0 : index
    %c0_89 = arith.constant 0 : index
    %66 = vector.load %arg11[%c0_88, %c0_89] : memref<256x128xf32, #tpu.memory_space<vmem>>, vector<256x128xf32>
    %67 = arith.addf %66, %65 : vector<256x128xf32>
    %c0_90 = arith.constant 0 : index
    %c0_91 = arith.constant 0 : index
    %68 = vector.load %arg11[%c0_90, %c0_91] : memref<256x128xf32, #tpu.memory_space<vmem>>, vector<256x128xf32>
    tpu.vector_store %arg11[%c0_90, %c0_91], %67 {strides = array<i32>} : memref<256x128xf32, #tpu.memory_space<vmem>>, vector<256x128xf32>,
    %c2_92 = arith.constant 2 : index
    %c2_93 = arith.constant 2 : index
    %c0_94 = arith.constant 0 : index
    %69 = vector.load %arg9[%c2_92, %c2_93, %c0_94] : memref<18x18x128xf32, #tpu.memory_space<vmem>>, vector<16x16x128xf32>
    %70 = vector.shape_cast %69 : vector<16x16x128xf32> to vector<256x128xf32>
    %c8 = arith.constant 8 : index
    %c0_95 = arith.constant 0 : index
    %c0_96 = arith.constant 0 : index
    %71 = vector.load %arg2[%c8, %c0_95, %c0_96] : memref<9x128x128xf32, #tpu.memory_space<vmem>>, vector<1x128x128xf32>
    %72 = vector.shape_cast %71 : vector<1x128x128xf32> to vector<128x128xf32>
    %cst_97 = arith.constant dense<0.000000e+00> : vector<256x128xf32>
    %73 = tpu.matmul %70, %72, %cst_97 {dimension_numbers = #tpu.dot_dimension_numbers<[1], [0], [0], [1], [0, 0, 1, 1], [], []>} : vector<256x128xf32>, vector<128x128xf32>, vector<256x128xf32> -> vector<256x128xf32>
    %c0_98 = arith.constant 0 : index
    %c0_99 = arith.constant 0 : index
    %74 = vector.load %arg11[%c0_98, %c0_99] : memref<256x128xf32, #tpu.memory_space<vmem>>, vector<256x128xf32>
    %75 = arith.addf %74, %73 : vector<256x128xf32>
    %c0_100 = arith.constant 0 : index
    %c0_101 = arith.constant 0 : index
    %76 = vector.load %arg11[%c0_100, %c0_101] : memref<256x128xf32, #tpu.memory_space<vmem>>, vector<256x128xf32>
    tpu.vector_store %arg11[%c0_100, %c0_101], %75 {strides = array<i32>} : memref<256x128xf32, #tpu.memory_space<vmem>>, vector<256x128xf32>,
    %c0_102 = arith.constant 0 : index
    %c0_103 = arith.constant 0 : index
    %77 = vector.load %arg11[%c0_102, %c0_103] : memref<256x128xf32, #tpu.memory_space<vmem>>, vector<256x128xf32>
    %c0_104 = arith.constant 0 : index
    %c0_105 = arith.constant 0 : index
    %78 = vector.load %arg3[%c0_104, %c0_105] : memref<1x128xf32, #tpu.memory_space<vmem>>, vector<1x128xf32>
    %79 = vector.shape_cast %78 : vector<1x128xf32> to vector<128xf32>
    %80 = vector.shape_cast %79 : vector<128xf32> to vector<1x128xf32>
    %81 = vector.broadcast %80 : vector<1x128xf32> to vector<256x128xf32>
    %82 = arith.mulf %77, %81 : vector<256x128xf32>
    %c0_106 = arith.constant 0 : index
    %c0_107 = arith.constant 0 : index
    %83 = vector.load %arg4[%c0_106, %c0_107] : memref<1x128xf32, #tpu.memory_space<vmem>>, vector<1x128xf32>
    %84 = vector.shape_cast %83 : vector<1x128xf32> to vector<128xf32>
    %85 = vector.shape_cast %84 : vector<128xf32> to vector<1x128xf32>
    %86 = vector.broadcast %85 : vector<1x128xf32> to vector<256x128xf32>
    %87 = arith.addf %82, %86 : vector<256x128xf32>
    %cst_108 = arith.constant 0.000000e+00 : f32
    %88 = vector.broadcast %cst_108 : f32 to vector<256x128xf32>
    %89 = arith.maximumf %87, %88 : vector<256x128xf32>
    %90 = vector.shape_cast %89 : vector<256x128xf32> to vector<16x16x128xf32>
    %c1_109 = arith.constant 1 : index
    %c1_110 = arith.constant 1 : index
    %c0_111 = arith.constant 0 : index
    %91 = vector.load %arg10[%c1_109, %c1_110, %c0_111] : memref<18x18x128xf32, #tpu.memory_space<vmem>>, vector<16x16x128xf32>
    tpu.vector_store %arg10[%c1_109, %c1_110, %c0_111], %90 {strides = array<i32>} : memref<18x18x128xf32, #tpu.memory_space<vmem>>, vector<16x16x128xf32>,
    %c0_112 = arith.constant 0 : index
    %c0_113 = arith.constant 0 : index
    %c0_114 = arith.constant 0 : index
    %92 = vector.load %arg10[%c0_112, %c0_113, %c0_114] : memref<18x18x128xf32, #tpu.memory_space<vmem>>, vector<16x16x128xf32>
    %93 = vector.shape_cast %92 : vector<16x16x128xf32> to vector<256x128xf32>
    %c0_115 = arith.constant 0 : index
    %c0_116 = arith.constant 0 : index
    %c0_117 = arith.constant 0 : index
    %94 = vector.load %arg5[%c0_115, %c0_116, %c0_117] : memref<9x128x128xf32, #tpu.memory_space<vmem>>, vector<1x128x128xf32>
    %95 = vector.shape_cast %94 : vector<1x128x128xf32> to vector<128x128xf32>
    %cst_118 = arith.constant dense<0.000000e+00> : vector<256x128xf32>
    %96 = tpu.matmul %93, %95, %cst_118 {dimension_numbers = #tpu.dot_dimension_numbers<[1], [0], [0], [1], [0, 0, 1, 1], [], []>} : vector<256x128xf32>, vector<128x128xf32>, vector<256x128xf32> -> vector<256x128xf32>
    %c0_119 = arith.constant 0 : index
    %c0_120 = arith.constant 0 : index
    %97 = vector.load %arg11[%c0_119, %c0_120] : memref<256x128xf32, #tpu.memory_space<vmem>>, vector<256x128xf32>
    tpu.vector_store %arg11[%c0_119, %c0_120], %96 {strides = array<i32>} : memref<256x128xf32, #tpu.memory_space<vmem>>, vector<256x128xf32>,
    %c0_121 = arith.constant 0 : index
    %c1_122 = arith.constant 1 : index
    %c0_123 = arith.constant 0 : index
    %98 = vector.load %arg10[%c0_121, %c1_122, %c0_123] : memref<18x18x128xf32, #tpu.memory_space<vmem>>, vector<16x16x128xf32>
    %99 = vector.shape_cast %98 : vector<16x16x128xf32> to vector<256x128xf32>
    %c1_124 = arith.constant 1 : index
    %c0_125 = arith.constant 0 : index
    %c0_126 = arith.constant 0 : index
    %100 = vector.load %arg5[%c1_124, %c0_125, %c0_126] : memref<9x128x128xf32, #tpu.memory_space<vmem>>, vector<1x128x128xf32>
    %101 = vector.shape_cast %100 : vector<1x128x128xf32> to vector<128x128xf32>
    %cst_127 = arith.constant dense<0.000000e+00> : vector<256x128xf32>
    %102 = tpu.matmul %99, %101, %cst_127 {dimension_numbers = #tpu.dot_dimension_numbers<[1], [0], [0], [1], [0, 0, 1, 1], [], []>} : vector<256x128xf32>, vector<128x128xf32>, vector<256x128xf32> -> vector<256x128xf32>
    %c0_128 = arith.constant 0 : index
    %c0_129 = arith.constant 0 : index
    %103 = vector.load %arg11[%c0_128, %c0_129] : memref<256x128xf32, #tpu.memory_space<vmem>>, vector<256x128xf32>
    %104 = arith.addf %103, %102 : vector<256x128xf32>
    %c0_130 = arith.constant 0 : index
    %c0_131 = arith.constant 0 : index
    %105 = vector.load %arg11[%c0_130, %c0_131] : memref<256x128xf32, #tpu.memory_space<vmem>>, vector<256x128xf32>
    tpu.vector_store %arg11[%c0_130, %c0_131], %104 {strides = array<i32>} : memref<256x128xf32, #tpu.memory_space<vmem>>, vector<256x128xf32>,
    %c0_132 = arith.constant 0 : index
    %c2_133 = arith.constant 2 : index
    %c0_134 = arith.constant 0 : index
    %106 = vector.load %arg10[%c0_132, %c2_133, %c0_134] : memref<18x18x128xf32, #tpu.memory_space<vmem>>, vector<16x16x128xf32>
    %107 = vector.shape_cast %106 : vector<16x16x128xf32> to vector<256x128xf32>
    %c2_135 = arith.constant 2 : index
    %c0_136 = arith.constant 0 : index
    %c0_137 = arith.constant 0 : index
    %108 = vector.load %arg5[%c2_135, %c0_136, %c0_137] : memref<9x128x128xf32, #tpu.memory_space<vmem>>, vector<1x128x128xf32>
    %109 = vector.shape_cast %108 : vector<1x128x128xf32> to vector<128x128xf32>
    %cst_138 = arith.constant dense<0.000000e+00> : vector<256x128xf32>
    %110 = tpu.matmul %107, %109, %cst_138 {dimension_numbers = #tpu.dot_dimension_numbers<[1], [0], [0], [1], [0, 0, 1, 1], [], []>} : vector<256x128xf32>, vector<128x128xf32>, vector<256x128xf32> -> vector<256x128xf32>
    %c0_139 = arith.constant 0 : index
    %c0_140 = arith.constant 0 : index
    %111 = vector.load %arg11[%c0_139, %c0_140] : memref<256x128xf32, #tpu.memory_space<vmem>>, vector<256x128xf32>
    %112 = arith.addf %111, %110 : vector<256x128xf32>
    %c0_141 = arith.constant 0 : index
    %c0_142 = arith.constant 0 : index
    %113 = vector.load %arg11[%c0_141, %c0_142] : memref<256x128xf32, #tpu.memory_space<vmem>>, vector<256x128xf32>
    tpu.vector_store %arg11[%c0_141, %c0_142], %112 {strides = array<i32>} : memref<256x128xf32, #tpu.memory_space<vmem>>, vector<256x128xf32>,
    %c1_143 = arith.constant 1 : index
    %c0_144 = arith.constant 0 : index
    %c0_145 = arith.constant 0 : index
    %114 = vector.load %arg10[%c1_143, %c0_144, %c0_145] : memref<18x18x128xf32, #tpu.memory_space<vmem>>, vector<16x16x128xf32>
    %115 = vector.shape_cast %114 : vector<16x16x128xf32> to vector<256x128xf32>
    %c3_146 = arith.constant 3 : index
    %c0_147 = arith.constant 0 : index
    %c0_148 = arith.constant 0 : index
    %116 = vector.load %arg5[%c3_146, %c0_147, %c0_148] : memref<9x128x128xf32, #tpu.memory_space<vmem>>, vector<1x128x128xf32>
    %117 = vector.shape_cast %116 : vector<1x128x128xf32> to vector<128x128xf32>
    %cst_149 = arith.constant dense<0.000000e+00> : vector<256x128xf32>
    %118 = tpu.matmul %115, %117, %cst_149 {dimension_numbers = #tpu.dot_dimension_numbers<[1], [0], [0], [1], [0, 0, 1, 1], [], []>} : vector<256x128xf32>, vector<128x128xf32>, vector<256x128xf32> -> vector<256x128xf32>
    %c0_150 = arith.constant 0 : index
    %c0_151 = arith.constant 0 : index
    %119 = vector.load %arg11[%c0_150, %c0_151] : memref<256x128xf32, #tpu.memory_space<vmem>>, vector<256x128xf32>
    %120 = arith.addf %119, %118 : vector<256x128xf32>
    %c0_152 = arith.constant 0 : index
    %c0_153 = arith.constant 0 : index
    %121 = vector.load %arg11[%c0_152, %c0_153] : memref<256x128xf32, #tpu.memory_space<vmem>>, vector<256x128xf32>
    tpu.vector_store %arg11[%c0_152, %c0_153], %120 {strides = array<i32>} : memref<256x128xf32, #tpu.memory_space<vmem>>, vector<256x128xf32>,
    %c1_154 = arith.constant 1 : index
    %c1_155 = arith.constant 1 : index
    %c0_156 = arith.constant 0 : index
    %122 = vector.load %arg10[%c1_154, %c1_155, %c0_156] : memref<18x18x128xf32, #tpu.memory_space<vmem>>, vector<16x16x128xf32>
    %123 = vector.shape_cast %122 : vector<16x16x128xf32> to vector<256x128xf32>
    %c4_157 = arith.constant 4 : index
    %c0_158 = arith.constant 0 : index
    %c0_159 = arith.constant 0 : index
    %124 = vector.load %arg5[%c4_157, %c0_158, %c0_159] : memref<9x128x128xf32, #tpu.memory_space<vmem>>, vector<1x128x128xf32>
    %125 = vector.shape_cast %124 : vector<1x128x128xf32> to vector<128x128xf32>
    %cst_160 = arith.constant dense<0.000000e+00> : vector<256x128xf32>
    %126 = tpu.matmul %123, %125, %cst_160 {dimension_numbers = #tpu.dot_dimension_numbers<[1], [0], [0], [1], [0, 0, 1, 1], [], []>} : vector<256x128xf32>, vector<128x128xf32>, vector<256x128xf32> -> vector<256x128xf32>
    %c0_161 = arith.constant 0 : index
    %c0_162 = arith.constant 0 : index
    %127 = vector.load %arg11[%c0_161, %c0_162] : memref<256x128xf32, #tpu.memory_space<vmem>>, vector<256x128xf32>
    %128 = arith.addf %127, %126 : vector<256x128xf32>
    %c0_163 = arith.constant 0 : index
    %c0_164 = arith.constant 0 : index
    %129 = vector.load %arg11[%c0_163, %c0_164] : memref<256x128xf32, #tpu.memory_space<vmem>>, vector<256x128xf32>
    tpu.vector_store %arg11[%c0_163, %c0_164], %128 {strides = array<i32>} : memref<256x128xf32, #tpu.memory_space<vmem>>, vector<256x128xf32>,
    %c1_165 = arith.constant 1 : index
    %c2_166 = arith.constant 2 : index
    %c0_167 = arith.constant 0 : index
    %130 = vector.load %arg10[%c1_165, %c2_166, %c0_167] : memref<18x18x128xf32, #tpu.memory_space<vmem>>, vector<16x16x128xf32>
    %131 = vector.shape_cast %130 : vector<16x16x128xf32> to vector<256x128xf32>
    %c5_168 = arith.constant 5 : index
    %c0_169 = arith.constant 0 : index
    %c0_170 = arith.constant 0 : index
    %132 = vector.load %arg5[%c5_168, %c0_169, %c0_170] : memref<9x128x128xf32, #tpu.memory_space<vmem>>, vector<1x128x128xf32>
    %133 = vector.shape_cast %132 : vector<1x128x128xf32> to vector<128x128xf32>
    %cst_171 = arith.constant dense<0.000000e+00> : vector<256x128xf32>
    %134 = tpu.matmul %131, %133, %cst_171 {dimension_numbers = #tpu.dot_dimension_numbers<[1], [0], [0], [1], [0, 0, 1, 1], [], []>} : vector<256x128xf32>, vector<128x128xf32>, vector<256x128xf32> -> vector<256x128xf32>
    %c0_172 = arith.constant 0 : index
    %c0_173 = arith.constant 0 : index
    %135 = vector.load %arg11[%c0_172, %c0_173] : memref<256x128xf32, #tpu.memory_space<vmem>>, vector<256x128xf32>
    %136 = arith.addf %135, %134 : vector<256x128xf32>
    %c0_174 = arith.constant 0 : index
    %c0_175 = arith.constant 0 : index
    %137 = vector.load %arg11[%c0_174, %c0_175] : memref<256x128xf32, #tpu.memory_space<vmem>>, vector<256x128xf32>
    tpu.vector_store %arg11[%c0_174, %c0_175], %136 {strides = array<i32>} : memref<256x128xf32, #tpu.memory_space<vmem>>, vector<256x128xf32>,
    %c2_176 = arith.constant 2 : index
    %c0_177 = arith.constant 0 : index
    %c0_178 = arith.constant 0 : index
    %138 = vector.load %arg10[%c2_176, %c0_177, %c0_178] : memref<18x18x128xf32, #tpu.memory_space<vmem>>, vector<16x16x128xf32>
    %139 = vector.shape_cast %138 : vector<16x16x128xf32> to vector<256x128xf32>
    %c6_179 = arith.constant 6 : index
    %c0_180 = arith.constant 0 : index
    %c0_181 = arith.constant 0 : index
    %140 = vector.load %arg5[%c6_179, %c0_180, %c0_181] : memref<9x128x128xf32, #tpu.memory_space<vmem>>, vector<1x128x128xf32>
    %141 = vector.shape_cast %140 : vector<1x128x128xf32> to vector<128x128xf32>
    %cst_182 = arith.constant dense<0.000000e+00> : vector<256x128xf32>
    %142 = tpu.matmul %139, %141, %cst_182 {dimension_numbers = #tpu.dot_dimension_numbers<[1], [0], [0], [1], [0, 0, 1, 1], [], []>} : vector<256x128xf32>, vector<128x128xf32>, vector<256x128xf32> -> vector<256x128xf32>
    %c0_183 = arith.constant 0 : index
    %c0_184 = arith.constant 0 : index
    %143 = vector.load %arg11[%c0_183, %c0_184] : memref<256x128xf32, #tpu.memory_space<vmem>>, vector<256x128xf32>
    %144 = arith.addf %143, %142 : vector<256x128xf32>
    %c0_185 = arith.constant 0 : index
    %c0_186 = arith.constant 0 : index
    %145 = vector.load %arg11[%c0_185, %c0_186] : memref<256x128xf32, #tpu.memory_space<vmem>>, vector<256x128xf32>
    tpu.vector_store %arg11[%c0_185, %c0_186], %144 {strides = array<i32>} : memref<256x128xf32, #tpu.memory_space<vmem>>, vector<256x128xf32>,
    %c2_187 = arith.constant 2 : index
    %c1_188 = arith.constant 1 : index
    %c0_189 = arith.constant 0 : index
    %146 = vector.load %arg10[%c2_187, %c1_188, %c0_189] : memref<18x18x128xf32, #tpu.memory_space<vmem>>, vector<16x16x128xf32>
    %147 = vector.shape_cast %146 : vector<16x16x128xf32> to vector<256x128xf32>
    %c7_190 = arith.constant 7 : index
    %c0_191 = arith.constant 0 : index
    %c0_192 = arith.constant 0 : index
    %148 = vector.load %arg5[%c7_190, %c0_191, %c0_192] : memref<9x128x128xf32, #tpu.memory_space<vmem>>, vector<1x128x128xf32>
    %149 = vector.shape_cast %148 : vector<1x128x128xf32> to vector<128x128xf32>
    %cst_193 = arith.constant dense<0.000000e+00> : vector<256x128xf32>
    %150 = tpu.matmul %147, %149, %cst_193 {dimension_numbers = #tpu.dot_dimension_numbers<[1], [0], [0], [1], [0, 0, 1, 1], [], []>} : vector<256x128xf32>, vector<128x128xf32>, vector<256x128xf32> -> vector<256x128xf32>
    %c0_194 = arith.constant 0 : index
    %c0_195 = arith.constant 0 : index
    %151 = vector.load %arg11[%c0_194, %c0_195] : memref<256x128xf32, #tpu.memory_space<vmem>>, vector<256x128xf32>
    %152 = arith.addf %151, %150 : vector<256x128xf32>
    %c0_196 = arith.constant 0 : index
    %c0_197 = arith.constant 0 : index
    %153 = vector.load %arg11[%c0_196, %c0_197] : memref<256x128xf32, #tpu.memory_space<vmem>>, vector<256x128xf32>
    tpu.vector_store %arg11[%c0_196, %c0_197], %152 {strides = array<i32>} : memref<256x128xf32, #tpu.memory_space<vmem>>, vector<256x128xf32>,
    %c2_198 = arith.constant 2 : index
    %c2_199 = arith.constant 2 : index
    %c0_200 = arith.constant 0 : index
    %154 = vector.load %arg10[%c2_198, %c2_199, %c0_200] : memref<18x18x128xf32, #tpu.memory_space<vmem>>, vector<16x16x128xf32>
    %155 = vector.shape_cast %154 : vector<16x16x128xf32> to vector<256x128xf32>
    %c8_201 = arith.constant 8 : index
    %c0_202 = arith.constant 0 : index
    %c0_203 = arith.constant 0 : index
    %156 = vector.load %arg5[%c8_201, %c0_202, %c0_203] : memref<9x128x128xf32, #tpu.memory_space<vmem>>, vector<1x128x128xf32>
    %157 = vector.shape_cast %156 : vector<1x128x128xf32> to vector<128x128xf32>
    %cst_204 = arith.constant dense<0.000000e+00> : vector<256x128xf32>
    %158 = tpu.matmul %155, %157, %cst_204 {dimension_numbers = #tpu.dot_dimension_numbers<[1], [0], [0], [1], [0, 0, 1, 1], [], []>} : vector<256x128xf32>, vector<128x128xf32>, vector<256x128xf32> -> vector<256x128xf32>
    %c0_205 = arith.constant 0 : index
    %c0_206 = arith.constant 0 : index
    %159 = vector.load %arg11[%c0_205, %c0_206] : memref<256x128xf32, #tpu.memory_space<vmem>>, vector<256x128xf32>
    %160 = arith.addf %159, %158 : vector<256x128xf32>
    %c0_207 = arith.constant 0 : index
    %c0_208 = arith.constant 0 : index
    %161 = vector.load %arg11[%c0_207, %c0_208] : memref<256x128xf32, #tpu.memory_space<vmem>>, vector<256x128xf32>
    tpu.vector_store %arg11[%c0_207, %c0_208], %160 {strides = array<i32>} : memref<256x128xf32, #tpu.memory_space<vmem>>, vector<256x128xf32>,
    %c0_209 = arith.constant 0 : index
    %c0_210 = arith.constant 0 : index
    %162 = vector.load %arg11[%c0_209, %c0_210] : memref<256x128xf32, #tpu.memory_space<vmem>>, vector<256x128xf32>
    %c0_211 = arith.constant 0 : index
    %c0_212 = arith.constant 0 : index
    %163 = vector.load %arg6[%c0_211, %c0_212] : memref<1x128xf32, #tpu.memory_space<vmem>>, vector<1x128xf32>
    %164 = vector.shape_cast %163 : vector<1x128xf32> to vector<128xf32>
    %165 = vector.shape_cast %164 : vector<128xf32> to vector<1x128xf32>
    %166 = vector.broadcast %165 : vector<1x128xf32> to vector<256x128xf32>
    %167 = arith.mulf %162, %166 : vector<256x128xf32>
    %c0_213 = arith.constant 0 : index
    %c0_214 = arith.constant 0 : index
    %168 = vector.load %arg7[%c0_213, %c0_214] : memref<1x128xf32, #tpu.memory_space<vmem>>, vector<1x128xf32>
    %169 = vector.shape_cast %168 : vector<1x128xf32> to vector<128xf32>
    %170 = vector.shape_cast %169 : vector<128xf32> to vector<1x128xf32>
    %171 = vector.broadcast %170 : vector<1x128xf32> to vector<256x128xf32>
    %172 = arith.addf %167, %171 : vector<256x128xf32>
    %cst_215 = arith.constant 0.000000e+00 : f32
    %173 = vector.broadcast %cst_215 : f32 to vector<256x128xf32>
    %174 = arith.maximumf %172, %173 : vector<256x128xf32>
    %175 = vector.shape_cast %174 : vector<256x128xf32> to vector<16x16x128xf32>
    %c0_216 = arith.constant 0 : index
    %c0_217 = arith.constant 0 : index
    %c0_218 = arith.constant 0 : index
    %c0_219 = arith.constant 0 : index
    %176 = vector.load %arg8[%c0_216, %c0_217, %c0_218, %c0_219] : memref<1x16x16x128xf32, #tpu.memory_space<vmem>>, vector<1x16x16x128xf32>
    %177 = vector.shape_cast %176 : vector<1x16x16x128xf32> to vector<16x16x128xf32>
    %178 = vector.shape_cast %175 : vector<16x16x128xf32> to vector<1x16x16x128xf32>
    tpu.vector_store %arg8[%c0_216, %c0_217, %c0_218, %c0_219], %178 {strides = array<i32>} : memref<1x16x16x128xf32, #tpu.memory_space<vmem>>, vector<1x16x16x128xf32>,
    return
  }
  func.func @transform_0(%arg0: i32) -> (i32, i32, i32, i32) {
    %c0_i32 = arith.constant 0 : i32
    %c0_i32_0 = arith.constant 0 : i32
    %c0_i32_1 = arith.constant 0 : i32
    %c0_i32_2 = arith.constant 0 : i32
    return %arg0, %c0_i32, %c0_i32_0, %c0_i32_1 : i32, i32, i32, i32
  }
  func.func @transform_1(%arg0: i32) -> (i32, i32, i32) {
    %c0_i32 = arith.constant 0 : i32
    %c0_i32_0 = arith.constant 0 : i32
    %c0_i32_1 = arith.constant 0 : i32
    %c0_i32_2 = arith.constant 0 : i32
    return %c0_i32, %c0_i32_0, %c0_i32_1 : i32, i32, i32
  }
  func.func @transform_2(%arg0: i32) -> (i32, i32) {
    %c0_i32 = arith.constant 0 : i32
    %c0_i32_0 = arith.constant 0 : i32
    %c0_i32_1 = arith.constant 0 : i32
    return %c0_i32, %c0_i32_0 : i32, i32
  }
  func.func @transform_3(%arg0: i32) -> (i32, i32) {
    %c0_i32 = arith.constant 0 : i32
    %c0_i32_0 = arith.constant 0 : i32
    %c0_i32_1 = arith.constant 0 : i32
    return %c0_i32, %c0_i32_0 : i32, i32
  }
  func.func @transform_4(%arg0: i32) -> (i32, i32, i32) {
    %c0_i32 = arith.constant 0 : i32
    %c0_i32_0 = arith.constant 0 : i32
    %c0_i32_1 = arith.constant 0 : i32
    %c0_i32_2 = arith.constant 0 : i32
    return %c0_i32, %c0_i32_0, %c0_i32_1 : i32, i32, i32
  }
  func.func @transform_5(%arg0: i32) -> (i32, i32) {
    %c0_i32 = arith.constant 0 : i32
    %c0_i32_0 = arith.constant 0 : i32
    %c0_i32_1 = arith.constant 0 : i32
    return %c0_i32, %c0_i32_0 : i32, i32
  }
  func.func @transform_6(%arg0: i32) -> (i32, i32) {
    %c0_i32 = arith.constant 0 : i32
    %c0_i32_0 = arith.constant 0 : i32
    %c0_i32_1 = arith.constant 0 : i32
    return %c0_i32, %c0_i32_0 : i32, i32
  }
  func.func @transform_7(%arg0: i32) -> (i32, i32, i32, i32) {
    %c0_i32 = arith.constant 0 : i32
    %c0_i32_0 = arith.constant 0 : i32
    %c0_i32_1 = arith.constant 0 : i32
    %c0_i32_2 = arith.constant 0 : i32
    return %arg0, %c0_i32, %c0_i32_0, %c0_i32_1 : i32, i32, i32, i32
  }
}

</mosaic_0001>

<bundles_post_ra>
// kernel: conv_block_forward.1
= control target key start
LH: loop header
LB: loop body
LE: loop exit
PB: predicated region body
PF: predicated region fallthrough
CT: control target
= control target key end

     0   :  { %s10026_s24 = smov 0   ;;  %s13289_s0 = inlined_call_operand.vmem [shape: f32[2,16,16,4], index: 0, kind: input, shape index: {}]   ;;  %s13290_s1 = inlined_call_operand.vmem [shape: f32[9,128,128], index: 1, kind: input, shape index: {}]   ;;  %s13291_s2 = inlined_call_operand.vmem [shape: f32[1,128], index: 2, kind: input, shape index: {}]   ;;  %s13292_s3 = inlined_call_operand.vmem [shape: f32[1,128], index: 3, kind: input, shape index: {}]   ;;  %s13293_s4 = inlined_call_operand.vmem [shape: f32[9,128,128], index: 4, kind: input, shape index: {}]   ;;  %s13294_s5 = inlined_call_operand.vmem [shape: f32[1,128], index: 5, kind: input, shape index: {}]   ;;  %s13295_s6 = inlined_call_operand.vmem [shape: f32[1,128], index: 6, kind: input, shape index: {}]   ;;  %s13296_s7 = inlined_call_operand.vmem [shape: f32[2,16,16,128], index: 7, kind: output, shape index: {}]  }
   0x1 LB: > { %s7389_s25 = sadd.s32 4294967295, %s9983_s24   ;;  %p7393_p0 = scmp.ge.s32.totalorder %s9983_s24, 1  ;;  %s9983_s24 = sphi %s10026_s24, %s17_s24  }
   0x2   : > { %p237_p1 = scmp.lt.s32.totalorder %s9983_s24, 3 }
   0x4   : > { %p238_p2 = pnand %p7393_p0, %p237_p1 }
   0x6   : > { %241 = sbr.rel (%p238_p2) target bundleno = 1056 (0x420), region = 48 }
   0xb   : > { %v10037_v0 = vld [vmem:[%s13290_s1 + $0x78] sm:$0xff]  ;;  %v10047_v2 = vld [vmem:[%s13290_s1 + $0x70] sm:$0xff]  ;;  %p10051_p3 = scmp.lt.s32.totalorder %s7389_s25, 1  ;;  %v9985_v4 = vmov 0.0   ;;  %v498_v5 = vld [vmem:[%s13290_s1 + $0x68] sm:$0xff]  ;;  %vm420_vm0 = vcmask 31744  }
   0xc   : > { %v10042_v1 = vld [vmem:[%s13290_s1 + $0xf8] sm:$0xff]  ;;  %8526 = vmatprep.subr.mxu0 %v10037_v0  ;;  %v10060_v3 = vld [vmem:[%s13290_s1 + $0xf0] sm:$0xff]  ;;  %279 = vst [vmem:[#allocation2] sm:$0xff] %v9985_v4  ;;  %280 = vst [vmem:[#allocation2 + $0x8] sm:$0xff] %v9985_v4  ;;  %8558 = vmatprep.mubr.f32.mxu0 %v9985_v4 }
   0xd   : > { %8606 = vmatprep.subr.mxu1 %v10042_v1  ;;  %281 = vst [vmem:[#allocation2 + $0x10] sm:$0x3] %v9985_v4  ;;  %282 = vst [vmem:[#allocation2 + $0x18] sm:$0xff] %v9985_v4  ;;  %8527 = vmatpush3.msra.mxu0 %v10037_v0  ;;  %v7411_v6 = vld [vmem:[%s13290_s1 + $0xe8] sm:$0xff]  ;;  %s13619_s25 = smov (!%p10051_p3, %s7389_s25), 1  ;;  %v497_v7 = vld [vmem:[%s13290_s1 + $0x60] sm:$0xff] }
   0xe   : > { %283 = vst [vmem:[#allocation2 + $0x20] sm:$0xff] %v9985_v4  ;;  %284 = vst [vmem:[#allocation2 + $0x28] sm:$0x3] %v9985_v4  ;;  %8607 = vmatpush3.msra.mxu1 %v10042_v1  ;;  %8528 = vmatprep.subr.mxu0 %v10047_v2  ;;  %v7410_v8 = vld [vmem:[%s13290_s1 + $0xe0] sm:$0xff]  ;;  %s7660_s20 = sshll.u32 %s13619_s25, 8  ;;  %v496_v9 = vld [vmem:[%s13290_s1 + $0x58] sm:$0xff] }
   0xf   : > { %285 = vst [vmem:[#allocation2 + $0x30] sm:$0xff] %v9985_v4  ;;  %286 = vst [vmem:[#allocation2 + $0x38] sm:$0xff] %v9985_v4  ;;  %8608 = vmatprep.subr.mxu1 %v10060_v3  ;;  %8529 = vmatpush3.msra.mxu0 %v10047_v2  ;;  %v7409_v10 = vld [vmem:[%s13290_s1 + $0xd8] sm:$0xff]  ;;  %v495_v11 = vld [vmem:[%s13290_s1 + $0x50] sm:$0xff]  ;;  %s10212_s10 = scalar_lea.vmem %s13289_s0, %s7660_s20  ;;  %s13081_s17 = scalar_lea.vmem %s13296_s7, %s7660_s20 }
  0x10   : > { %287 = vst [vmem:[#allocation2 + $0x40] sm:$0x3] %v9985_v4  ;;  %288 = vst [vmem:[#allocation2 + $0x48] sm:$0xff] %v9985_v4  ;;  %8609 = vmatpush3.msra.mxu1 %v10060_v3  ;;  %8530 = vmatprep.subr.mxu0 %v498_v5  ;;  %v7408_v12 = vld [vmem:[%s13290_s1 + $0xd0] sm:$0xff]  ;;  %v494_v13 = vld [vmem:[%s13290_s1 + $0x48] sm:$0xff] }
  0x11   : > { %289 = vst [vmem:[#allocation2 + $0x50] sm:$0xff] %v9985_v4  ;;  %290 = vst [vmem:[#allocation2 + $0x58] sm:$0x3] %v9985_v4  ;;  %8610 = vmatprep.subr.mxu1 %v7411_v6  ;;  %8531 = vmatpush3.msra.mxu0 %v498_v5  ;;  %v7407_v14 = vld [vmem:[%s13290_s1 + $0xc8] sm:$0xff]  ;;  %v493_v15 = vld [vmem:[%s13290_s1 + $0x40] sm:$0xff] }
  0x12   : > { %291 = vst [vmem:[#allocation2 + $0x60] sm:$0xff] %v9985_v4  ;;  %292 = vst [vmem:[#allocation2 + $0x68] sm:$0xff] %v9985_v4  ;;  %8611 = vmatpush3.msra.mxu1 %v7411_v6  ;;  %8532 = vmatprep.subr.mxu0 %v497_v7  ;;  %v387_v16 = vld [vmem:[%s10212_s10] sm:$0xff]  ;;  %v388_v18 = vld [vmem:[%s10212_s10 + $0x8] sm:$0xff] }
  0x13   : > { %293 = vst [vmem:[#allocation2 + $0x70] sm:$0x3] %v9985_v4  ;;  %294 = vst [vmem:[#allocation2 + $0x78] sm:$0xff] %v9985_v4  ;;  %8612 = vmatprep.subr.mxu1 %v7410_v8  ;;  %8533 = vmatpush3.msra.mxu0 %v497_v7  ;;  %v7406_v17 = vld [vmem:[%s13290_s1 + $0xc0] sm:$0xff]  ;;  %v389_v19 = vld [vmem:[%s10212_s10 + $0x10] sm:$0xff] }
  0x14   : > { %295 = vst [vmem:[#allocation2 + $0x80] sm:$0xff] %v9985_v4  ;;  %296 = vst [vmem:[#allocation2 + $0x88] sm:$0x3] %v9985_v4  ;;  %8613 = vmatpush3.msra.mxu1 %v7410_v8  ;;  %8534 = vmatprep.subr.mxu0 %v496_v9  ;;  %v492_v20 = vld [vmem:[%s13290_s1 + $0x38] sm:$0xff]  ;;  %v391_v22 = vld [vmem:[%s10212_s10 + $0x20] sm:$0xff] }
  0x15   : > { %297 = vst [vmem:[#allocation2 + $0x90] sm:$0xff] %v9985_v4  ;;  %298 = vst [vmem:[#allocation2 + $0x98] sm:$0xff] %v9985_v4  ;;  %8614 = vmatprep.subr.mxu1 %v7409_v10  ;;  %8535 = vmatpush3.msra.mxu0 %v496_v9  ;;  %v390_v21 = vld [vmem:[%s10212_s10 + $0x18] sm:$0xff]  ;;  %v392_v24 = vld [vmem:[%s10212_s10 + $0x28] sm:$0xff] }
  0x16   : > { %299 = vst [vmem:[#allocation2 + $0xa0] sm:$0x3] %v9985_v4  ;;  %300 = vst [vmem:[#allocation2 + $0xa8] sm:$0xff] %v9985_v4  ;;  %8615 = vmatpush3.msra.mxu1 %v7409_v10  ;;  %8536 = vmatprep.subr.mxu0 %v495_v11  ;;  %v7405_v23 = vld [vmem:[%s13290_s1 + $0xb8] sm:$0xff]  ;;  %v393_v25 = vld [vmem:[%s10212_s10 + $0x30] sm:$0xff] }
  0x17   : > { %301 = vst [vmem:[#allocation2 + $0xb0] sm:$0xff] %v9985_v4  ;;  %302 = vst [vmem:[#allocation2 + $0xb8] sm:$0x3] %v9985_v4  ;;  %8616 = vmatprep.subr.mxu1 %v7408_v12  ;;  %8537 = vmatpush3.msra.mxu0 %v495_v11  ;;  %v491_v26 = vld [vmem:[%s13290_s1 + $0x30] sm:$0xff]  ;;  %v394_v27 = vld [vmem:[%s10212_s10 + $0x38] sm:$0xff] }
  0x18   : > { %303 = vst [vmem:[#allocation2 + $0xc0] sm:$0xff] %v9985_v4  ;;  %304 = vst [vmem:[#allocation2 + $0xc8] sm:$0xff] %v9985_v4  ;;  %8617 = vmatpush3.msra.mxu1 %v7408_v12  ;;  %8538 = vmatprep.subr.mxu0 %v494_v13  ;;  %v395_v28 = vld [vmem:[%s10212_s10 + $0x40] sm:$0xff]  ;;  %v7404_v29 = vld [vmem:[%s13290_s1 + $0xb0] sm:$0xff] }
  0x19   : > { %305 = vst [vmem:[#allocation2 + $0xd0] sm:$0x3] %v9985_v4  ;;  %306 = vst [vmem:[#allocation2 + $0xd8] sm:$0xff] %v9985_v4  ;;  %8618 = vmatprep.subr.mxu1 %v7407_v14  ;;  %8539 = vmatpush3.msra.mxu0 %v494_v13  ;;  %v396_v30 = vld [vmem:[%s10212_s10 + $0x48] sm:$0xff]  ;;  %v397_v31 = vld [vmem:[%s10212_s10 + $0x50] sm:$0xff] }
  0x1a   : > { %307 = vst [vmem:[#allocation2 + $0xe0] sm:$0xff] %v9985_v4  ;;  %308 = vst [vmem:[#allocation2 + $0xe8] sm:$0x3] %v9985_v4  ;;  %8619 = vmatpush3.msra.mxu1 %v7407_v14  ;;  %8540 = vmatprep.subr.mxu0 %v493_v15  ;;  %v490_v32 = vld [vmem:[%s13290_s1 + $0x28] sm:$0xff]  ;;  %v398_v33 = vld [vmem:[%s10212_s10 + $0x58] sm:$0xff] }
  0x1b   : > { %309 = vst [vmem:[#allocation2 + $0xf0] sm:$0xff] %v9985_v4  ;;  %310 = vst [vmem:[#allocation2 + $0xf8] sm:$0xff] %v9985_v4  ;;  %8620 = vmatprep.subr.mxu1 %v7406_v17  ;;  %8541 = vmatpush3.msra.mxu0 %v493_v15  ;;  %v399_v34 = vld [vmem:[%s10212_s10 + $0x60] sm:$0xff]  ;;  %v7403_v35 = vld [vmem:[%s13290_s1 + $0xa8] sm:$0xff] }
  0x1c   : > { %311 = vst [vmem:[#allocation2 + $0x100] sm:$0x3] %v9985_v4  ;;  %312 = vst [vmem:[#allocation2 + $0x108] sm:$0xff] %v9985_v4  ;;  %8621 = vmatpush3.msra.mxu1 %v7406_v17  ;;  %8542 = vmatprep.subr.mxu0 %v492_v20  ;;  %v400_v36 = vld [vmem:[%s10212_s10 + $0x68] sm:$0xff]  ;;  %v401_v37 = vld [vmem:[%s10212_s10 + $0x70] sm:$0xff] }
  0x1d   : > { %313 = vst [vmem:[#allocation2 + $0x110] sm:$0xff] %v9985_v4  ;;  %314 = vst [vmem:[#allocation2 + $0x118] sm:$0x3] %v9985_v4  ;;  %8622 = vmatprep.subr.mxu1 %v7405_v23  ;;  %8543 = vmatpush3.msra.mxu0 %v492_v20  ;;  %v402_v38 = vld [vmem:[%s10212_s10 + $0x78] sm:$0xff]  ;;  %v489_v39 = vld [vmem:[%s13290_s1 + $0x20] sm:$0xff] }
  0x1e   : > { %315 = vst [vmem:[#allocation2 + $0x120] sm:$0xff] %v9985_v4  ;;  %316 = vst [vmem:[#allocation2 + $0x128] sm:$0xff] %v9985_v4  ;;  %8623 = vmatpush3.msra.mxu1 %v7405_v23  ;;  %8544 = vmatprep.subr.mxu0 %v491_v26  ;;  %v7402_v40 = vld [vmem:[%s13290_s1 + $0xa0] sm:$0xff]  ;;  %v488_v41 = vld [vmem:[%s13290_s1 + $0x18] sm:$0xff] }
  0x1f   : > { %317 = vst [vmem:[#allocation2 + $0x130] sm:$0x3] %v9985_v4  ;;  %318 = vst [vmem:[#allocation2 + $0x138] sm:$0xff] %v9985_v4  ;;  %8624 = vmatprep.subr.mxu1 %v7404_v29  ;;  %8545 = vmatpush3.msra.mxu0 %v491_v26  ;;  %v7401_v42 = vld [vmem:[%s13290_s1 + $0x98] sm:$0xff]  ;;  %v487_v43 = vld [vmem:[%s13290_s1 + $0x10] sm:$0xff] }
  0x20   : > { %319 = vst [vmem:[#allocation2 + $0x140] sm:$0xff] %v9985_v4  ;;  %320 = vst [vmem:[#allocation2 + $0x148] sm:$0x3] %v9985_v4  ;;  %8625 = vmatpush3.msra.mxu1 %v7404_v29  ;;  %8546 = vmatprep.subr.mxu0 %v490_v32  ;;  %v7400_v44 = vld [vmem:[%s13290_s1 + $0x90] sm:$0xff]  ;;  %v486_v45 = vld [vmem:[%s13290_s1 + $0x8] sm:$0xff] }
  0x21   : > { %321 = vst [vmem:[#allocation2 + $0x150] sm:$0xff] %v9985_v4  ;;  %322 = vst [vmem:[#allocation2 + $0x158] sm:$0xff] %v9985_v4  ;;  %8626 = vmatprep.subr.mxu1 %v7403_v35  ;;  %8547 = vmatpush3.msra.mxu0 %v490_v32  ;;  %v7399_v46 = vld [vmem:[%s13290_s1 + $0x88] sm:$0xff]  ;;  %v485_v47 = vld [vmem:[%s13290_s1] sm:$0xff] }
  0x22   : > { %323 = vst [vmem:[#allocation2 + $0x160] sm:$0x3] %v9985_v4  ;;  %324 = vst [vmem:[#allocation2 + $0x168] sm:$0xff] %v9985_v4  ;;  %8627 = vmatpush3.msra.mxu1 %v7403_v35  ;;  %8548 = vmatprep.subr.mxu0 %v489_v39  ;;  %v7398_v48 = vld [vmem:[%s13290_s1 + $0x80] sm:$0xff]  ;;  %v759_v51 = vld [vmem:[#allocation2 + $0x9] sm:$0xff] }
  0x23   : > { %325 = vst [vmem:[#allocation2 + $0x170] sm:$0xff] %v9985_v4  ;;  %326 = vst [vmem:[#allocation2 + $0x178] sm:$0x3] %v9985_v4  ;;  %8628 = vmatprep.subr.mxu1 %v7402_v40  ;;  %8549 = vmatpush3.msra.mxu0 %v489_v39  ;;  %v758_v49 = vld [vmem:[#allocation2 + $0x1] sm:$0xff]  ;;  %v7429_v52 = vld [vmem:[%s13290_s1 + $0x178] sm:$0xff] }
  0x24   : > { %327 = vst [vmem:[#allocation2 + $0x180] sm:$0xff] %v9985_v4  ;;  %328 = vst [vmem:[#allocation2 + $0x188] sm:$0xff] %v9985_v4  ;;  %8629 = vmatpush3.msra.mxu1 %v7402_v40  ;;  %8550 = vmatprep.subr.mxu0 %v488_v41  ;;  %v403_v50 = vld [vmem:[%s10212_s10 + $0x80] sm:$0xff]  ;;  %v404_v53 = vld [vmem:[%s10212_s10 + $0x88] sm:$0xff] }
  0x25   : > { %329 = vst [vmem:[#allocation2 + $0x190] sm:$0x3] %v9985_v4  ;;  %330 = vst [vmem:[#allocation2 + $0x198] sm:$0xff] %v9985_v4  ;;  %8630 = vmatprep.subr.mxu1 %v7401_v42  ;;  %8551 = vmatpush3.msra.mxu0 %v488_v41  ;;  %v405_v55 = vld [vmem:[%s10212_s10 + $0x90] sm:$0xff]  ;;  %v406_v56 = vld [vmem:[%s10212_s10 + $0x98] sm:$0xff] }
  0x26   : > { %331 = vst [vmem:[#allocation2 + $0x1a0] sm:$0xff] %v9985_v4  ;;  %332 = vst [vmem:[#allocation2 + $0x1a8] sm:$0x3] %v9985_v4  ;;  %8631 = vmatpush3.msra.mxu1 %v7401_v42  ;;  %8552 = vmatprep.subr.mxu0 %v487_v43  ;;  %v7428_v58 = vld [vmem:[%s13290_s1 + $0x170] sm:$0xff]  ;;  %v7445_v59 = vld [vmem:[%s13290_s1 + $0x1f8] sm:$0xff] }
  0x27   : > { %333 = vst [vmem:[#allocation3] sm:$0xff] %v9985_v4  ;;  %334 = vst [vmem:[#allocation3 + $0x8] sm:$0xff] %v9985_v4  ;;  %8632 = vmatprep.subr.mxu1 %v7400_v44  ;;  %8553 = vmatpush3.msra.mxu0 %v487_v43  ;;  %v407_v60 = vld [vmem:[%s10212_s10 + $0xa0] sm:$0xff]  ;;  %v408_v61 = vld [vmem:[%s10212_s10 + $0xa8] sm:$0xff] }
  0x28   : > { %335 = vst [vmem:[#allocation3 + $0x10] sm:$0x3] %v9985_v4  ;;  %336 = vst [vmem:[#allocation3 + $0x18] sm:$0xff] %v9985_v4  ;;  %8633 = vmatpush3.msra.mxu1 %v7400_v44  ;;  %8554 = vmatprep.subr.mxu0 %v486_v45  ;;  %v409_v0 = vld [vmem:[%s10212_s10 + $0xb0] sm:$0xff]  ;;  %v7427_v2 = vld [vmem:[%s13290_s1 + $0x168] sm:$0xff] }
  0x29   : > { %337 = vst [vmem:[#allocation3 + $0x20] sm:$0xff] %v9985_v4  ;;  %338 = vst [vmem:[#allocation3 + $0x28] sm:$0x3] %v9985_v4  ;;  %8634 = vmatprep.subr.mxu1 %v7399_v46  ;;  %8555 = vmatpush3.msra.mxu0 %v486_v45  ;;  %v410_v3 = vld [vmem:[%s10212_s10 + $0xb8] sm:$0xff]  ;;  %v411_v5 = vld [vmem:[%s10212_s10 + $0xc0] sm:$0xff] }
  0x2a   : > { %339 = vst [vmem:[#allocation3 + $0x30] sm:$0xff] %v9985_v4  ;;  %340 = vst [vmem:[#allocation3 + $0x38] sm:$0xff] %v9985_v4  ;;  %8635 = vmatpush3.msra.mxu1 %v7399_v46  ;;  %8556 = vmatprep.subr.mxu0 %v485_v47  ;;  %v412_v6 = vld [vmem:[%s10212_s10 + $0xc8] sm:$0xff]  ;;  %v7426_v11 = vld [vmem:[%s13290_s1 + $0x160] sm:$0xff] }
  0x2b   : > { %341 = vst [vmem:[#allocation3 + $0x40] sm:$0x3] %v9985_v4  ;;  %342 = vst [vmem:[#allocation3 + $0x48] sm:$0xff] %v9985_v4  ;;  %8636 = vmatprep.subr.mxu1 %v7398_v48  ;;  %8557 = vmatpush3.msra.mxu0 %v485_v47  ;;  %v7444_v12 = vld [vmem:[%s13290_s1 + $0x1f0] sm:$0xff]  ;;  %v7443_v20 = vld [vmem:[%s13290_s1 + $0x1e8] sm:$0xff] }
  0x2c   : > { %343 = vst [vmem:[#allocation3 + $0x50] sm:$0xff] %v9985_v4  ;;  %344 = vst [vmem:[#allocation3 + $0x58] sm:$0x3] %v9985_v4  ;;  %8637 = vmatpush3.msra.mxu1 %v7398_v48  ;;  %8638 = vmatprep.mubr.f32.mxu1 %v758_v49  ;;  %v413_v13 = vld [vmem:[%s10212_s10 + $0xd0] sm:$0xff]  ;;  %v415_v23 = vld [vmem:[%s10212_s10 + $0xe0] sm:$0xff] }
  0x2d   : > { %345 = vst [vmem:[#allocation3 + $0x60] sm:$0xff] %v9985_v4  ;;  %346 = vst [vmem:[#allocation3 + $0x68] sm:$0xff] %v9985_v4  ;;  %8559 = vmatmul.mubr.f32.vlgmr.msra.gmra.mxu0 %v9985_v4  ;;  %8639 = vmatmul.mubr.f32.vlgmr.msra.gmra.mxu1 %v759_v51  ;;  %v7422_v39 = vld [vmem:[%s13290_s1 + $0x140] sm:$0xff]  ;;  %v7440_v40 = vld [vmem:[%s13290_s1 + $0x1d0] sm:$0xff] }
  0x2e   : > { %347 = vst [vmem:[#allocation3 + $0x70] sm:$0x3] %v9985_v4  ;;  %348 = vst [vmem:[#allocation3 + $0x78] sm:$0xff] %v9985_v4  ;;  %8686 = vmatprep.subr.mxu0 %v7429_v52  ;;  %8766 = vmatprep.subr.mxu1 %v7445_v59  ;;  %v7421_v45 = vld [vmem:[%s13290_s1 + $0x138] sm:$0xff]  ;;  %v7439_v46 = vld [vmem:[%s13290_s1 + $0x1c8] sm:$0xff] }
  0x2f   : > { %349 = vst [vmem:[#allocation3 + $0x80] sm:$0xff] %v9985_v4  ;;  %350 = vst [vmem:[#allocation3 + $0x88] sm:$0x3] %v9985_v4  ;;  %8687 = vmatpush3.msra.mxu0 %v7429_v52  ;;  %8767 = vmatpush3.msra.mxu1 %v7445_v59  ;;  %v7420_v51 = vld [vmem:[%s13290_s1 + $0x130] sm:$0xff]  ;;  %v7438_v52 = vld [vmem:[%s13290_s1 + $0x1c0] sm:$0xff] }
  0x30   : > { %351 = vst [vmem:[#allocation3 + $0x90] sm:$0xff] %v9985_v4  ;;  %352 = vst [vmem:[#allocation3 + $0x98] sm:$0xff] %v9985_v4  ;;  %8688 = vmatprep.subr.mxu0 %v7428_v58  ;;  %8768 = vmatprep.subr.mxu1 %v7444_v12  ;;  %v7419_v59 = vld [vmem:[%s13290_s1 + $0x128] sm:$0xff] }
  0x31   : > { %353 = vst [vmem:[#allocation3 + $0xa0] sm:$0x3] %v9985_v4  ;;  %354 = vst [vmem:[#allocation3 + $0xa8] sm:$0xff] %v9985_v4  ;;  %8689 = vmatpush3.msra.mxu0 %v7428_v58  ;;  %8769 = vmatpush3.msra.mxu1 %v7444_v12  ;;  %v418_v12 = vld [vmem:[%s10212_s10 + $0xf8] sm:$0xff] }
  0x32   : > { %355 = vst [vmem:[#allocation3 + $0xb0] sm:$0xff] %v9985_v4  ;;  %356 = vst [vmem:[#allocation3 + $0xb8] sm:$0x3] %v9985_v4  ;;  %8690 = vmatprep.subr.mxu0 %v7427_v2  ;;  %8770 = vmatprep.subr.mxu1 %v7443_v20 }
  0x33   : > { %357 = vst [vmem:[#allocation3 + $0xc0] sm:$0xff] %v9985_v4  ;;  %358 = vst [vmem:[#allocation3 + $0xc8] sm:$0xff] %v9985_v4  ;;  %8691 = vmatpush3.msra.mxu0 %v7427_v2  ;;  %8771 = vmatpush3.msra.mxu1 %v7443_v20 }
  0x34   : > { %359 = vst [vmem:[#allocation3 + $0xd0] sm:$0x3] %v9985_v4  ;;  %360 = vst [vmem:[#allocation3 + $0xd8] sm:$0xff] %v9985_v4  ;;  %8692 = vmatprep.subr.mxu0 %v7426_v11 }
  0x35   : > { %361 = vst [vmem:[#allocation3 + $0xe0] sm:$0xff] %v9985_v4  ;;  %362 = vst [vmem:[#allocation3 + $0xe8] sm:$0x3] %v9985_v4  ;;  %8693 = vmatpush3.msra.mxu0 %v7426_v11  ;;  %v7436_v11 = vld [vmem:[%s13290_s1 + $0x1b0] sm:$0xff] }
  0x36   : > { %363 = vst [vmem:[#allocation3 + $0xf0] sm:$0xff] %v9985_v4  ;;  %364 = vst [vmem:[#allocation3 + $0xf8] sm:$0xff] %v9985_v4 }
  0x37   : > { %365 = vst [vmem:[#allocation3 + $0x100] sm:$0x3] %v9985_v4  ;;  %366 = vst [vmem:[#allocation3 + $0x108] sm:$0xff] %v9985_v4 }
  0x38   : > { %367 = vst [vmem:[#allocation3 + $0x110] sm:$0xff] %v9985_v4  ;;  %368 = vst [vmem:[#allocation3 + $0x118] sm:$0x3] %v9985_v4 }
  0x39   : > { %369 = vst [vmem:[#allocation3 + $0x120] sm:$0xff] %v9985_v4  ;;  %370 = vst [vmem:[#allocation3 + $0x128] sm:$0xff] %v9985_v4 }
  0x3a   : > { %371 = vst [vmem:[#allocation3 + $0x130] sm:$0x3] %v9985_v4  ;;  %372 = vst [vmem:[#allocation3 + $0x138] sm:$0xff] %v9985_v4 }
  0x3b   : > { %373 = vst [vmem:[#allocation3 + $0x140] sm:$0xff] %v9985_v4  ;;  %374 = vst [vmem:[#allocation3 + $0x148] sm:$0x3] %v9985_v4 }
  0x3c   : > { %375 = vst [vmem:[#allocation3 + $0x150] sm:$0xff] %v9985_v4  ;;  %376 = vst [vmem:[#allocation3 + $0x158] sm:$0xff] %v9985_v4 }
  0x3d   : > { %377 = vst [vmem:[#allocation3 + $0x160] sm:$0x3] %v9985_v4  ;;  %378 = vst [vmem:[#allocation3 + $0x168] sm:$0xff] %v9985_v4 }
  0x3e   : > { %379 = vst [vmem:[#allocation3 + $0x170] sm:$0xff] %v9985_v4  ;;  %380 = vst [vmem:[#allocation3 + $0x178] sm:$0x3] %v9985_v4 }
  0x3f   : > { %381 = vst [vmem:[#allocation3 + $0x180] sm:$0xff] %v9985_v4  ;;  %382 = vst [vmem:[#allocation3 + $0x188] sm:$0xff] %v9985_v4 }
  0x40   : > { %383 = vst [vmem:[#allocation3 + $0x190] sm:$0x3] %v9985_v4  ;;  %384 = vst [vmem:[#allocation3 + $0x198] sm:$0xff] %v9985_v4 }
  0x41   : > { %385 = vst [vmem:[#allocation3 + $0x1a0] sm:$0xff] %v9985_v4  ;;  %386 = vst [vmem:[#allocation3 + $0x1a8] sm:$0x3] %v9985_v4 }
  0x42   : > { %421 = vst.msk [vmem:[#allocation2 + $0x19] sm:$0xff] %vm420_vm0, %v387_v16  ;;  %422 = vst.msk [vmem:[#allocation2 + $0x21] sm:$0xff] %vm420_vm0, %v388_v18  ;;  %v414_v18 = vld [vmem:[%s10212_s10 + $0xd8] sm:$0xff] }
  0x43   : > { %423 = vst.msk [vmem:[#allocation2 + $0x31] sm:$0xff] %vm420_vm0, %v389_v19  ;;  %424 = vst.msk [vmem:[#allocation2 + $0x39] sm:$0xff] %vm420_vm0, %v390_v21  ;;  %v7425_v19 = vld [vmem:[%s13290_s1 + $0x158] sm:$0xff] }
  0x44   : > { %425 = vst.msk [vmem:[#allocation2 + $0x49] sm:$0xff] %vm420_vm0, %v391_v22  ;;  %426 = vst.msk [vmem:[#allocation2 + $0x51] sm:$0xff] %vm420_vm0, %v392_v24  ;;  %v416_v24 = vld [vmem:[%s10212_s10 + $0xe8] sm:$0xff]  ;;  %8694 = vmatprep.subr.mxu0 %v7425_v19 }
  0x45   : > { %427 = vst.msk [vmem:[#allocation2 + $0x61] sm:$0xff] %vm420_vm0, %v393_v25  ;;  %428 = vst.msk [vmem:[#allocation2 + $0x69] sm:$0xff] %vm420_vm0, %v394_v27  ;;  %8695 = vmatpush3.msra.mxu0 %v7425_v19  ;;  %v7424_v27 = vld [vmem:[%s13290_s1 + $0x150] sm:$0xff] }
  0x46   : > { %429 = vst.msk [vmem:[#allocation2 + $0x79] sm:$0xff] %vm420_vm0, %v395_v28  ;;  %430 = vst.msk [vmem:[#allocation2 + $0x81] sm:$0xff] %vm420_vm0, %v396_v30  ;;  %v7442_v28 = vld [vmem:[%s13290_s1 + $0x1e0] sm:$0xff]  ;;  %8696 = vmatprep.subr.mxu0 %v7424_v27 }
  0x47   : > { %431 = vst.msk [vmem:[#allocation2 + $0x91] sm:$0xff] %vm420_vm0, %v397_v31  ;;  %432 = vst.msk [vmem:[#allocation2 + $0x99] sm:$0xff] %vm420_vm0, %v398_v33  ;;  %8772 = vmatprep.subr.mxu1 %v7442_v28  ;;  %8697 = vmatpush3.msra.mxu0 %v7424_v27  ;;  %v7423_v33 = vld [vmem:[%s13290_s1 + $0x148] sm:$0xff] }
  0x48   : > { %433 = vst.msk [vmem:[#allocation2 + $0xa9] sm:$0xff] %vm420_vm0, %v399_v34  ;;  %434 = vst.msk [vmem:[#allocation2 + $0xb1] sm:$0xff] %vm420_vm0, %v400_v36  ;;  %8773 = vmatpush3.msra.mxu1 %v7442_v28  ;;  %v7441_v34 = vld [vmem:[%s13290_s1 + $0x1d8] sm:$0xff]  ;;  %8698 = vmatprep.subr.mxu0 %v7423_v33 }
  0x49   : > { %435 = vst.msk [vmem:[#allocation2 + $0xc1] sm:$0xff] %vm420_vm0, %v401_v37  ;;  %436 = vst.msk [vmem:[#allocation2 + $0xc9] sm:$0xff] %vm420_vm0, %v402_v38  ;;  %v10313_v54 = vld [vmem:[#allocation2 + $0x18] sm:$0xff]  ;;  %v10332_v62 = vld [vmem:[#allocation2 + $0x20] sm:$0xff]  ;;  %8774 = vmatprep.subr.mxu1 %v7441_v34  ;;  %8699 = vmatpush3.msra.mxu0 %v7423_v33 }
  0x4a   : > { %437 = vst.msk [vmem:[#allocation2 + $0xd9] sm:$0xff] %vm420_vm0, %v403_v50  ;;  %438 = vst.msk [vmem:[#allocation2 + $0xe1] sm:$0xff] %vm420_vm0, %v404_v53  ;;  %v10318_v57 = vld [vmem:[#allocation2 + $0x19] sm:$0xff]  ;;  %8561 = vmatprep.mubr.f32.mxu0 %v10313_v54  ;;  %v10334_v63 = vld [vmem:[#allocation2 + $0x21] sm:$0xff]  ;;  %8775 = vmatpush3.msra.mxu1 %v7441_v34 }
  0x4b   : > { %439 = vst.msk [vmem:[#allocation2 + $0xf1] sm:$0xff] %vm420_vm0, %v405_v55  ;;  %440 = vst.msk [vmem:[#allocation2 + $0xf9] sm:$0xff] %vm420_vm0, %v406_v56  ;;  %8641 = vmatprep.mubr.f32.mxu1 %v10318_v57  ;;  %v10340_v1 = vld [vmem:[#allocation2 + $0x30] sm:$0xff]  ;;  %8562 = vmatmul.mubr.f32.gmra.mxu0 %v10332_v62  ;;  %v10357_v7 = vld [vmem:[#allocation2 + $0x38] sm:$0xff] }
  0x4c   : > { %441 = vst.msk [vmem:[#allocation2 + $0x109] sm:$0xff] %vm420_vm0, %v407_v60  ;;  %442 = vst.msk [vmem:[#allocation2 + $0x111] sm:$0xff] %vm420_vm0, %v408_v61  ;;  %v10347_v4 = vld [vmem:[#allocation2 + $0x31] sm:$0xff]  ;;  %8642 = vmatmul.mubr.f32.gmra.mxu1 %v10334_v63  ;;  %8564 = vmatprep.mubr.f32.mxu0 %v10340_v1  ;;  %v10359_v8 = vld [vmem:[#allocation2 + $0x39] sm:$0xff] }
  0x4d   : > { %443 = vst.msk [vmem:[#allocation2 + $0x121] sm:$0xff] %vm420_vm0, %v409_v0  ;;  %444 = vst.msk [vmem:[#allocation2 + $0x129] sm:$0xff] %vm420_vm0, %v410_v3  ;;  %8644 = vmatprep.mubr.f32.mxu1 %v10347_v4  ;;  %v10362_v9 = vld [vmem:[#allocation2 + $0x48] sm:$0xff]  ;;  %v10378_v14 = vld [vmem:[#allocation2 + $0x50] sm:$0xff]  ;;  %8700 = vmatprep.subr.mxu0 %v7422_v39 }
  0x4e   : > { %445 = vst.msk [vmem:[#allocation2 + $0x139] sm:$0xff] %vm420_vm0, %v411_v5  ;;  %446 = vst.msk [vmem:[#allocation2 + $0x141] sm:$0xff] %vm420_vm0, %v412_v6  ;;  %v10364_v10 = vld [vmem:[#allocation2 + $0x49] sm:$0xff]  ;;  %v10380_v15 = vld [vmem:[#allocation2 + $0x51] sm:$0xff]  ;;  %8776 = vmatprep.subr.mxu1 %v7440_v40  ;;  %8701 = vmatpush3.msra.mxu0 %v7422_v39 }
  0x4f   : > { %8565 = vmatmul.mubr.f32.gmra.mxu0 %v10357_v7  ;;  %447 = vst.msk [vmem:[#allocation2 + $0x151] sm:$0xff] %vm420_vm0, %v413_v13  ;;  %v10382_v16 = vld [vmem:[#allocation2 + $0x60] sm:$0xff]  ;;  %448 = vst.msk [vmem:[#allocation2 + $0x159] sm:$0xff] %vm420_vm0, %v414_v18  ;;  %v10396_v21 = vld [vmem:[#allocation2 + $0x68] sm:$0xff]  ;;  %8777 = vmatpush3.msra.mxu1 %v7440_v40 }
  0x50   : > { %8645 = vmatmul.mubr.f32.gmra.mxu1 %v10359_v8  ;;  %8567 = vmatprep.mubr.f32.mxu0 %v10362_v9  ;;  %v10384_v17 = vld [vmem:[#allocation2 + $0x61] sm:$0xff]  ;;  %v10400_v22 = vld [vmem:[#allocation2 + $0x69] sm:$0xff]  ;;  %v10404_v25 = vld [vmem:[#allocation2 + $0x78] sm:$0xff]  ;;  %449 = vst.msk [vmem:[#allocation2 + $0x169] sm:$0xff] %vm420_vm0, %v415_v23 }
  0x51   : > { %8647 = vmatprep.mubr.f32.mxu1 %v10364_v10  ;;  %v10406_v26 = vld [vmem:[#allocation2 + $0x79] sm:$0xff]  ;;  %450 = vst.msk [vmem:[#allocation2 + $0x171] sm:$0xff] %vm420_vm0, %v416_v24  ;;  %v10422_v30 = vld [vmem:[#allocation2 + $0x81] sm:$0xff]  ;;  %v10424_v31 = vld [vmem:[#allocation2 + $0x90] sm:$0xff]  ;;  %8702 = vmatprep.subr.mxu0 %v7421_v45 }
  0x52   : > { %v10420_v29 = vld [vmem:[#allocation2 + $0x80] sm:$0xff]  ;;  %v10426_v32 = vld [vmem:[#allocation2 + $0x91] sm:$0xff]  ;;  %v10442_v37 = vld [vmem:[#allocation2 + $0xa8] sm:$0xff]  ;;  %8778 = vmatprep.subr.mxu1 %v7439_v46  ;;  %8703 = vmatpush3.msra.mxu0 %v7421_v45  ;;  %452 = vst.msk [vmem:[#allocation2 + $0x189] sm:$0xff] %vm420_vm0, %v418_v12 }
  0x53   : > { %8568 = vmatmul.mubr.f32.gmra.mxu0 %v10378_v14  ;;  %v10438_v35 = vld [vmem:[#allocation2 + $0x98] sm:$0xff]  ;;  %v10444_v38 = vld [vmem:[#allocation2 + $0xa9] sm:$0xff]  ;;  %v10460_v43 = vld [vmem:[#allocation2 + $0xc0] sm:$0xff]  ;;  %8779 = vmatpush3.msra.mxu1 %v7439_v46 }
  0x54   : > { %8648 = vmatmul.mubr.f32.gmra.mxu1 %v10380_v15  ;;  %8570 = vmatprep.mubr.f32.mxu0 %v10382_v16  ;;  %v10440_v36 = vld [vmem:[#allocation2 + $0x99] sm:$0xff]  ;;  %v10456_v41 = vld [vmem:[#allocation2 + $0xb0] sm:$0xff]  ;;  %v10462_v44 = vld [vmem:[#allocation2 + $0xc1] sm:$0xff] }
  0x55   : > { %8650 = vmatprep.mubr.f32.mxu1 %v10384_v17  ;;  %v10458_v42 = vld [vmem:[#allocation2 + $0xb1] sm:$0xff]  ;;  %v10474_v47 = vld [vmem:[#allocation2 + $0xc8] sm:$0xff]  ;;  %v10480_v50 = vld [vmem:[#allocation2 + $0xd9] sm:$0xff]  ;;  %8704 = vmatprep.subr.mxu0 %v7420_v51 }
  0x56   : > { %v10476_v48 = vld [vmem:[#allocation2 + $0xc9] sm:$0xff]  ;;  %v10478_v49 = vld [vmem:[#allocation2 + $0xd8] sm:$0xff]  ;;  %v10492_v53 = vld [vmem:[#allocation2 + $0xe0] sm:$0xff]  ;;  %8780 = vmatprep.subr.mxu1 %v7438_v52  ;;  %8705 = vmatpush3.msra.mxu0 %v7420_v51 }
  0x57   : > { %8571 = vmatmul.mubr.f32.gmra.mxu0 %v10396_v21  ;;  %v10494_v55 = vld [vmem:[#allocation2 + $0xe1] sm:$0xff]  ;;  %v10496_v56 = vld [vmem:[#allocation2 + $0xf0] sm:$0xff]  ;;  %8781 = vmatpush3.msra.mxu1 %v7438_v52  ;;  %v7437_v60 = vld [vmem:[%s13290_s1 + $0x1b8] sm:$0xff] }
  0x58   : > { %8651 = vmatmul.mubr.f32.gmra.mxu1 %v10400_v22  ;;  %8573 = vmatprep.mubr.f32.mxu0 %v10404_v25  ;;  %v10498_v58 = vld [vmem:[#allocation2 + $0xf1] sm:$0xff]  ;;  %v10512_v0 = vld [vmem:[#allocation2 + $0xf9] sm:$0xff]  ;;  %v10514_v2 = vld [vmem:[#allocation2 + $0x108] sm:$0xff] }
  0x59   : > { %8653 = vmatprep.mubr.f32.mxu1 %v10406_v26  ;;  %v10510_v61 = vld [vmem:[#allocation2 + $0xf8] sm:$0xff]  ;;  %8706 = vmatprep.subr.mxu0 %v7419_v59  ;;  %v10516_v3 = vld [vmem:[#allocation2 + $0x109] sm:$0xff]  ;;  %v7418_v6 = vld [vmem:[%s13290_s1 + $0x120] sm:$0xff] }
  0x5a   : > { %8782 = vmatprep.subr.mxu1 %v7437_v60  ;;  %v417_v5 = vld [vmem:[%s10212_s10 + $0xf0] sm:$0xff]  ;;  %8707 = vmatpush3.msra.mxu0 %v7419_v59  ;;  %v10536_v19 = vld [vmem:[#allocation2 + $0x120] sm:$0xff]  ;;  %v7417_v23 = vld [vmem:[%s13290_s1 + $0x118] sm:$0xff] }
  0x5b   : > { %8574 = vmatmul.mubr.f32.gmra.mxu0 %v10420_v29  ;;  %8783 = vmatpush3.msra.mxu1 %v7437_v60  ;;  %451 = vst.msk [vmem:[#allocation2 + $0x181] sm:$0xff] %vm420_vm0, %v417_v5  ;;  %v10532_v13 = vld [vmem:[#allocation2 + $0x110] sm:$0xff]  ;;  %v10538_v20 = vld [vmem:[#allocation2 + $0x121] sm:$0xff]  ;;  %v10554_v33 = vld [vmem:[#allocation2 + $0x138] sm:$0xff] }
  0x5c   : > { %8654 = vmatmul.mubr.f32.gmra.mxu1 %v10422_v30  ;;  %8576 = vmatprep.mubr.f32.mxu0 %v10424_v31  ;;  %v10534_v18 = vld [vmem:[#allocation2 + $0x111] sm:$0xff]  ;;  %v7435_v24 = vld [vmem:[%s13290_s1 + $0x1a8] sm:$0xff]  ;;  %v10556_v34 = vld [vmem:[#allocation2 + $0x139] sm:$0xff] }
  0x5d   : > { %8656 = vmatprep.mubr.f32.mxu1 %v10426_v32  ;;  %8708 = vmatprep.subr.mxu0 %v7418_v6  ;;  %v10550_v27 = vld [vmem:[#allocation2 + $0x128] sm:$0xff]  ;;  %v7416_v39 = vld [vmem:[%s13290_s1 + $0x110] sm:$0xff]  ;;  %v7434_v40 = vld [vmem:[%s13290_s1 + $0x1a0] sm:$0xff] }
  0x5e   : > { %8784 = vmatprep.subr.mxu1 %v7436_v11  ;;  %8709 = vmatpush3.msra.mxu0 %v7418_v6  ;;  %v10552_v28 = vld [vmem:[#allocation2 + $0x129] sm:$0xff]  ;;  %v10568_v45 = vld [vmem:[#allocation2 + $0x140] sm:$0xff]  ;;  %v10574_v52 = vld [vmem:[#allocation2 + $0x151] sm:$0xff] }
  0x5f   : > { %8577 = vmatmul.mubr.f32.gmra.mxu0 %v10438_v35  ;;  %8785 = vmatpush3.msra.mxu1 %v7436_v11  ;;  %v10570_v46 = vld [vmem:[#allocation2 + $0x141] sm:$0xff]  ;;  %v10572_v51 = vld [vmem:[#allocation2 + $0x150] sm:$0xff]  ;;  %13304 = vst [vmem:[#allocation5_spill] sm:$0xff] %v10574_v52  ;;  %v7433_v60 = vld [vmem:[%s13290_s1 + $0x198] sm:$0xff] }
  0x60   : > { %8657 = vmatmul.mubr.f32.gmra.mxu1 %v10440_v36  ;;  %8579 = vmatprep.mubr.f32.mxu0 %v10442_v37  ;;  %v7415_v59 = vld [vmem:[%s13290_s1 + $0x108] sm:$0xff]  ;;  %v10586_v5 = vld [vmem:[#allocation2 + $0x158] sm:$0xff] }
  0x61   : > { %8659 = vmatprep.mubr.f32.mxu1 %v10444_v38  ;;  %8710 = vmatprep.subr.mxu0 %v7417_v23  ;;  %v10588_v6 = vld [vmem:[#allocation2 + $0x159] sm:$0xff]  ;;  %v10590_v11 = vld [vmem:[#allocation2 + $0x168] sm:$0xff] }
  0x62   : > { %8786 = vmatprep.subr.mxu1 %v7435_v24  ;;  %8711 = vmatpush3.msra.mxu0 %v7417_v23  ;;  %13305 = vst [vmem:[#allocation6_spill] sm:$0xff] %v10588_v6  ;;  %v10592_v12 = vld [vmem:[#allocation2 + $0x169] sm:$0xff]  ;;  %v7414_v23 = vld [vmem:[%s13290_s1 + $0x100] sm:$0xff] }
  0x63   : > { %8580 = vmatmul.mubr.f32.gmra.mxu0 %v10456_v41  ;;  %8787 = vmatpush3.msra.mxu1 %v7435_v24  ;;  %13306 = vst [vmem:[#allocation7_spill] sm:$0xff] %v10592_v12  ;;  %v7432_v24 = vld [vmem:[%s13290_s1 + $0x190] sm:$0xff] }
  0x64   : > { %8660 = vmatmul.mubr.f32.gmra.mxu1 %v10458_v42  ;;  %8582 = vmatprep.mubr.f32.mxu0 %v10460_v43 }
  0x65   : > { %8662 = vmatprep.mubr.f32.mxu1 %v10462_v44  ;;  %8712 = vmatprep.subr.mxu0 %v7416_v39 }
  0x66   : > { %8788 = vmatprep.subr.mxu1 %v7434_v40  ;;  %8713 = vmatpush3.msra.mxu0 %v7416_v39  ;;  %v10604_v39 = vld [vmem:[#allocation2 + $0x170] sm:$0xff] }
  0x67   : > { %8583 = vmatmul.mubr.f32.gmra.mxu0 %v10474_v47  ;;  %8789 = vmatpush3.msra.mxu1 %v7434_v40  ;;  %v10606_v40 = vld [vmem:[#allocation2 + $0x171] sm:$0xff] }
  0x68   : > { %8663 = vmatmul.mubr.f32.gmra.mxu1 %v10476_v48  ;;  %8585 = vmatprep.mubr.f32.mxu0 %v10478_v49  ;;  %13307 = vst [vmem:[#allocation8_spill] sm:$0xff] %v10606_v40 }
  0x69   : > { %8665 = vmatprep.mubr.f32.mxu1 %v10480_v50  ;;  %8714 = vmatprep.subr.mxu0 %v7415_v59 }
  0x6a   : > { %8790 = vmatprep.subr.mxu1 %v7433_v60  ;;  %8715 = vmatpush3.msra.mxu0 %v7415_v59  ;;  %v7431_v59 = vld [vmem:[%s13290_s1 + $0x188] sm:$0xff] }
  0x6b   : > { %8586 = vmatmul.mubr.f32.gmra.mxu0 %v10492_v53  ;;  %8791 = vmatpush3.msra.mxu1 %v7433_v60  ;;  %v1128_v60 = vld [vmem:[#allocation2 + $0x2] sm:$0xff] }
  0x6c   : > { %8666 = vmatmul.mubr.f32.gmra.mxu1 %v10494_v55  ;;  %8588 = vmatprep.mubr.f32.mxu0 %v10496_v56 }
  0x6d   : > { %8668 = vmatprep.mubr.f32.mxu1 %v10498_v58  ;;  %8716 = vmatprep.subr.mxu0 %v7414_v23 }
  0x6e   : > { %8792 = vmatprep.subr.mxu1 %v7432_v24  ;;  %8717 = vmatpush3.msra.mxu0 %v7414_v23  ;;  %v10620_v23 = vld [vmem:[#allocation2 + $0x1a] sm:$0xff] }
  0x6f   : > { %8589 = vmatmul.mubr.f32.gmra.mxu0 %v10510_v61  ;;  %8793 = vmatpush3.msra.mxu1 %v7432_v24  ;;  %v7460_v24 = vld [vmem:[%s13290_s1 + $0x270] sm:$0xff] }
  0x70   : > { %8669 = vmatmul.mubr.f32.gmra.mxu1 %v10512_v0  ;;  %8591 = vmatprep.mubr.f32.mxu0 %v10514_v2 }
  0x71   : > { %8671 = vmatprep.mubr.f32.mxu1 %v10516_v3  ;;  %8794 = vmatprep.subr.mxu1 %v7431_v59 }
  0x72   : > { %8795 = vmatpush3.msra.mxu1 %v7431_v59  ;;  %v7459_v59 = vld [vmem:[%s13290_s1 + $0x268] sm:$0xff] }
  0x73   : > { %8592 = vmatmul.mubr.f32.gmra.mxu0 %v10532_v13 }
  0x74   : > { %8672 = vmatmul.mubr.f32.gmra.mxu1 %v10534_v18  ;;  %8594 = vmatprep.mubr.f32.mxu0 %v10536_v19 }
  0x75   : > { %8674 = vmatprep.mubr.f32.mxu1 %v10538_v20 }
  0x77   : > { %8595 = vmatmul.mubr.f32.gmra.mxu0 %v10550_v27 }
  0x78   : > { %8675 = vmatmul.mubr.f32.gmra.mxu1 %v10552_v28  ;;  %8597 = vmatprep.mubr.f32.mxu0 %v10554_v33 }
  0x79   : > { %8677 = vmatprep.mubr.f32.mxu1 %v10556_v34 }
  0x7b   : > { %8598 = vmatmul.mubr.f32.gmra.mxu0 %v10568_v45 }
  0x7c   : > { %8678 = vmatmul.mubr.f32.gmra.mxu1 %v10570_v46  ;;  %8600 = vmatprep.mubr.f32.mxu0 %v10572_v51 }
  0x7d   : > { %8680 = vmatprep.mubr.f32.mxu1 %v10574_v52  ;;  %v1129_v52 = vld [vmem:[#allocation2 + $0xa] sm:$0xff] }
  0x7f   : > { %8601 = vmatmul.mubr.f32.gmra.mxu0 %v10586_v5 }
  0x80   : > { %8681 = vmatmul.mubr.f32.gmra.mxu1 %v10588_v6  ;;  %8603 = vmatprep.mubr.f32.mxu0 %v10590_v11  ;;  %v7461_v6 = vld [vmem:[%s13290_s1 + $0x278] sm:$0xff] }
  0x81   : > { %8683 = vmatprep.mubr.f32.mxu1 %v10592_v12  ;;  %v7430_v12 = vld [vmem:[%s13290_s1 + $0x180] sm:$0xff]  ;;  %8846 = vmatprep.subr.mxu0 %v7461_v6 }
  0x82   : > { %8796 = vmatprep.subr.mxu1 %v7430_v12 }
  0x83   : > { %8604 = vmatmul.mubr.f32.gmra.mxu0 %v10604_v39  ;;  %8797 = vmatpush3.msra.mxu1 %v7430_v12  ;;  %v7457_v12 = vld [vmem:[%s13290_s1 + $0x258] sm:$0xff] }
  0x84   : > { %8684 = vmatmul.mubr.f32.gmra.mxu1 %v10606_v40  ;;  %8718 = vmatprep.mubr.f32.mxu0 %v1128_v60  ;;  %v10626_v40 = vld [vmem:[#allocation2 + $0x22] sm:$0xff] }
  0x85   : > { %8798 = vmatprep.mubr.f32.mxu1 %v10313_v54  ;;  %v10632_v54 = vld [vmem:[#allocation2 + $0x32] sm:$0xff]  ;;  %v10661_v60 = vld [vmem:[#allocation2 + $0x62] sm:$0xff] }
  0x87   : > { %8719 = vmatmul.mubr.f32.vlgmr.msra.gmra.mxu0 %v1129_v52  ;;  %v7477_v52 = vld [vmem:[%s13290_s1 + $0x2f8] sm:$0xff] }
  0x88   : > { %8847 = vmatpush3.msra.mxu0 %v7461_v6  ;;  %8799 = vmatmul.mubr.f32.vlgmr.msra.gmra.mxu1 %v10332_v62  ;;  %v7458_v62 = vld [vmem:[%s13290_s1 + $0x260] sm:$0xff] }
  0x89   : > { %8721 = vmatprep.mubr.f32.mxu0 %v10620_v23  ;;  %8848 = vmatprep.subr.mxu0 %v7460_v24  ;;  %v10644_v6 = vld [vmem:[#allocation2 + $0x3a] sm:$0xff] }
  0x8a   : > { %8801 = vmatprep.mubr.f32.mxu1 %v10340_v1  ;;  %8849 = vmatpush3.msra.mxu0 %v7460_v24  ;;  %v10647_v1 = vld [vmem:[#allocation2 + $0x4a] sm:$0xff] }
  0x8b   : > { %8722 = vmatmul.mubr.f32.gmra.mxu0 %v10626_v40  ;;  %8850 = vmatprep.subr.mxu0 %v7459_v59  ;;  %v7456_v24 = vld [vmem:[%s13290_s1 + $0x250] sm:$0xff] }
  0x8c   : > { %8802 = vmatmul.mubr.f32.gmra.mxu1 %v10357_v7  ;;  %8724 = vmatprep.mubr.f32.mxu0 %v10632_v54  ;;  %v7476_v7 = vld [vmem:[%s13290_s1 + $0x2f0] sm:$0xff] }
  0x8d   : > { %8804 = vmatprep.mubr.f32.mxu1 %v10362_v9  ;;  %8851 = vmatpush3.msra.mxu0 %v7459_v59  ;;  %v10658_v9 = vld [vmem:[#allocation2 + $0x52] sm:$0xff]  ;;  %v10675_v59 = vld [vmem:[#allocation2 + $0x7a] sm:$0xff] }
  0x8e   : > { %8852 = vmatprep.subr.mxu0 %v7458_v62  ;;  %8926 = vmatprep.subr.mxu1 %v7477_v52 }
  0x8f   : > { %8725 = vmatmul.mubr.f32.gmra.mxu0 %v10644_v6  ;;  %8927 = vmatpush3.msra.mxu1 %v7477_v52  ;;  %v10689_v52 = vld [vmem:[#allocation2 + $0x92] sm:$0xff] }
  0x90   : > { %8805 = vmatmul.mubr.f32.gmra.mxu1 %v10378_v14  ;;  %8727 = vmatprep.mubr.f32.mxu0 %v10647_v1  ;;  %v7475_v14 = vld [vmem:[%s13290_s1 + $0x2e8] sm:$0xff] }
  0x91   : > { %8807 = vmatprep.mubr.f32.mxu1 %v10382_v16  ;;  %8853 = vmatpush3.msra.mxu0 %v7458_v62  ;;  %v10672_v16 = vld [vmem:[#allocation2 + $0x6a] sm:$0xff] }
  0x92   : > { %8854 = vmatprep.subr.mxu0 %v7457_v12  ;;  %8928 = vmatprep.subr.mxu1 %v7476_v7  ;;  %v7455_v62 = vld [vmem:[%s13290_s1 + $0x248] sm:$0xff] }
  0x93   : > { %8728 = vmatmul.mubr.f32.gmra.mxu0 %v10658_v9  ;;  %8929 = vmatpush3.msra.mxu1 %v7476_v7  ;;  %v10703_v7 = vld [vmem:[#allocation2 + $0xaa] sm:$0xff] }
  0x94   : > { %8808 = vmatmul.mubr.f32.gmra.mxu1 %v10396_v21  ;;  %8730 = vmatprep.mubr.f32.mxu0 %v10661_v60  ;;  %v7474_v21 = vld [vmem:[%s13290_s1 + $0x2e0] sm:$0xff] }
  0x95   : > { %8810 = vmatprep.mubr.f32.mxu1 %v10404_v25  ;;  %8855 = vmatpush3.msra.mxu0 %v7457_v12  ;;  %v10686_v25 = vld [vmem:[#allocation2 + $0x82] sm:$0xff] }
  0x96   : > { %8856 = vmatprep.subr.mxu0 %v7456_v24  ;;  %8930 = vmatprep.subr.mxu1 %v7475_v14  ;;  %v7454_v12 = vld [vmem:[%s13290_s1 + $0x240] sm:$0xff] }
  0x97   : > { %8731 = vmatmul.mubr.f32.gmra.mxu0 %v10672_v16  ;;  %8931 = vmatpush3.msra.mxu1 %v7475_v14  ;;  %v10717_v14 = vld [vmem:[#allocation2 + $0xc2] sm:$0xff] }
  0x98   : > { %8811 = vmatmul.mubr.f32.gmra.mxu1 %v10420_v29  ;;  %8733 = vmatprep.mubr.f32.mxu0 %v10675_v59  ;;  %v7473_v29 = vld [vmem:[%s13290_s1 + $0x2d8] sm:$0xff] }
  0x99   : > { %8813 = vmatprep.mubr.f32.mxu1 %v10424_v31  ;;  %8857 = vmatpush3.msra.mxu0 %v7456_v24  ;;  %v10700_v31 = vld [vmem:[#allocation2 + $0x9a] sm:$0xff] }
  0x9a   : > { %8858 = vmatprep.subr.mxu0 %v7455_v62  ;;  %8932 = vmatprep.subr.mxu1 %v7474_v21  ;;  %v7453_v24 = vld [vmem:[%s13290_s1 + $0x238] sm:$0xff] }
  0x9b   : > { %8734 = vmatmul.mubr.f32.gmra.mxu0 %v10686_v25  ;;  %8933 = vmatpush3.msra.mxu1 %v7474_v21  ;;  %v10731_v21 = vld [vmem:[#allocation2 + $0xda] sm:$0xff] }
  0x9c   : > { %8814 = vmatmul.mubr.f32.gmra.mxu1 %v10438_v35  ;;  %8736 = vmatprep.mubr.f32.mxu0 %v10689_v52  ;;  %v7472_v35 = vld [vmem:[%s13290_s1 + $0x2d0] sm:$0xff] }
  0x9d   : > { %8816 = vmatprep.mubr.f32.mxu1 %v10442_v37  ;;  %8859 = vmatpush3.msra.mxu0 %v7455_v62  ;;  %v10714_v37 = vld [vmem:[#allocation2 + $0xb2] sm:$0xff] }
  0x9e   : > { %8860 = vmatprep.subr.mxu0 %v7454_v12  ;;  %8934 = vmatprep.subr.mxu1 %v7473_v29  ;;  %v7452_v62 = vld [vmem:[%s13290_s1 + $0x230] sm:$0xff] }
  0x9f   : > { %8737 = vmatmul.mubr.f32.gmra.mxu0 %v10700_v31  ;;  %8935 = vmatpush3.msra.mxu1 %v7473_v29  ;;  %v10745_v29 = vld [vmem:[#allocation2 + $0xf2] sm:$0xff] }
  0xa0   : > { %8817 = vmatmul.mubr.f32.gmra.mxu1 %v10456_v41  ;;  %8739 = vmatprep.mubr.f32.mxu0 %v10703_v7  ;;  %v7471_v41 = vld [vmem:[%s13290_s1 + $0x2c8] sm:$0xff] }
  0xa1   : > { %8819 = vmatprep.mubr.f32.mxu1 %v10460_v43  ;;  %8861 = vmatpush3.msra.mxu0 %v7454_v12  ;;  %v10728_v43 = vld [vmem:[#allocation2 + $0xca] sm:$0xff] }
  0xa2   : > { %8862 = vmatprep.subr.mxu0 %v7453_v24  ;;  %8936 = vmatprep.subr.mxu1 %v7472_v35  ;;  %v7451_v12 = vld [vmem:[%s13290_s1 + $0x228] sm:$0xff] }
  0xa3   : > { %8740 = vmatmul.mubr.f32.gmra.mxu0 %v10714_v37  ;;  %8937 = vmatpush3.msra.mxu1 %v7472_v35  ;;  %v10759_v35 = vld [vmem:[#allocation2 + $0x10a] sm:$0xff] }
  0xa4   : > { %8820 = vmatmul.mubr.f32.gmra.mxu1 %v10474_v47  ;;  %8742 = vmatprep.mubr.f32.mxu0 %v10717_v14  ;;  %v7470_v47 = vld [vmem:[%s13290_s1 + $0x2c0] sm:$0xff] }
  0xa5   : > { %8822 = vmatprep.mubr.f32.mxu1 %v10478_v49  ;;  %8863 = vmatpush3.msra.mxu0 %v7453_v24  ;;  %v10742_v49 = vld [vmem:[#allocation2 + $0xe2] sm:$0xff] }
  0xa6   : > { %8864 = vmatprep.subr.mxu0 %v7452_v62  ;;  %8938 = vmatprep.subr.mxu1 %v7471_v41  ;;  %v7450_v24 = vld [vmem:[%s13290_s1 + $0x220] sm:$0xff] }
  0xa7   : > { %8743 = vmatmul.mubr.f32.gmra.mxu0 %v10728_v43  ;;  %8939 = vmatpush3.msra.mxu1 %v7471_v41  ;;  %v10773_v41 = vld [vmem:[#allocation2 + $0x122] sm:$0xff] }
  0xa8   : > { %8823 = vmatmul.mubr.f32.gmra.mxu1 %v10492_v53  ;;  %8745 = vmatprep.mubr.f32.mxu0 %v10731_v21  ;;  %v7469_v53 = vld [vmem:[%s13290_s1 + $0x2b8] sm:$0xff] }
  0xa9   : > { %8825 = vmatprep.mubr.f32.mxu1 %v10496_v56  ;;  %8865 = vmatpush3.msra.mxu0 %v7452_v62  ;;  %v10756_v56 = vld [vmem:[#allocation2 + $0xfa] sm:$0xff] }
  0xaa   : > { %8866 = vmatprep.subr.mxu0 %v7451_v12  ;;  %8940 = vmatprep.subr.mxu1 %v7470_v47  ;;  %v7449_v62 = vld [vmem:[%s13290_s1 + $0x218] sm:$0xff] }
  0xab   : > { %8746 = vmatmul.mubr.f32.gmra.mxu0 %v10742_v49  ;;  %8941 = vmatpush3.msra.mxu1 %v7470_v47  ;;  %v10787_v47 = vld [vmem:[#allocation2 + $0x13a] sm:$0xff] }
  0xac   : > { %8826 = vmatmul.mubr.f32.gmra.mxu1 %v10510_v61  ;;  %8748 = vmatprep.mubr.f32.mxu0 %v10745_v29  ;;  %v7468_v61 = vld [vmem:[%s13290_s1 + $0x2b0] sm:$0xff] }
  0xad   : > { %8828 = vmatprep.mubr.f32.mxu1 %v10514_v2  ;;  %8867 = vmatpush3.msra.mxu0 %v7451_v12  ;;  %v10770_v2 = vld [vmem:[#allocation2 + $0x112] sm:$0xff] }
  0xae   : > { %8868 = vmatprep.subr.mxu0 %v7450_v24  ;;  %8942 = vmatprep.subr.mxu1 %v7469_v53  ;;  %v7448_v12 = vld [vmem:[%s13290_s1 + $0x210] sm:$0xff] }
  0xaf   : > { %8749 = vmatmul.mubr.f32.gmra.mxu0 %v10756_v56  ;;  %8943 = vmatpush3.msra.mxu1 %v7469_v53  ;;  %v10801_v53 = vld [vmem:[#allocation2 + $0x152] sm:$0xff] }
  0xb0   : > { %8829 = vmatmul.mubr.f32.gmra.mxu1 %v10532_v13  ;;  %8751 = vmatprep.mubr.f32.mxu0 %v10759_v35  ;;  %v7467_v13 = vld [vmem:[%s13290_s1 + $0x2a8] sm:$0xff] }
  0xb1   : > { %8831 = vmatprep.mubr.f32.mxu1 %v10536_v19  ;;  %8869 = vmatpush3.msra.mxu0 %v7450_v24  ;;  %v10784_v19 = vld [vmem:[#allocation2 + $0x12a] sm:$0xff] }
  0xb2   : > { %8870 = vmatprep.subr.mxu0 %v7449_v62  ;;  %8944 = vmatprep.subr.mxu1 %v7468_v61  ;;  %v7447_v24 = vld [vmem:[%s13290_s1 + $0x208] sm:$0xff] }
  0xb3   : > { %8752 = vmatmul.mubr.f32.gmra.mxu0 %v10770_v2  ;;  %8945 = vmatpush3.msra.mxu1 %v7468_v61  ;;  %v10815_v61 = vld [vmem:[#allocation2 + $0x16a] sm:$0xff] }
  0xb4   : > { %8832 = vmatmul.mubr.f32.gmra.mxu1 %v10550_v27  ;;  %8754 = vmatprep.mubr.f32.mxu0 %v10773_v41  ;;  %v7466_v27 = vld [vmem:[%s13290_s1 + $0x2a0] sm:$0xff] }
  0xb5   : > { %8834 = vmatprep.mubr.f32.mxu1 %v10554_v33  ;;  %8871 = vmatpush3.msra.mxu0 %v7449_v62  ;;  %v10798_v33 = vld [vmem:[#allocation2 + $0x142] sm:$0xff]  ;;  %v7465_v62 = vld [vmem:[%s13290_s1 + $0x298] sm:$0xff] }
  0xb6   : > { %8872 = vmatprep.subr.mxu0 %v7448_v12  ;;  %8946 = vmatprep.subr.mxu1 %v7467_v13 }
  0xb7   : > { %8755 = vmatmul.mubr.f32.gmra.mxu0 %v10784_v19  ;;  %8947 = vmatpush3.msra.mxu1 %v7467_v13  ;;  %v10820_v13 = vld [vmem:[#allocation2 + $0x180] sm:$0xff] }
  0xb8   : > { %8835 = vmatmul.mubr.f32.gmra.mxu1 %v10568_v45  ;;  %8757 = vmatprep.mubr.f32.mxu0 %v10787_v47  ;;  %v7446_v45 = vld [vmem:[%s13290_s1 + $0x200] sm:$0xff] }
  0xb9   : > { %8837 = vmatprep.mubr.f32.mxu1 %v10572_v51  ;;  %8873 = vmatpush3.msra.mxu0 %v7448_v12  ;;  %v10812_v51 = vld [vmem:[#allocation2 + $0x15a] sm:$0xff]  ;;  %v7464_v12 = vld [vmem:[%s13290_s1 + $0x290] sm:$0xff] }
  0xba   : > { %8874 = vmatprep.subr.mxu0 %v7447_v24  ;;  %8948 = vmatprep.subr.mxu1 %v7466_v27 }
  0xbb   : > { %8758 = vmatmul.mubr.f32.gmra.mxu0 %v10798_v33  ;;  %8949 = vmatpush3.msra.mxu1 %v7466_v27  ;;  %v7493_v27 = vld [vmem:[%s13290_s1 + $0x378] sm:$0xff] }
  0xbc   : > { %8838 = vmatmul.mubr.f32.gmra.mxu1 %v10586_v5  ;;  %8760 = vmatprep.mubr.f32.mxu0 %v10801_v53  ;;  %v10825_v5 = vld [vmem:[#allocation2 + $0x172] sm:$0xff] }
  0xbd   : > { %8840 = vmatprep.mubr.f32.mxu1 %v10590_v11  ;;  %8875 = vmatpush3.msra.mxu0 %v7447_v24  ;;  %v7463_v11 = vld [vmem:[%s13290_s1 + $0x288] sm:$0xff] }
  0xbe   : > { %8950 = vmatprep.subr.mxu1 %v7465_v62  ;;  %8876 = vmatprep.subr.mxu0 %v7446_v45  ;;  %v10831_v24 = vld [vmem:[#allocation2 + $0x188] sm:$0xff] }
  0xbf   : > { %8761 = vmatmul.mubr.f32.gmra.mxu0 %v10812_v51  ;;  %8951 = vmatpush3.msra.mxu1 %v7465_v62  ;;  %v7492_v62 = vld [vmem:[%s13290_s1 + $0x370] sm:$0xff] }
  0xc0   : > { %8841 = vmatmul.mubr.f32.gmra.mxu1 %v10604_v39  ;;  %8763 = vmatprep.mubr.f32.mxu0 %v10815_v61  ;;  %v7462_v39 = vld [vmem:[%s13290_s1 + $0x280] sm:$0xff] }
  0xc1   : > { %8952 = vmatprep.subr.mxu1 %v7464_v12  ;;  %8843 = vmatprep.mubr.f32.mxu1 %v10820_v13 }
  0xc2   : > { %8877 = vmatpush3.msra.mxu0 %v7446_v45  ;;  %8953 = vmatpush3.msra.mxu1 %v7464_v12  ;;  %v7491_v45 = vld [vmem:[%s13290_s1 + $0x368] sm:$0xff] }
  0xc3   : > { %8764 = vmatmul.mubr.f32.gmra.mxu0 %v10825_v5  ;;  %8954 = vmatprep.subr.mxu1 %v7463_v11  ;;  %v2983_v12 = vld [vmem:[#allocation2 + $0x61] sm:$0xff] }
  0xc4   : > { %8844 = vmatmul.mubr.f32.gmra.mxu1 %v10831_v24  ;;  %8878 = vmatprep.mubr.f32.mxu0 %v10318_v57  ;;  %v7490_v57 = vld [vmem:[%s13290_s1 + $0x360] sm:$0xff] }
  0xc5   : > { %8955 = vmatpush3.msra.mxu1 %v7463_v11  ;;  %9006 = vmatprep.subr.mxu0 %v7493_v27 }
  0xc6   : > { %8956 = vmatprep.subr.mxu1 %v7462_v39  ;;  %8958 = vmatprep.mubr.f32.mxu1 %v10620_v23  ;;  %v7478_v23 = vld [vmem:[%s13290_s1 + $0x300] sm:$0xff] }
  0xc7   : > { %8879 = vmatmul.mubr.f32.vlgmr.msra.gmra.mxu0 %v10334_v63  ;;  %8957 = vmatpush3.msra.mxu1 %v7462_v39  ;;  %v7509_v63 = vld [vmem:[%s13290_s1 + $0x3f8] sm:$0xff] }
  0xc8   : > { %9007 = vmatpush3.msra.mxu0 %v7493_v27  ;;  %8959 = vmatmul.mubr.f32.vlgmr.msra.gmra.mxu1 %v10626_v40  ;;  %v13308_v40 = vld [vmem:[#allocation5_spill] sm:$0xff] }
  0xc9   : > { %8881 = vmatprep.mubr.f32.mxu0 %v10347_v4  ;;  %9008 = vmatprep.subr.mxu0 %v7492_v62  ;;  %v7489_v4 = vld [vmem:[%s13290_s1 + $0x358] sm:$0xff]  ;;  %v7522_v27 = vld [vmem:[%s13290_s1 + $0x460] sm:$0xff] }
  0xca   : > { %8961 = vmatprep.mubr.f32.mxu1 %v10632_v54  ;;  %9009 = vmatpush3.msra.mxu0 %v7492_v62  ;;  %v13310_v54 = vld [vmem:[#allocation7_spill] sm:$0xff]  ;;  %v2614_v62 = vld [vmem:[#allocation2 + $0x68] sm:$0xff] }
  0xcb   : > { %8882 = vmatmul.mubr.f32.gmra.mxu0 %v10359_v8  ;;  %9010 = vmatprep.subr.mxu0 %v7491_v45  ;;  %v7508_v8 = vld [vmem:[%s13290_s1 + $0x3f0] sm:$0xff] }
  0xcc   : > { %8962 = vmatmul.mubr.f32.gmra.mxu1 %v10644_v6  ;;  %8884 = vmatprep.mubr.f32.mxu0 %v10364_v10  ;;  %v7488_v10 = vld [vmem:[%s13290_s1 + $0x350] sm:$0xff]  ;;  %v10983_v6 = vld [vmem:[#allocation2 + $0x181] sm:$0xff] }
  0xcd   : > { %8964 = vmatprep.mubr.f32.mxu1 %v10647_v1  ;;  %9011 = vmatpush3.msra.mxu0 %v7491_v45  ;;  %v7496_v1 = vld [vmem:[%s13290_s1 + $0x390] sm:$0xff] }
  0xce   : > { %9012 = vmatprep.subr.mxu0 %v7490_v57  ;;  %9086 = vmatprep.subr.mxu1 %v7509_v63 }
  0xcf   : > { %8885 = vmatmul.mubr.f32.gmra.mxu0 %v10380_v15  ;;  %9087 = vmatpush3.msra.mxu1 %v7509_v63  ;;  %v7507_v15 = vld [vmem:[%s13290_s1 + $0x3e8] sm:$0xff] }
  0xd0   : > { %8965 = vmatmul.mubr.f32.gmra.mxu1 %v10658_v9  ;;  %8887 = vmatprep.mubr.f32.mxu0 %v10384_v17  ;;  %v7487_v17 = vld [vmem:[%s13290_s1 + $0x348] sm:$0xff] }
  0xd1   : > { %8967 = vmatprep.mubr.f32.mxu1 %v10661_v60  ;;  %9013 = vmatpush3.msra.mxu0 %v7490_v57  ;;  %v10988_v9 = vld [vmem:[#allocation2 + $0x182] sm:$0xff]  ;;  %v13311_v60 = vld [vmem:[#allocation8_spill] sm:$0xff] }
  0xd2   : > { %9014 = vmatprep.subr.mxu0 %v7489_v4  ;;  %9088 = vmatprep.subr.mxu1 %v7508_v8  ;;  %v2984_v63 = vld [vmem:[#allocation2 + $0x69] sm:$0xff] }
  0xd3   : > { %8888 = vmatmul.mubr.f32.gmra.mxu0 %v10400_v22  ;;  %9089 = vmatpush3.msra.mxu1 %v7508_v8  ;;  %v7506_v22 = vld [vmem:[%s13290_s1 + $0x3e0] sm:$0xff] }
  0xd4   : > { %8968 = vmatmul.mubr.f32.gmra.mxu1 %v10672_v16  ;;  %8890 = vmatprep.mubr.f32.mxu0 %v10406_v26  ;;  %v7486_v26 = vld [vmem:[%s13290_s1 + $0x340] sm:$0xff]  ;;  %v10993_v16 = vld [vmem:[#allocation2 + $0x189] sm:$0xff] }
  0xd5   : > { %8970 = vmatprep.mubr.f32.mxu1 %v10675_v59  ;;  %9015 = vmatpush3.msra.mxu0 %v7489_v4  ;;  %v7495_v59 = vld [vmem:[%s13290_s1 + $0x388] sm:$0xff]  ;;  %v2615_v4 = vld [vmem:[#allocation2 + $0x78] sm:$0xff] }
  0xd6   : > { %9016 = vmatprep.subr.mxu0 %v7488_v10  ;;  %9090 = vmatprep.subr.mxu1 %v7507_v15 }
  0xd7   : > { %8891 = vmatmul.mubr.f32.gmra.mxu0 %v10422_v30  ;;  %9091 = vmatpush3.msra.mxu1 %v7507_v15  ;;  %v7505_v30 = vld [vmem:[%s13290_s1 + $0x3d8] sm:$0xff] }
  0xd8   : > { %8971 = vmatmul.mubr.f32.gmra.mxu1 %v10686_v25  ;;  %8893 = vmatprep.mubr.f32.mxu0 %v10426_v32  ;;  %v7485_v32 = vld [vmem:[%s13290_s1 + $0x338] sm:$0xff]  ;;  %v10999_v25 = vld [vmem:[#allocation2 + $0x18a] sm:$0xff] }
  0xd9   : > { %8973 = vmatprep.mubr.f32.mxu1 %v10689_v52  ;;  %9017 = vmatpush3.msra.mxu0 %v7488_v10  ;;  %v2609_v52 = vld [vmem:[#allocation2 + $0x30] sm:$0xff]  ;;  %v2985_v10 = vld [vmem:[#allocation2 + $0x79] sm:$0xff] }
  0xda   : > { %9018 = vmatprep.subr.mxu0 %v7487_v17  ;;  %9092 = vmatprep.subr.mxu1 %v7506_v22 }
  0xdb   : > { %8894 = vmatmul.mubr.f32.gmra.mxu0 %v10440_v36  ;;  %9093 = vmatpush3.msra.mxu1 %v7506_v22  ;;  %v7504_v36 = vld [vmem:[%s13290_s1 + $0x3d0] sm:$0xff]  ;;  %v7521_v22 = vld [vmem:[%s13290_s1 + $0x458] sm:$0xff] }
  0xdc   : > { %8974 = vmatmul.mubr.f32.gmra.mxu1 %v10700_v31  ;;  %8896 = vmatprep.mubr.f32.mxu0 %v10444_v38  ;;  %v7484_v38 = vld [vmem:[%s13290_s1 + $0x330] sm:$0xff]  ;;  %v7525_v31 = vld [vmem:[%s13290_s1 + $0x478] sm:$0xff] }
  0xdd   : > { %8976 = vmatprep.mubr.f32.mxu1 %v10703_v7  ;;  %9019 = vmatpush3.msra.mxu0 %v7487_v17  ;;  %v7494_v7 = vld [vmem:[%s13290_s1 + $0x380] sm:$0xff] }
  0xde   : > { %9020 = vmatprep.subr.mxu0 %v7486_v26  ;;  %9094 = vmatprep.subr.mxu1 %v7505_v30 }
  0xdf   : > { %8897 = vmatmul.mubr.f32.gmra.mxu0 %v10458_v42  ;;  %9095 = vmatpush3.msra.mxu1 %v7505_v30  ;;  %v7503_v42 = vld [vmem:[%s13290_s1 + $0x3c8] sm:$0xff]  ;;  %v2616_v30 = vld [vmem:[#allocation2 + $0x80] sm:$0xff] }
  0xe0   : > { %8977 = vmatmul.mubr.f32.gmra.mxu1 %v10714_v37  ;;  %8899 = vmatprep.mubr.f32.mxu0 %v10462_v44  ;;  %v7483_v44 = vld [vmem:[%s13290_s1 + $0x328] sm:$0xff]  ;;  %v2979_v37 = vld [vmem:[#allocation2 + $0x31] sm:$0xff] }
  0xe1   : > { %8979 = vmatprep.mubr.f32.mxu1 %v10717_v14  ;;  %9021 = vmatpush3.msra.mxu0 %v7486_v26  ;;  %v2610_v14 = vld [vmem:[#allocation2 + $0x38] sm:$0xff] }
  0xe2   : > { %9022 = vmatprep.subr.mxu0 %v7485_v32  ;;  %9096 = vmatprep.subr.mxu1 %v7504_v36 }
  0xe3   : > { %8900 = vmatmul.mubr.f32.gmra.mxu0 %v10476_v48  ;;  %9097 = vmatpush3.msra.mxu1 %v7504_v36  ;;  %v7502_v48 = vld [vmem:[%s13290_s1 + $0x3c0] sm:$0xff] }
  0xe4   : > { %8980 = vmatmul.mubr.f32.gmra.mxu1 %v10728_v43  ;;  %8902 = vmatprep.mubr.f32.mxu0 %v10480_v50  ;;  %v7482_v50 = vld [vmem:[%s13290_s1 + $0x320] sm:$0xff] }
  0xe5   : > { %8982 = vmatprep.mubr.f32.mxu1 %v10731_v21  ;;  %9023 = vmatpush3.msra.mxu0 %v7485_v32  ;;  %v2980_v43 = vld [vmem:[#allocation2 + $0x39] sm:$0xff]  ;;  %v2611_v21 = vld [vmem:[#allocation2 + $0x48] sm:$0xff] }
  0xe6   : > { %9024 = vmatprep.subr.mxu0 %v7484_v38  ;;  %9098 = vmatprep.subr.mxu1 %v7503_v42 }
  0xe7   : > { %8903 = vmatmul.mubr.f32.gmra.mxu0 %v10494_v55  ;;  %9099 = vmatpush3.msra.mxu1 %v7503_v42  ;;  %v7501_v55 = vld [vmem:[%s13290_s1 + $0x3b8] sm:$0xff]  ;;  %v2617_v42 = vld [vmem:[#allocation2 + $0x90] sm:$0xff] }
  0xe8   : > { %8983 = vmatmul.mubr.f32.gmra.mxu1 %v10742_v49  ;;  %8905 = vmatprep.mubr.f32.mxu0 %v10498_v58  ;;  %v7481_v58 = vld [vmem:[%s13290_s1 + $0x318] sm:$0xff]  ;;  %v7524_v49 = vld [vmem:[%s13290_s1 + $0x470] sm:$0xff] }
  0xe9   : > { %8985 = vmatprep.mubr.f32.mxu1 %v10745_v29  ;;  %9025 = vmatpush3.msra.mxu0 %v7484_v38  ;;  %v2986_v38 = vld [vmem:[#allocation2 + $0x81] sm:$0xff] }
  0xea   : > { %9026 = vmatprep.subr.mxu0 %v7483_v44  ;;  %9100 = vmatprep.subr.mxu1 %v7502_v48 }
  0xeb   : > { %8906 = vmatmul.mubr.f32.gmra.mxu0 %v10512_v0  ;;  %9101 = vmatpush3.msra.mxu1 %v7502_v48  ;;  %v7500_v0 = vld [vmem:[%s13290_s1 + $0x3b0] sm:$0xff] }
  0xec   : > { %8986 = vmatmul.mubr.f32.gmra.mxu1 %v10756_v56  ;;  %8908 = vmatprep.mubr.f32.mxu0 %v10516_v3  ;;  %v7480_v3 = vld [vmem:[%s13290_s1 + $0x310] sm:$0xff] }
  0xed   : > { %8988 = vmatprep.mubr.f32.mxu1 %v10759_v35  ;;  %9027 = vmatpush3.msra.mxu0 %v7483_v44  ;;  %v8560_v29 = vpop.f32.mrf.mxu0  ;;  %v8640_v56 = vpop.f32.mrf.mxu1  ;;  %v2981_v35 = vld [vmem:[#allocation2 + $0x49] sm:$0xff]  ;;  %v2987_v48 = vld [vmem:[#allocation2 + $0x91] sm:$0xff] }
  0xee   : > { %9028 = vmatprep.subr.mxu0 %v7482_v50  ;;  %9102 = vmatprep.subr.mxu1 %v7501_v55 }
  0xef   : > { %8909 = vmatmul.mubr.f32.gmra.mxu0 %v10534_v18  ;;  %9103 = vmatpush3.msra.mxu1 %v7501_v55  ;;  %v7499_v18 = vld [vmem:[%s13290_s1 + $0x3a8] sm:$0xff] }
  0xf0   : > { %8989 = vmatmul.mubr.f32.gmra.mxu1 %v10770_v2  ;;  %8911 = vmatprep.mubr.f32.mxu0 %v10538_v20  ;;  %v7479_v20 = vld [vmem:[%s13290_s1 + $0x308] sm:$0xff]  ;;  %v11012_v2 = vadd.f32 %v8640_v56, %v8560_v29  ;;  %v7518_v29 = vld [vmem:[%s13290_s1 + $0x440] sm:$0xff] }
  0xf1   : > { %8991 = vmatprep.mubr.f32.mxu1 %v10773_v41  ;;  %9029 = vmatpush3.msra.mxu0 %v7482_v50  ;;  %v2612_v41 = vld [vmem:[#allocation2 + $0x50] sm:$0xff] }
  0xf2   : > { %9030 = vmatprep.subr.mxu0 %v7481_v58  ;;  %9104 = vmatprep.subr.mxu1 %v7500_v0 }
  0xf3   : > { %8912 = vmatmul.mubr.f32.gmra.mxu0 %v10552_v28  ;;  %9105 = vmatpush3.msra.mxu1 %v7500_v0  ;;  %v7498_v28 = vld [vmem:[%s13290_s1 + $0x3a0] sm:$0xff] }
  0xf4   : > { %8992 = vmatmul.mubr.f32.gmra.mxu1 %v10784_v19  ;;  %8914 = vmatprep.mubr.f32.mxu0 %v10556_v34  ;;  %v13309_v34 = vld [vmem:[#allocation6_spill] sm:$0xff] }
  0xf5   : > { %8994 = vmatprep.mubr.f32.mxu1 %v10787_v47  ;;  %9031 = vmatpush3.msra.mxu0 %v7481_v58  ;;  %v7523_v19 = vld [vmem:[%s13290_s1 + $0x468] sm:$0xff]  ;;  %v567_v47 = vpop.f32.mrf.mxu0  ;;  %v7520_v58 = vld [vmem:[%s13290_s1 + $0x450] sm:$0xff] }
  0xf6   : > { %9032 = vmatprep.subr.mxu0 %v7480_v3  ;;  %9106 = vmatprep.subr.mxu1 %v7499_v18 }
  0xf7   : > { %8915 = vmatmul.mubr.f32.gmra.mxu0 %v10570_v46  ;;  %9107 = vmatpush3.msra.mxu1 %v7499_v18  ;;  %v7497_v46 = vld [vmem:[%s13290_s1 + $0x398] sm:$0xff] }
  0xf8   : > { %8995 = vmatmul.mubr.f32.gmra.mxu1 %v10798_v33  ;;  %8917 = vmatprep.mubr.f32.mxu0 %v13308_v40  ;;  %v873_v33 = vpop.f32.mrf.mxu1  ;;  %v2619_v40 = vld [vmem:[#allocation2 + $0xa8] sm:$0xff] }
  0xf9   : > { %8997 = vmatprep.mubr.f32.mxu1 %v10801_v53  ;;  %9033 = vmatpush3.msra.mxu0 %v7480_v3  ;;  %v2982_v53 = vld [vmem:[#allocation2 + $0x51] sm:$0xff] }
  0xfa   : > { %9034 = vmatprep.subr.mxu0 %v7479_v20  ;;  %9108 = vmatprep.subr.mxu1 %v7498_v28  ;;  %v2618_v3 = vld [vmem:[#allocation2 + $0x98] sm:$0xff] }
  0xfb   : > { %8918 = vmatmul.mubr.f32.gmra.mxu0 %v13309_v34  ;;  %9109 = vmatpush3.msra.mxu1 %v7498_v28  ;;  %v2988_v28 = vld [vmem:[#allocation2 + $0x99] sm:$0xff] }
  0xfc   : > { %8998 = vmatmul.mubr.f32.gmra.mxu1 %v10812_v51  ;;  %8920 = vmatprep.mubr.f32.mxu0 %v13310_v54  ;;  %v2613_v51 = vld [vmem:[#allocation2 + $0x60] sm:$0xff] }
  0xfd   : > { %9000 = vmatprep.mubr.f32.mxu1 %v10815_v61  ;;  %9035 = vmatpush3.msra.mxu0 %v7479_v20  ;;  %v11017_v61 = vadd.f32 %v873_v33, %v567_v47  ;;  %v2992_v47 = vld [vmem:[#allocation2 + $0xc9] sm:$0xff]  ;;  %v2623_v33 = vld [vmem:[#allocation2 + $0xd8] sm:$0xff] }
  0xfe   : > { %9110 = vmatprep.subr.mxu1 %v7497_v46  ;;  %9036 = vmatprep.subr.mxu0 %v7478_v23 }
  0xff   : > { %8921 = vmatmul.mubr.f32.gmra.mxu0 %v13311_v60  ;;  %9111 = vmatpush3.msra.mxu1 %v7497_v46  ;;  %v2989_v46 = vld [vmem:[#allocation2 + $0xa9] sm:$0xff] }
 0x100   : > { %9001 = vmatmul.mubr.f32.gmra.mxu1 %v10825_v5  ;;  %8923 = vmatprep.mubr.f32.mxu0 %v10983_v6 }
 0x101   : > { %9112 = vmatprep.subr.mxu1 %v7496_v1  ;;  %9003 = vmatprep.mubr.f32.mxu1 %v10988_v9 }
 0x102   : > { %9037 = vmatpush3.msra.mxu0 %v7478_v23  ;;  %9113 = vmatpush3.msra.mxu1 %v7496_v1  ;;  %v7519_v1 = vld [vmem:[%s13290_s1 + $0x448] sm:$0xff] }
 0x103   : > { %8924 = vmatmul.mubr.f32.gmra.mxu0 %v10993_v16  ;;  %9114 = vmatprep.subr.mxu1 %v7495_v59 }
 0x104   : > { %9004 = vmatmul.mubr.f32.gmra.mxu1 %v10999_v25  ;;  %9038 = vmatprep.mubr.f32.mxu0 %v2609_v52 }
 0x105   : > { %9115 = vmatpush3.msra.mxu1 %v7495_v59  ;;  %9166 = vmatprep.subr.mxu0 %v7525_v31  ;;  %v2620_v59 = vld [vmem:[#allocation2 + $0xb0] sm:$0xff] }
 0x106   : > { %9116 = vmatprep.subr.mxu1 %v7494_v7  ;;  %9118 = vmatprep.mubr.f32.mxu1 %v2979_v37  ;;  %v2621_v37 = vld [vmem:[#allocation2 + $0xc0] sm:$0xff] }
 0x107   : > { %9039 = vmatmul.mubr.f32.vlgmr.msra.gmra.mxu0 %v2610_v14  ;;  %9117 = vmatpush3.msra.mxu1 %v7494_v7  ;;  %v2990_v7 = vld [vmem:[#allocation2 + $0xb1] sm:$0xff] }
 0x108   : > { %9167 = vmatpush3.msra.mxu0 %v7525_v31  ;;  %9119 = vmatmul.mubr.f32.vlgmr.msra.gmra.mxu1 %v2980_v43  ;;  %v2991_v43 = vld [vmem:[#allocation2 + $0xc1] sm:$0xff] }
 0x109   : > { %9041 = vmatprep.mubr.f32.mxu0 %v2611_v21  ;;  %9168 = vmatprep.subr.mxu0 %v7524_v49 }
 0x10a   : > { %9121 = vmatprep.mubr.f32.mxu1 %v2981_v35  ;;  %9169 = vmatpush3.msra.mxu0 %v7524_v49  ;;  %v2622_v35 = vld [vmem:[#allocation2 + $0xc8] sm:$0xff] }
 0x10b   : > { %v8563_v5 = vpop.f32.mrf.mxu0  ;;  %9042 = vmatmul.mubr.f32.gmra.mxu0 %v2612_v41  ;;  %9170 = vmatprep.subr.mxu0 %v7523_v19 }
 0x10c   : > { %v8643_v11 = vpop.f32.mrf.mxu1  ;;  %9122 = vmatmul.mubr.f32.gmra.mxu1 %v2982_v53  ;;  %9044 = vmatprep.mubr.f32.mxu0 %v2613_v51  ;;  %v2993_v51 = vld [vmem:[#allocation2 + $0xd9] sm:$0xff] }
 0x10d   : > { %v11022_v39 = vadd.f32 %v8643_v11, %v8563_v5  ;;  %v577_v45 = vpop.f32.mrf.mxu0  ;;  %9124 = vmatprep.mubr.f32.mxu1 %v2983_v12  ;;  %9171 = vmatpush3.msra.mxu0 %v7523_v19  ;;  %v7517_v11 = vld [vmem:[%s13290_s1 + $0x438] sm:$0xff] }
 0x10e   : > { %v883_v57 = vpop.f32.mrf.mxu1  ;;  %9172 = vmatprep.subr.mxu0 %v7522_v27 }
 0x10f   : > { %v11024_v8 = vadd.f32 %v883_v57, %v577_v45  ;;  %v8566_v15 = vpop.f32.mrf.mxu0  ;;  %9045 = vmatmul.mubr.f32.gmra.mxu0 %v2614_v62  ;;  %v2624_v62 = vld [vmem:[#allocation2 + $0xe0] sm:$0xff] }
 0x110   : > { %v8646_v17 = vpop.f32.mrf.mxu1  ;;  %9125 = vmatmul.mubr.f32.gmra.mxu1 %v2984_v63  ;;  %9047 = vmatprep.mubr.f32.mxu0 %v2615_v4  ;;  %v2994_v63 = vld [vmem:[#allocation2 + $0xe1] sm:$0xff]  ;;  %v2625_v4 = vld [vmem:[#allocation2 + $0xf0] sm:$0xff] }
 0x111   : > { %v11029_v26 = vadd.f32 %v8646_v17, %v8566_v15  ;;  %v587_v32 = vpop.f32.mrf.mxu0  ;;  %9127 = vmatprep.mubr.f32.mxu1 %v2985_v10  ;;  %9173 = vmatpush3.msra.mxu0 %v7522_v27  ;;  %v2995_v15 = vld [vmem:[#allocation2 + $0xf1] sm:$0xff] }
 0x112   : > { %v893_v36 = vpop.f32.mrf.mxu1  ;;  %9174 = vmatprep.subr.mxu0 %v7521_v22 }
 0x113   : > { %v11031_v44 = vadd.f32 %v893_v36, %v587_v32  ;;  %v8569_v50 = vpop.f32.mrf.mxu0  ;;  %9048 = vmatmul.mubr.f32.gmra.mxu0 %v2616_v30  ;;  %v7516_v30 = vld [vmem:[%s13290_s1 + $0x430] sm:$0xff]  ;;  %v2626_v36 = vld [vmem:[#allocation2 + $0xf8] sm:$0xff] }
 0x114   : > { %v8649_v55 = vpop.f32.mrf.mxu1  ;;  %9128 = vmatmul.mubr.f32.gmra.mxu1 %v2986_v38  ;;  %9050 = vmatprep.mubr.f32.mxu0 %v2617_v42 }
 0x115   : > { %v11036_v0 = vadd.f32 %v8649_v55, %v8569_v50  ;;  %v597_v18 = vpop.f32.mrf.mxu0  ;;  %9130 = vmatprep.mubr.f32.mxu1 %v2987_v48  ;;  %9175 = vmatpush3.msra.mxu0 %v7521_v22  ;;  %v2996_v48 = vld [vmem:[#allocation2 + $0xf9] sm:$0xff]  ;;  %v2627_v50 = vld [vmem:[#allocation2 + $0x108] sm:$0xff] }
 0x116   : > { %v903_v20 = vpop.f32.mrf.mxu1  ;;  %9176 = vmatprep.subr.mxu0 %v7520_v58 }
 0x117   : > { %v11038_v34 = vadd.f32 %v903_v20, %v597_v18  ;;  %v8572_v23 = vpop.f32.mrf.mxu0  ;;  %9051 = vmatmul.mubr.f32.gmra.mxu0 %v2618_v3  ;;  %v7515_v20 = vld [vmem:[%s13290_s1 + $0x428] sm:$0xff] }
 0x118   : > { %v8652_v54 = vpop.f32.mrf.mxu1  ;;  %9131 = vmatmul.mubr.f32.gmra.mxu1 %v2988_v28  ;;  %9053 = vmatprep.mubr.f32.mxu0 %v2619_v40  ;;  %v2628_v40 = vld [vmem:[#allocation2 + $0x110] sm:$0xff] }
 0x119   : > { %v11043_v60 = vadd.f32 %v8652_v54, %v8572_v23  ;;  %v607_v52 = vpop.f32.mrf.mxu0  ;;  %9133 = vmatprep.mubr.f32.mxu1 %v2989_v46  ;;  %9177 = vmatpush3.msra.mxu0 %v7520_v58  ;;  %v2997_v58 = vld [vmem:[#allocation2 + $0x109] sm:$0xff]  ;;  %v2998_v54 = vld [vmem:[#allocation2 + $0x111] sm:$0xff] }
 0x11a   : > { %v913_v31 = vpop.f32.mrf.mxu1  ;;  %9178 = vmatprep.subr.mxu0 %v7519_v1 }
 0x11b   : > { %v11045_v14 = vadd.f32 %v913_v31, %v607_v52  ;;  %v8575_v21 = vpop.f32.mrf.mxu0  ;;  %9054 = vmatmul.mubr.f32.gmra.mxu0 %v2620_v59  ;;  %v2999_v59 = vld [vmem:[#allocation2 + $0x121] sm:$0xff] }
 0x11c   : > { %v8655_v49 = vpop.f32.mrf.mxu1  ;;  %9134 = vmatmul.mubr.f32.gmra.mxu1 %v2990_v7  ;;  %9056 = vmatprep.mubr.f32.mxu0 %v2621_v37  ;;  %v7514_v7 = vld [vmem:[%s13290_s1 + $0x420] sm:$0xff] }
 0x11d   : > { %v11050_v56 = vadd.f32 %v8655_v49, %v8575_v21  ;;  %v617_v41 = vpop.f32.mrf.mxu0  ;;  %9136 = vmatprep.mubr.f32.mxu1 %v2991_v43  ;;  %9179 = vmatpush3.msra.mxu0 %v7519_v1  ;;  %v2629_v1 = vld [vmem:[#allocation2 + $0x120] sm:$0xff]  ;;  %v2630_v43 = vld [vmem:[#allocation2 + $0x128] sm:$0xff] }
 0x11e   : > { %v923_v19 = vpop.f32.mrf.mxu1  ;;  %9180 = vmatprep.subr.mxu0 %v7518_v29 }
 0x11f   : > { %v11052_v53 = vadd.f32 %v923_v19, %v617_v41  ;;  %v8578_v12 = vpop.f32.mrf.mxu0  ;;  %9057 = vmatmul.mubr.f32.gmra.mxu0 %v2622_v35  ;;  %v2631_v35 = vld [vmem:[#allocation2 + $0x138] sm:$0xff] }
 0x120   : > { %v8658_v5 = vpop.f32.mrf.mxu1  ;;  %9137 = vmatmul.mubr.f32.gmra.mxu1 %v2992_v47  ;;  %9059 = vmatprep.mubr.f32.mxu0 %v2623_v33  ;;  %v3001_v41 = vld [vmem:[#allocation2 + $0x139] sm:$0xff] }
 0x121   : > { %v11057_v27 = vadd.f32 %v8658_v5, %v8578_v12  ;;  %v627_v45 = vpop.f32.mrf.mxu0  ;;  %9139 = vmatprep.mubr.f32.mxu1 %v2993_v51  ;;  %9181 = vmatpush3.msra.mxu0 %v7518_v29  ;;  %v3000_v29 = vld [vmem:[#allocation2 + $0x129] sm:$0xff]  ;;  %v7513_v33 = vld [vmem:[%s13290_s1 + $0x418] sm:$0xff]  ;;  %v2632_v12 = vld [vmem:[#allocation2 + $0x140] sm:$0xff] }
 0x122   : > { %v933_v57 = vpop.f32.mrf.mxu1  ;;  %9182 = vmatprep.subr.mxu0 %v7517_v11 }
 0x123   : > { %v11059_v10 = vadd.f32 %v933_v57, %v627_v45  ;;  %v8581_v17 = vpop.f32.mrf.mxu0  ;;  %9060 = vmatmul.mubr.f32.gmra.mxu0 %v2624_v62  ;;  %v3002_v62 = vld [vmem:[#allocation2 + $0x141] sm:$0xff]  ;;  %v2633_v45 = vld [vmem:[#allocation2 + $0x150] sm:$0xff] }
 0x124   : > { %v8661_v22 = vpop.f32.mrf.mxu1  ;;  %9140 = vmatmul.mubr.f32.gmra.mxu1 %v2994_v63  ;;  %9062 = vmatprep.mubr.f32.mxu0 %v2625_v4  ;;  %v3003_v57 = vld [vmem:[#allocation2 + $0x151] sm:$0xff] }
 0x125   : > { %v11064_v32 = vadd.f32 %v8661_v22, %v8581_v17  ;;  %v637_v38 = vpop.f32.mrf.mxu0  ;;  %9142 = vmatprep.mubr.f32.mxu1 %v2995_v15  ;;  %9183 = vmatpush3.msra.mxu0 %v7517_v11  ;;  %v7512_v15 = vld [vmem:[%s13290_s1 + $0x410] sm:$0xff]  ;;  %v2634_v22 = vld [vmem:[#allocation2 + $0x158] sm:$0xff] }
 0x126   : > { %v943_v42 = vpop.f32.mrf.mxu1  ;;  %9184 = vmatprep.subr.mxu0 %v7516_v30 }
 0x127   : > { %v11066_v55 = vadd.f32 %v943_v42, %v637_v38  ;;  %v8584_v3 = vpop.f32.mrf.mxu0  ;;  %9063 = vmatmul.mubr.f32.gmra.mxu0 %v2626_v36  ;;  %v3004_v38 = vld [vmem:[#allocation2 + $0x159] sm:$0xff]  ;;  %v2635_v42 = vld [vmem:[#allocation2 + $0x168] sm:$0xff] }
 0x128   : > { %v8664_v18 = vpop.f32.mrf.mxu1  ;;  %9143 = vmatmul.mubr.f32.gmra.mxu1 %v2996_v48  ;;  %9065 = vmatprep.mubr.f32.mxu0 %v2627_v50  ;;  %v3005_v48 = vld [vmem:[#allocation2 + $0x169] sm:$0xff] }
 0x129   : > { %v11071_v28 = vadd.f32 %v8664_v18, %v8584_v3  ;;  %v11073_v46 = vpop.f32.mrf.mxu0  ;;  %9145 = vmatprep.mubr.f32.mxu1 %v2997_v58  ;;  %9185 = vmatpush3.msra.mxu0 %v7516_v30  ;;  %v7511_v3 = vld [vmem:[%s13290_s1 + $0x408] sm:$0xff] }
 0x12a   : > { %v11075_v23 = vpop.f32.mrf.mxu1  ;;  %9186 = vmatprep.subr.mxu0 %v7515_v20 }
 0x12b   : > { %v8587_v52 = vpop.f32.mrf.mxu0  ;;  %9066 = vmatmul.mubr.f32.gmra.mxu0 %v2628_v40 }
 0x12c   : > { %v8667_v31 = vpop.f32.mrf.mxu1  ;;  %9146 = vmatmul.mubr.f32.gmra.mxu1 %v2998_v54  ;;  %9068 = vmatprep.mubr.f32.mxu0 %v2629_v1  ;;  %v3006_v1 = vld [vmem:[#allocation2 + $0x171] sm:$0xff] }
 0x12d   : > { %v11080_v37 = vadd.f32 %v8667_v31, %v8587_v52  ;;  %v11082_v21 = vpop.f32.mrf.mxu0  ;;  %9148 = vmatprep.mubr.f32.mxu1 %v2999_v59  ;;  %9187 = vmatpush3.msra.mxu0 %v7515_v20  ;;  %v2636_v20 = vld [vmem:[#allocation2 + $0x170] sm:$0xff]  ;;  %v7510_v31 = vld [vmem:[%s13290_s1 + $0x400] sm:$0xff] }
 0x12e   : > { %v11084_v49 = vpop.f32.mrf.mxu1  ;;  %9188 = vmatprep.subr.mxu0 %v7514_v7 }
 0x12f   : > { %v8590_v19 = vpop.f32.mrf.mxu0  ;;  %9069 = vmatmul.mubr.f32.gmra.mxu0 %v2630_v43 }
 0x130   : > { %v8670_v47 = vpop.f32.mrf.mxu1  ;;  %9149 = vmatmul.mubr.f32.gmra.mxu1 %v3000_v29  ;;  %9071 = vmatprep.mubr.f32.mxu0 %v2631_v35  ;;  %v3009_v35 = vld [vmem:[#allocation2 + $0x199] sm:$0xff] }
 0x131   : > { %v11089_v51 = vadd.f32 %v8670_v47, %v8590_v19  ;;  %v11091_v5 = vpop.f32.mrf.mxu0  ;;  %9151 = vmatprep.mubr.f32.mxu1 %v3001_v41  ;;  %9189 = vmatpush3.msra.mxu0 %v7514_v7 }
 0x132   : > { %v11093_v11 = vpop.f32.mrf.mxu1  ;;  %9190 = vmatprep.subr.mxu0 %v7513_v33 }
 0x133   : > { %v8593_v63 = vpop.f32.mrf.mxu0  ;;  %9072 = vmatmul.mubr.f32.gmra.mxu0 %v2632_v12 }
 0x134   : > { %v8673_v4 = vpop.f32.mrf.mxu1  ;;  %9152 = vmatmul.mubr.f32.gmra.mxu1 %v3002_v62  ;;  %9074 = vmatprep.mubr.f32.mxu0 %v2633_v45  ;;  %v3349_v62 = vld [vmem:[#allocation2 + $0x32] sm:$0xff] }
 0x135   : > { %v11098_v17 = vadd.f32 %v8673_v4, %v8593_v63  ;;  %v11100_v30 = vpop.f32.mrf.mxu0  ;;  %9154 = vmatprep.mubr.f32.mxu1 %v3003_v57  ;;  %9191 = vmatpush3.msra.mxu0 %v7513_v33  ;;  %v11128_v33 = vld [vmem:[#allocation2] sm:$0xff]  ;;  %v3351_v4 = vld [vmem:[#allocation2 + $0x4a] sm:$0xff] }
 0x136   : > { %v11102_v36 = vpop.f32.mrf.mxu1  ;;  %9192 = vmatprep.subr.mxu0 %v7512_v15 }
 0x137   : > { %v8596_v50 = vpop.f32.mrf.mxu0  ;;  %9075 = vmatmul.mubr.f32.gmra.mxu0 %v2634_v22 }
 0x138   : > { %v8676_v58 = vpop.f32.mrf.mxu1  ;;  %9155 = vmatmul.mubr.f32.gmra.mxu1 %v3004_v38  ;;  %9077 = vmatprep.mubr.f32.mxu0 %v2635_v42 }
 0x139   : > { %v11107_v18 = vadd.f32 %v8676_v58, %v8596_v50  ;;  %v11109_v40 = vpop.f32.mrf.mxu0  ;;  %9157 = vmatprep.mubr.f32.mxu1 %v3005_v48  ;;  %9193 = vmatpush3.msra.mxu0 %v7512_v15  ;;  %v3352_v48 = vld [vmem:[#allocation2 + $0x52] sm:$0xff]  ;;  %v3353_v58 = vld [vmem:[#allocation2 + $0x62] sm:$0xff] }
 0x13a   : > { %v11111_v54 = vpop.f32.mrf.mxu1  ;;  %9194 = vmatprep.subr.mxu0 %v7511_v3 }
 0x13b   : > { %v8599_v59 = vpop.f32.mrf.mxu0  ;;  %9078 = vmatmul.mubr.f32.gmra.mxu0 %v2636_v20 }
 0x13c   : > { %v8679_v52 = vpop.f32.mrf.mxu1  ;;  %9158 = vmatmul.mubr.f32.gmra.mxu1 %v3006_v1  ;;  %9080 = vmatprep.mubr.f32.mxu0 %v10820_v13 }
 0x13d   : > { %v11116_v7 = vadd.f32 %v8679_v52, %v8599_v59  ;;  %v11119_v43 = vpop.f32.mrf.mxu0  ;;  %9160 = vmatprep.mubr.f32.mxu1 %v10983_v6  ;;  %9195 = vmatpush3.msra.mxu0 %v7511_v3  ;;  %v3010_v6 = vld [vmem:[#allocation2 + $0x1a1] sm:$0xff] }
 0x13e   : > { %v11121_v29 = vpop.f32.mrf.mxu1  ;;  %9196 = vmatprep.subr.mxu0 %v7510_v31 }
 0x13f   : > { %v8602_v41 = vpop.f32.mrf.mxu0  ;;  %9081 = vmatmul.mubr.f32.gmra.mxu0 %v10831_v24 }
 0x140   : > { %v8682_v19 = vpop.f32.mrf.mxu1  ;;  %9161 = vmatmul.mubr.f32.gmra.mxu1 %v10993_v16  ;;  %9083 = vmatprep.mubr.f32.mxu0 %v11128_v33  ;;  %v3350_v16 = vld [vmem:[#allocation2 + $0x3a] sm:$0xff] }
 0x141   : > { %v11125_v47 = vadd.f32 %v8682_v19, %v8602_v41  ;;  %v11131_v13 = vpop.f32.mrf.mxu0  ;;  %9163 = vmatprep.mubr.f32.mxu1 %v3009_v35  ;;  %9197 = vmatpush3.msra.mxu0 %v7510_v31  ;;  %v3354_v35 = vld [vmem:[#allocation2 + $0x6a] sm:$0xff]  ;;  %v3355_v41 = vld [vmem:[#allocation2 + $0x7a] sm:$0xff] }
 0x142   : > { %v11133_v12 = vpop.f32.mrf.mxu1 }
 0x143   : > { %v8605_v45 = vpop.f32.mrf.mxu0  ;;  %9084 = vmatmul.mubr.f32.gmra.mxu0 %v11128_v33 }
 0x144   : > { %v8685_v57 = vpop.f32.mrf.mxu1  ;;  %9164 = vmatmul.mubr.f32.gmra.mxu1 %v3010_v6  ;;  %9198 = vmatprep.mubr.f32.mxu0 %v3349_v62 }
 0x145   : > { %v11136_v24 = vadd.f32 %v8685_v57, %v8605_v45  ;;  %v11138_v63 = vpop.f32.mrf.mxu0  ;;  %9278 = vmatprep.mubr.f32.mxu1 %v11128_v33 }
 0x146   : > { %v11141_v15 = vpop.f32.mrf.mxu1 }
 0x147   : > { %v8720_v22 = vpop.f32.mrf.mxu0  ;;  %9199 = vmatmul.mubr.f32.vlgmr.msra.gmra.mxu0 %v3350_v16  ;;  %v3356_v16 = vld [vmem:[#allocation2 + $0x82] sm:$0xff] }
 0x148   : > { %v1435_v38 = vadd.f32 %v8720_v22, %v11012_v2  ;;  %v8800_v42 = vpop.f32.mrf.mxu1  ;;  %9201 = vmatprep.mubr.f32.mxu0 %v3351_v4  ;;  %v3357_v4 = vld [vmem:[#allocation2 + $0x92] sm:$0xff] }
 0x149   : > { %v1243_v50 = vpop.f32.mrf.mxu0 }
 0x14a   : > { %v11145_v3 = vadd.f32 %v1243_v50, %v11017_v61  ;;  %v11147_v20 = vadd.f32 %v8800_v42, %v1435_v38  ;;  %v11149_v1 = vpop.f32.mrf.mxu1 }
 0x14b   : > { %v8723_v59 = vpop.f32.mrf.mxu0  ;;  %9202 = vmatmul.mubr.f32.gmra.mxu0 %v3352_v48 }
 0x14c   : > { %v1437_v52 = vadd.f32 %v8723_v59, %v11022_v39  ;;  %v8803_v31 = vpop.f32.mrf.mxu1  ;;  %9204 = vmatprep.mubr.f32.mxu0 %v3353_v58  ;;  %v3358_v58 = vld [vmem:[#allocation2 + $0x9a] sm:$0xff]  ;;  %v3359_v59 = vld [vmem:[#allocation2 + $0xaa] sm:$0xff] }
 0x14d   : > { %v1253_v2 = vpop.f32.mrf.mxu0 }
 0x14e   : > { %v11153_v19 = vadd.f32 %v1253_v2, %v11024_v8  ;;  %v11155_v6 = vadd.f32 %v8803_v31, %v1437_v52  ;;  %v11157_v61 = vpop.f32.mrf.mxu1 }
 0x14f   : > { %v8726_v62 = vpop.f32.mrf.mxu0  ;;  %9205 = vmatmul.mubr.f32.gmra.mxu0 %v3354_v35 }
 0x150   : > { %v1439_v45 = vadd.f32 %v8726_v62, %v11029_v26  ;;  %v8806_v57 = vpop.f32.mrf.mxu1  ;;  %9207 = vmatprep.mubr.f32.mxu0 %v3355_v41  ;;  %v3360_v62 = vld [vmem:[#allocation2 + $0xb2] sm:$0xff] }
 0x151   : > { %v1263_v39 = vpop.f32.mrf.mxu0 }
 0x152   : > { %v11161_v22 = vadd.f32 %v1263_v39, %v11031_v44  ;;  %v11163_v38 = vadd.f32 %v8806_v57, %v1439_v45  ;;  %v11165_v8 = vpop.f32.mrf.mxu1  ;;  %v3361_v57 = vld [vmem:[#allocation2 + $0xc2] sm:$0xff] }
 0x153   : > { %v8729_v42 = vpop.f32.mrf.mxu0  ;;  %9208 = vmatmul.mubr.f32.gmra.mxu0 %v3356_v16 }
 0x154   : > { %v1441_v48 = vadd.f32 %v8729_v42, %v11036_v0  ;;  %v8809_v50 = vpop.f32.mrf.mxu1  ;;  %9210 = vmatprep.mubr.f32.mxu0 %v3357_v4  ;;  %v3941_v0 = vld [vmem:[%s13293_s4 + $0x78] sm:$0xff] }
 0x155   : > { %v1273_v26 = vpop.f32.mrf.mxu0  ;;  %9246 = vmatprep.subr.mxu1 %v3941_v0 }
 0x156   : > { %v11169_v52 = vadd.f32 %v1273_v26, %v11038_v34  ;;  %v11171_v31 = vadd.f32 %v8809_v50, %v1441_v48  ;;  %v11173_v44 = vpop.f32.mrf.mxu1  ;;  %9247 = vmatpush3.msra.mxu1 %v3941_v0  ;;  %v3362_v48 = vld [vmem:[#allocation2 + $0xca] sm:$0xff]  ;;  %v3363_v26 = vld [vmem:[#allocation2 + $0xda] sm:$0xff] }
 0x157   : > { %v8732_v35 = vpop.f32.mrf.mxu0  ;;  %9211 = vmatmul.mubr.f32.gmra.mxu0 %v3358_v58  ;;  %v3940_v50 = vld [vmem:[%s13293_s4 + $0x70] sm:$0xff]  ;;  %v3939_v0 = vld [vmem:[%s13293_s4 + $0x68] sm:$0xff] }
 0x158   : > { %v1443_v2 = vadd.f32 %v8732_v35, %v11043_v60  ;;  %v8812_v41 = vpop.f32.mrf.mxu1  ;;  %9213 = vmatprep.mubr.f32.mxu0 %v3359_v59  ;;  %9248 = vmatprep.subr.mxu1 %v3940_v50 }
 0x159   : > { %v1283_v45 = vpop.f32.mrf.mxu0  ;;  %9249 = vmatpush3.msra.mxu1 %v3940_v50  ;;  %v3366_v50 = vld [vmem:[#allocation2 + $0xfa] sm:$0xff] }
 0x15a   : > { %v11180_v34 = vadd.f32 %v1283_v45, %v11045_v14  ;;  %v11182_v16 = vadd.f32 %v8812_v41, %v1443_v2  ;;  %v11184_v39 = vpop.f32.mrf.mxu1  ;;  %9250 = vmatprep.subr.mxu1 %v3939_v0 }
 0x15b   : > { %v8735_v4 = vpop.f32.mrf.mxu0  ;;  %9214 = vmatmul.mubr.f32.gmra.mxu0 %v3360_v62  ;;  %v3364_v62 = vld [vmem:[#allocation2 + $0xe2] sm:$0xff]  ;;  %9251 = vmatpush3.msra.mxu1 %v3939_v0 }
 0x15c   : > { %v1445_v60 = vadd.f32 %v8735_v4, %v11050_v56  ;;  %v8815_v42 = vpop.f32.mrf.mxu1  ;;  %9216 = vmatprep.mubr.f32.mxu0 %v3361_v57  ;;  %v3365_v57 = vld [vmem:[#allocation2 + $0xf2] sm:$0xff] }
 0x15d   : > { %v1293_v58 = vpop.f32.mrf.mxu0 }
 0x15e   : > { %v11191_v14 = vadd.f32 %v1293_v58, %v11052_v53  ;;  %v11193_v59 = vadd.f32 %v8815_v42, %v1445_v60  ;;  %v11195_v35 = vpop.f32.mrf.mxu1  ;;  %v3938_v58 = vld [vmem:[%s13293_s4 + $0x60] sm:$0xff] }
 0x15f   : > { %v8738_v2 = vpop.f32.mrf.mxu0  ;;  %9217 = vmatmul.mubr.f32.gmra.mxu0 %v3362_v48  ;;  %9252 = vmatprep.subr.mxu1 %v3938_v58 }
 0x160   : > { %v1447_v56 = vadd.f32 %v8738_v2, %v11057_v27  ;;  %v8818_v41 = vpop.f32.mrf.mxu1  ;;  %9219 = vmatprep.mubr.f32.mxu0 %v3363_v26  ;;  %v3367_v2 = vld [vmem:[#allocation2 + $0x10a] sm:$0xff]  ;;  %9253 = vmatpush3.msra.mxu1 %v3938_v58 }
 0x161   : > { %v1303_v45 = vpop.f32.mrf.mxu0 }
 0x162   : > { %v11202_v53 = vadd.f32 %v1303_v45, %v11059_v10  ;;  %v11204_v4 = vadd.f32 %v8818_v41, %v1447_v56  ;;  %v11206_v60 = vpop.f32.mrf.mxu1 }
 0x163   : > { %v8741_v42 = vpop.f32.mrf.mxu0  ;;  %9220 = vmatmul.mubr.f32.gmra.mxu0 %v3364_v62 }
 0x164   : > { %v1449_v27 = vadd.f32 %v8741_v42, %v11064_v32  ;;  %v8821_v48 = vpop.f32.mrf.mxu1  ;;  %9222 = vmatprep.mubr.f32.mxu0 %v3365_v57  ;;  %v1080_v32 = vadd.f32 %v11075_v23, %v11073_v46  ;;  %v3368_v57 = vld [vmem:[#allocation2 + $0x112] sm:$0xff] }
 0x165   : > { %v1313_v26 = vpop.f32.mrf.mxu0 }
 0x166   : > { %v11213_v10 = vadd.f32 %v1313_v26, %v11066_v55  ;;  %v11215_v56 = vadd.f32 %v8821_v48, %v1449_v27  ;;  %v11217_v41 = vpop.f32.mrf.mxu1  ;;  %v3937_v55 = vld [vmem:[%s13293_s4 + $0x58] sm:$0xff]  ;;  %v3369_v27 = vld [vmem:[#allocation2 + $0x122] sm:$0xff]  ;;  %v3370_v26 = vld [vmem:[#allocation2 + $0x12a] sm:$0xff] }
 0x167   : > { %v8744_v62 = vpop.f32.mrf.mxu0  ;;  %9223 = vmatmul.mubr.f32.gmra.mxu0 %v3366_v50  ;;  %9254 = vmatprep.subr.mxu1 %v3937_v55 }
 0x168   : > { %v1451_v0 = vadd.f32 %v8744_v62, %v11071_v28  ;;  %v8824_v45 = vpop.f32.mrf.mxu1  ;;  %9225 = vmatprep.mubr.f32.mxu0 %v3367_v2  ;;  %9255 = vmatpush3.msra.mxu1 %v3937_v55  ;;  %v3936_v2 = vld [vmem:[%s13293_s4 + $0x50] sm:$0xff] }
 0x169   : > { %v1323_v42 = vpop.f32.mrf.mxu0  ;;  %9256 = vmatprep.subr.mxu1 %v3936_v2 }
 0x16a   : > { %v11225_v48 = vadd.f32 %v1323_v42, %v1080_v32  ;;  %v11227_v58 = vadd.f32 %v8824_v45, %v1451_v0  ;;  %v11229_v50 = vpop.f32.mrf.mxu1  ;;  %v3371_v32 = vld [vmem:[#allocation2 + $0x13a] sm:$0xff]  ;;  %9257 = vmatpush3.msra.mxu1 %v3936_v2  ;;  %v3373_v2 = vld [vmem:[#allocation2 + $0x152] sm:$0xff] }
 0x16b   : > { %13313 = vst [vmem:[#allocation6_spill] sm:$0xff] %v11229_v50  ;;  %v8747_v46 = vpop.f32.mrf.mxu0  ;;  %9226 = vmatmul.mubr.f32.gmra.mxu0 %v3368_v57  ;;  %v3374_v50 = vld [vmem:[#allocation2 + $0x15a] sm:$0xff] }
 0x16c   : > { %13312 = vst [vmem:[#allocation5_spill] sm:$0xff] %v11225_v48  ;;  %v1453_v28 = vadd.f32 %v8747_v46, %v11080_v37  ;;  %v8827_v23 = vpop.f32.mrf.mxu1  ;;  %9228 = vmatprep.mubr.f32.mxu0 %v3369_v27  ;;  %v7543_v37 = vld [vmem:[%s13293_s4 + $0xf8] sm:$0xff]  ;;  %v3372_v27 = vld [vmem:[#allocation2 + $0x142] sm:$0xff] }
 0x16d   : > { %v11235_v62 = vpop.f32.mrf.mxu0  ;;  %9326 = vmatprep.subr.mxu0 %v7543_v37  ;;  %v3935_v46 = vld [vmem:[%s13293_s4 + $0x48] sm:$0xff]  ;;  %v3376_v48 = vld [vmem:[#allocation2 + $0x172] sm:$0xff] }
 0x16e   : > { %v11237_v0 = vadd.f32 %v8827_v23, %v1453_v28  ;;  %v11239_v45 = vpop.f32.mrf.mxu1  ;;  %9327 = vmatpush3.msra.mxu0 %v7543_v37  ;;  %v7542_v28 = vld [vmem:[%s13293_s4 + $0xf0] sm:$0xff]  ;;  %9258 = vmatprep.subr.mxu1 %v3935_v46 }
 0x16f   : > { %13314 = vst [vmem:[#allocation7_spill] sm:$0xff] %v11239_v45  ;;  %v8750_v57 = vpop.f32.mrf.mxu0  ;;  %9229 = vmatmul.mubr.f32.gmra.mxu0 %v3370_v26  ;;  %9328 = vmatprep.subr.mxu0 %v7542_v28 }
 0x170   : > { %v1455_v55 = vadd.f32 %v8750_v57, %v11089_v51  ;;  %v8830_v42 = vpop.f32.mrf.mxu1  ;;  %9231 = vmatprep.mubr.f32.mxu0 %v3371_v32  ;;  %9259 = vmatpush3.msra.mxu1 %v3935_v46  ;;  %v7541_v32 = vld [vmem:[%s13293_s4 + $0xe8] sm:$0xff] }
 0x171   : > { %v11251_v23 = vpop.f32.mrf.mxu0  ;;  %9329 = vmatpush3.msra.mxu0 %v7542_v28  ;;  %v3375_v28 = vld [vmem:[#allocation2 + $0x16a] sm:$0xff] }
 0x172   : > { %v11253_v26 = vadd.f32 %v8830_v42, %v1455_v55  ;;  %v11255_v51 = vpop.f32.mrf.mxu1  ;;  %9330 = vmatprep.subr.mxu0 %v7541_v32  ;;  %v3934_v55 = vld [vmem:[%s13293_s4 + $0x40] sm:$0xff] }
 0x173   : > { %13315 = vst [vmem:[#allocation8_spill] sm:$0xff] %v11255_v51  ;;  %v8753_v37 = vpop.f32.mrf.mxu0  ;;  %9232 = vmatmul.mubr.f32.gmra.mxu0 %v3372_v27  ;;  %v7540_v42 = vld [vmem:[%s13293_s4 + $0xe0] sm:$0xff]  ;;  %9260 = vmatprep.subr.mxu1 %v3934_v55 }
 0x174   : > { %v1457_v57 = vadd.f32 %v8753_v37, %v11098_v17  ;;  %v8833_v45 = vpop.f32.mrf.mxu1  ;;  %9234 = vmatprep.mubr.f32.mxu0 %v3373_v2  ;;  %9331 = vmatpush3.msra.mxu0 %v7541_v32  ;;  %v7539_v2 = vld [vmem:[%s13293_s4 + $0xd8] sm:$0xff] }
 0x175   : > { %v11267_v46 = vpop.f32.mrf.mxu0  ;;  %9332 = vmatprep.subr.mxu0 %v7540_v42  ;;  %9261 = vmatpush3.msra.mxu1 %v3934_v55 }
 0x176   : > { %13316 = vst [vmem:[#allocation9_spill] sm:$0xff] %v11267_v46  ;;  %v11269_v27 = vadd.f32 %v8833_v45, %v1457_v57  ;;  %v11271_v17 = vpop.f32.mrf.mxu1  ;;  %9333 = vmatpush3.msra.mxu0 %v7540_v42  ;;  %v3933_v45 = vld [vmem:[%s13293_s4 + $0x38] sm:$0xff]  ;;  %v7538_v57 = vld [vmem:[%s13293_s4 + $0xd0] sm:$0xff] }
 0x177   : > { %13317 = vst [vmem:[#allocation10_spill] sm:$0xff] %v11271_v17  ;;  %v8756_v32 = vpop.f32.mrf.mxu0  ;;  %9235 = vmatmul.mubr.f32.gmra.mxu0 %v3374_v50  ;;  %9334 = vmatprep.subr.mxu0 %v7539_v2  ;;  %v3380_v17 = vld [vmem:[#allocation2 + $0x1a2] sm:$0xff] }
 0x178   : > { %v1459_v37 = vadd.f32 %v8756_v32, %v11107_v18  ;;  %v8836_v51 = vpop.f32.mrf.mxu1  ;;  %9237 = vmatprep.mubr.f32.mxu0 %v3375_v28  ;;  %9335 = vmatpush3.msra.mxu0 %v7539_v2  ;;  %v7537_v18 = vld [vmem:[%s13293_s4 + $0xc8] sm:$0xff] }
 0x179   : > { %v11283_v55 = vpop.f32.mrf.mxu0  ;;  %9262 = vmatprep.subr.mxu1 %v3933_v45  ;;  %9336 = vmatprep.subr.mxu0 %v7538_v57 }
 0x17a   : > { %13318 = vst [vmem:[#allocation11_spill] sm:$0xff] %v11283_v55  ;;  %v11285_v50 = vadd.f32 %v8836_v51, %v1459_v37  ;;  %v11287_v42 = vpop.f32.mrf.mxu1  ;;  %9263 = vmatpush3.msra.mxu1 %v3933_v45  ;;  %9337 = vmatpush3.msra.mxu0 %v7538_v57  ;;  %v3932_v51 = vld [vmem:[%s13293_s4 + $0x30] sm:$0xff]  ;;  %v7536_v37 = vld [vmem:[%s13293_s4 + $0xc0] sm:$0xff] }
 0x17b   : > { %13319 = vst [vmem:[#allocation12_spill] sm:$0xff] %v11287_v42  ;;  %v8759_v28 = vpop.f32.mrf.mxu0  ;;  %9238 = vmatmul.mubr.f32.gmra.mxu0 %v3376_v48  ;;  %9338 = vmatprep.subr.mxu0 %v7537_v18  ;;  %v3379_v57 = vld [vmem:[#allocation2 + $0x19a] sm:$0xff] }
 0x17c   : > { %v1461_v2 = vadd.f32 %v8759_v28, %v11116_v7  ;;  %v8839_v32 = vpop.f32.mrf.mxu1  ;;  %9240 = vmatprep.mubr.f32.mxu0 %v10988_v9  ;;  %9339 = vmatpush3.msra.mxu0 %v7537_v18  ;;  %v7535_v9 = vld [vmem:[%s13293_s4 + $0xb8] sm:$0xff] }
 0x17d   : > { %v11300_v45 = vpop.f32.mrf.mxu0  ;;  %9264 = vmatprep.subr.mxu1 %v3932_v51  ;;  %9340 = vmatprep.subr.mxu0 %v7536_v37 }
 0x17e   : > { %13320 = vst [vmem:[#allocation13_spill] sm:$0xff] %v11300_v45  ;;  %v11302_v48 = vadd.f32 %v8839_v32, %v1461_v2  ;;  %v11304_v7 = vpop.f32.mrf.mxu1  ;;  %9265 = vmatpush3.msra.mxu1 %v3932_v51  ;;  %9341 = vmatpush3.msra.mxu0 %v7536_v37  ;;  %v3931_v2 = vld [vmem:[%s13293_s4 + $0x28] sm:$0xff]  ;;  %v7534_v32 = vld [vmem:[%s13293_s4 + $0xb0] sm:$0xff] }
 0x17f   : > { %13321 = vst [vmem:[#allocation14_spill] sm:$0xff] %v11304_v7  ;;  %v8762_v18 = vpop.f32.mrf.mxu0  ;;  %9241 = vmatmul.mubr.f32.gmra.mxu0 %v10999_v25  ;;  %9342 = vmatprep.subr.mxu0 %v7535_v9 }
 0x180   : > { %v1463_v28 = vadd.f32 %v8762_v18, %v11125_v47  ;;  %v8842_v42 = vpop.f32.mrf.mxu1  ;;  %9243 = vmatprep.mubr.f32.mxu0 %v3379_v57  ;;  %9343 = vmatpush3.msra.mxu0 %v7535_v9  ;;  %v7533_v47 = vld [vmem:[%s13293_s4 + $0xa8] sm:$0xff] }
 0x181   : > { %v11317_v51 = vpop.f32.mrf.mxu0  ;;  %9266 = vmatprep.subr.mxu1 %v3931_v2  ;;  %9344 = vmatprep.subr.mxu0 %v7534_v32 }
 0x182   : > { %13322 = vst [vmem:[#allocation15_spill] sm:$0xff] %v11317_v51  ;;  %v11319_v25 = vadd.f32 %v8842_v42, %v1463_v28  ;;  %v11321_v37 = vpop.f32.mrf.mxu1  ;;  %9267 = vmatpush3.msra.mxu1 %v3931_v2  ;;  %9345 = vmatpush3.msra.mxu0 %v7534_v32  ;;  %v3930_v51 = vld [vmem:[%s13293_s4 + $0x20] sm:$0xff] }
 0x183   : > { %13323 = vst [vmem:[#allocation16_spill] sm:$0xff] %v11321_v37  ;;  %v8765_v57 = vpop.f32.mrf.mxu0  ;;  %9244 = vmatmul.mubr.f32.gmra.mxu0 %v3380_v17  ;;  %9346 = vmatprep.subr.mxu0 %v7533_v47  ;;  %v7532_v42 = vld [vmem:[%s13293_s4 + $0xa0] sm:$0xff]  ;;  %v4199_v37 = vld [vmem:[#allocation3 + $0x1] sm:$0xff] }
 0x184   : > { %v1465_v9 = vadd.f32 %v8765_v57, %v11136_v24  ;;  %v8845_v18 = vpop.f32.mrf.mxu1  ;;  %9347 = vmatpush3.msra.mxu0 %v7533_v47  ;;  %9268 = vmatprep.subr.mxu1 %v3930_v51  ;;  %v7531_v24 = vld [vmem:[%s13293_s4 + $0x98] sm:$0xff] }
 0x185   : > { %v11333_v28 = vpop.f32.mrf.mxu0  ;;  %9348 = vmatprep.subr.mxu0 %v7532_v42  ;;  %9269 = vmatpush3.msra.mxu1 %v3930_v51 }
 0x186   : > { %13324 = vst [vmem:[#allocation17_spill] sm:$0xff] %v11333_v28  ;;  %v11335_v2 = vadd.f32 %v8845_v18, %v1465_v9  ;;  %v11337_v17 = vpop.f32.mrf.mxu1  ;;  %9349 = vmatpush3.msra.mxu0 %v7532_v42  ;;  %v7530_v9 = vld [vmem:[%s13293_s4 + $0x90] sm:$0xff]  ;;  %v7529_v42 = vld [vmem:[%s13293_s4 + $0x88] sm:$0xff]  ;;  %9358 = vmatprep.mubr.f32.mxu0 %v4199_v37  ;;  %v3926_v37 = vld [vmem:[%s13293_s4] sm:$0xff] }
 0x187   : > { %13325 = vst [vmem:[#allocation18_spill] sm:$0xff] %v11337_v17  ;;  %v8880_v32 = vpop.f32.mrf.mxu0  ;;  %9350 = vmatprep.subr.mxu0 %v7531_v24 }
 0x188   : > { %v11343_v47 = vadd.f32 %v8880_v32, %v11147_v20  ;;  %v11345_v57 = vpop.f32.mrf.mxu1  ;;  %9351 = vmatpush3.msra.mxu0 %v7531_v24  ;;  %v3929_v32 = vld [vmem:[%s13293_s4 + $0x18] sm:$0xff] }
 0x189   : > { %v11350_v18 = vpop.f32.mrf.mxu0  ;;  %9352 = vmatprep.subr.mxu0 %v7530_v9  ;;  %9270 = vmatprep.subr.mxu1 %v3929_v32 }
 0x18a   : > { %v11352_v51 = vpop.f32.mrf.mxu1  ;;  %9353 = vmatpush3.msra.mxu0 %v7530_v9  ;;  %v7528_v9 = vld [vmem:[%s13293_s4 + $0x80] sm:$0xff]  ;;  %9271 = vmatpush3.msra.mxu1 %v3929_v32 }
 0x18b   : > { %v8883_v17 = vpop.f32.mrf.mxu0  ;;  %9354 = vmatprep.subr.mxu0 %v7529_v42 }
 0x18c   : > { %v11358_v20 = vadd.f32 %v8883_v17, %v11155_v6  ;;  %v11360_v24 = vpop.f32.mrf.mxu1  ;;  %9355 = vmatpush3.msra.mxu0 %v7529_v42  ;;  %v3928_v6 = vld [vmem:[%s13293_s4 + $0x10] sm:$0xff]  ;;  %v4200_v17 = vld [vmem:[#allocation3 + $0x9] sm:$0xff] }
 0x18d   : > { %v11368_v28 = vpop.f32.mrf.mxu0  ;;  %9356 = vmatprep.subr.mxu0 %v7528_v9  ;;  %9272 = vmatprep.subr.mxu1 %v3928_v6 }
 0x18e   : > { %v11370_v7 = vpop.f32.mrf.mxu1  ;;  %9357 = vmatpush3.msra.mxu0 %v7528_v9  ;;  %9273 = vmatpush3.msra.mxu1 %v3928_v6 }
 0x18f   : > { %13326 = vst [vmem:[#allocation19_spill] sm:$0xff] %v11370_v7  ;;  %v8886_v45 = vpop.f32.mrf.mxu0  ;;  %v3927_v7 = vld [vmem:[%s13293_s4 + $0x8] sm:$0xff]  ;;  %9359 = vmatmul.mubr.f32.vlgmr.msra.gmra.mxu0 %v4200_v17 }
 0x190   : > { %v11376_v42 = vadd.f32 %v8886_v45, %v11163_v38  ;;  %v11378_v55 = vpop.f32.mrf.mxu1  ;;  %9274 = vmatprep.subr.mxu1 %v3927_v7 }
 0x191   : > { %13328 = vst [vmem:[#allocation21_spill] sm:$0xff] %v11378_v55  ;;  %v11383_v32 = vpop.f32.mrf.mxu0  ;;  %9275 = vmatpush3.msra.mxu1 %v3927_v7 }
 0x192   : > { %13327 = vst [vmem:[#allocation20_spill] sm:$0xff] %v11376_v42  ;;  %13329 = vst [vmem:[#allocation22_spill] sm:$0xff] %v11383_v32  ;;  %v11385_v46 = vpop.f32.mrf.mxu1  ;;  %9276 = vmatprep.subr.mxu1 %v3926_v37 }
 0x193   : > { %13330 = vst [vmem:[#allocation23_spill] sm:$0xff] %v11385_v46  ;;  %v8889_v38 = vpop.f32.mrf.mxu0  ;;  %9277 = vmatpush3.msra.mxu1 %v3926_v37 }
 0x194   : > { %v11391_v45 = vadd.f32 %v8889_v38, %v11171_v31  ;;  %v11393_v9 = vpop.f32.mrf.mxu1  ;;  %9279 = vmatmul.mubr.f32.vlgmr.msra.gmra.mxu1 %v11128_v33 }
 0x195   : > { %13331 = vst [vmem:[#allocation24_spill] sm:$0xff] %v11393_v9  ;;  %v11395_v6 = vpop.f32.mrf.mxu0 }
 0x196   : > { %v11398_v17 = vpop.f32.mrf.mxu1 }
 0x197   : > { %13332 = vst [vmem:[#allocation25_spill] sm:$0xff] %v11398_v17  ;;  %v8892_v46 = vpop.f32.mrf.mxu0 }
 0x198   : > { %v11401_v7 = vadd.f32 %v8892_v46, %v11182_v16  ;;  %v11403_v55 = vpop.f32.mrf.mxu1 }
 0x199   : > { %13334 = vst [vmem:[#allocation27_spill] sm:$0xff] %v11403_v55  ;;  %v11405_v42 = vpop.f32.mrf.mxu0 }
 0x19a   : > { %13333 = vst [vmem:[#allocation26_spill] sm:$0xff] %v11401_v7  ;;  %v11407_v32 = vpop.f32.mrf.mxu1 }
 0x19b   : > { %13335 = vst [vmem:[#allocation28_spill] sm:$0xff] %v11407_v32  ;;  %v8895_v31 = vpop.f32.mrf.mxu0  ;;  %v7559_v32 = vld [vmem:[%s13293_s4 + $0x178] sm:$0xff] }
 0x19c   : > { %v11410_v38 = vadd.f32 %v8895_v31, %v11193_v59  ;;  %v11412_v37 = vpop.f32.mrf.mxu1  ;;  %9406 = vmatprep.subr.mxu1 %v7559_v32 }
 0x19d   : > { %13337 = vst [vmem:[#allocation30_spill] sm:$0xff] %v11412_v37  ;;  %v11414_v9 = vpop.f32.mrf.mxu0  ;;  %9407 = vmatpush3.msra.mxu1 %v7559_v32 }
 0x19e   : > { %13336 = vst [vmem:[#allocation29_spill] sm:$0xff] %v11410_v38  ;;  %13338 = vst [vmem:[#allocation31_spill] sm:$0xff] %v11414_v9  ;;  %v11416_v33 = vpop.f32.mrf.mxu1 }
 0x19f   : > { %13339 = vst [vmem:[#allocation32_spill] sm:$0xff] %v11416_v33  ;;  %v8898_v17 = vpop.f32.mrf.mxu0 }
 0x1a0   : > { %v11419_v16 = vadd.f32 %v8898_v17, %v11204_v4  ;;  %v11421_v46 = vpop.f32.mrf.mxu1  ;;  %v7558_v4 = vld [vmem:[%s13293_s4 + $0x170] sm:$0xff] }
 0x1a1   : > { %13341 = vst [vmem:[#allocation34_spill] sm:$0xff] %v11421_v46  ;;  %v11426_v55 = vpop.f32.mrf.mxu0  ;;  %9408 = vmatprep.subr.mxu1 %v7558_v4 }
 0x1a2   : > { %13340 = vst [vmem:[#allocation33_spill] sm:$0xff] %v11419_v16  ;;  %13342 = vst [vmem:[#allocation35_spill] sm:$0xff] %v11426_v55  ;;  %v11428_v59 = vpop.f32.mrf.mxu1  ;;  %9409 = vmatpush3.msra.mxu1 %v7558_v4 }
 0x1a3   : > { %13343 = vst [vmem:[#allocation36_spill] sm:$0xff] %v11428_v59  ;;  %v8901_v31 = vpop.f32.mrf.mxu0 }
 0x1a4   : > { %v11431_v37 = vadd.f32 %v8901_v31, %v11215_v56  ;;  %v11433_v33 = vpop.f32.mrf.mxu1  ;;  %v7557_v56 = vld [vmem:[%s13293_s4 + $0x168] sm:$0xff] }
 0x1a5   : > { %13345 = vst [vmem:[#allocation38_spill] sm:$0xff] %v11433_v33  ;;  %v11438_v17 = vpop.f32.mrf.mxu0  ;;  %9410 = vmatprep.subr.mxu1 %v7557_v56 }
 0x1a6   : > { %13344 = vst [vmem:[#allocation37_spill] sm:$0xff] %v11431_v37  ;;  %13346 = vst [vmem:[#allocation39_spill] sm:$0xff] %v11438_v17  ;;  %v11440_v46 = vpop.f32.mrf.mxu1  ;;  %9411 = vmatpush3.msra.mxu1 %v7557_v56  ;;  %v7575_v56 = vld [vmem:[%s13293_s4 + $0x1f8] sm:$0xff] }
 0x1a7   : > { %13347 = vst [vmem:[#allocation40_spill] sm:$0xff] %v11440_v46  ;;  %v8904_v16 = vpop.f32.mrf.mxu0  ;;  %9486 = vmatprep.subr.mxu0 %v7575_v56 }
 0x1a8   : > { %v11443_v59 = vadd.f32 %v8904_v16, %v11227_v58  ;;  %v11445_v32 = vpop.f32.mrf.mxu1  ;;  %v7556_v58 = vld [vmem:[%s13293_s4 + $0x160] sm:$0xff]  ;;  %9487 = vmatpush3.msra.mxu0 %v7575_v56 }
 0x1a9   : > { %13349 = vst [vmem:[#allocation42_spill] sm:$0xff] %v11445_v32  ;;  %v11450_v31 = vpop.f32.mrf.mxu0  ;;  %9412 = vmatprep.subr.mxu1 %v7556_v58 }
 0x1aa   : > { %13348 = vst [vmem:[#allocation41_spill] sm:$0xff] %v11443_v59  ;;  %13350 = vst [vmem:[#allocation43_spill] sm:$0xff] %v11450_v31  ;;  %v11452_v33 = vpop.f32.mrf.mxu1  ;;  %9413 = vmatpush3.msra.mxu1 %v7556_v58  ;;  %v7574_v58 = vld [vmem:[%s13293_s4 + $0x1f0] sm:$0xff] }
 0x1ab   : > { %13351 = vst [vmem:[#allocation44_spill] sm:$0xff] %v11452_v33  ;;  %v8907_v37 = vpop.f32.mrf.mxu0  ;;  %9488 = vmatprep.subr.mxu0 %v7574_v58 }
 0x1ac   : > { %v11455_v46 = vadd.f32 %v8907_v37, %v11237_v0  ;;  %v11457_v4 = vpop.f32.mrf.mxu1  ;;  %9489 = vmatpush3.msra.mxu0 %v7574_v58 }
 0x1ad   : > { %13353 = vst [vmem:[#allocation46_spill] sm:$0xff] %v11457_v4  ;;  %v11462_v16 = vpop.f32.mrf.mxu0  ;;  %v7555_v4 = vld [vmem:[%s13293_s4 + $0x158] sm:$0xff] }
 0x1ae   : > { %13352 = vst [vmem:[#allocation45_spill] sm:$0xff] %v11455_v46  ;;  %13354 = vst [vmem:[#allocation47_spill] sm:$0xff] %v11462_v16  ;;  %v11464_v32 = vpop.f32.mrf.mxu1  ;;  %9414 = vmatprep.subr.mxu1 %v7555_v4 }
 0x1af   : > { %13355 = vst [vmem:[#allocation48_spill] sm:$0xff] %v11464_v32  ;;  %v8910_v33 = vpop.f32.mrf.mxu0  ;;  %9415 = vmatpush3.msra.mxu1 %v7555_v4  ;;  %v7572_v4 = vld [vmem:[%s13293_s4 + $0x1e0] sm:$0xff] }
 0x1b0   : > { %v11470_v0 = vadd.f32 %v8910_v33, %v11253_v26  ;;  %v11472_v37 = vpop.f32.mrf.mxu1  ;;  %v7573_v26 = vld [vmem:[%s13293_s4 + $0x1e8] sm:$0xff] }
 0x1b1   : > { %13357 = vst [vmem:[#allocation50_spill] sm:$0xff] %v11472_v37  ;;  %v11480_v32 = vpop.f32.mrf.mxu0  ;;  %9490 = vmatprep.subr.mxu0 %v7573_v26 }
 0x1b2   : > { %13356 = vst [vmem:[#allocation49_spill] sm:$0xff] %v11470_v0  ;;  %13358 = vst [vmem:[#allocation51_spill] sm:$0xff] %v11480_v32  ;;  %v11482_v46 = vpop.f32.mrf.mxu1  ;;  %v7554_v0 = vld [vmem:[%s13293_s4 + $0x150] sm:$0xff]  ;;  %9491 = vmatpush3.msra.mxu0 %v7573_v26  ;;  %v7545_v32 = vld [vmem:[%s13293_s4 + $0x108] sm:$0xff] }
 0x1b3   : > { %13359 = vst [vmem:[#allocation52_spill] sm:$0xff] %v11482_v46  ;;  %v8913_v33 = vpop.f32.mrf.mxu0  ;;  %9416 = vmatprep.subr.mxu1 %v7554_v0  ;;  %9492 = vmatprep.subr.mxu0 %v7572_v4 }
 0x1b4   : > { %v11488_v56 = vadd.f32 %v8913_v33, %v11269_v27  ;;  %v11490_v37 = vpop.f32.mrf.mxu1  ;;  %9417 = vmatpush3.msra.mxu1 %v7554_v0  ;;  %9493 = vmatpush3.msra.mxu0 %v7572_v4  ;;  %v7571_v27 = vld [vmem:[%s13293_s4 + $0x1d8] sm:$0xff]  ;;  %v7570_v0 = vld [vmem:[%s13293_s4 + $0x1d0] sm:$0xff] }
 0x1b5   : > { %13361 = vst [vmem:[#allocation54_spill] sm:$0xff] %v11490_v37  ;;  %v11498_v58 = vpop.f32.mrf.mxu0  ;;  %9494 = vmatprep.subr.mxu0 %v7571_v27 }
 0x1b6   : > { %13360 = vst [vmem:[#allocation53_spill] sm:$0xff] %v11488_v56  ;;  %13362 = vst [vmem:[#allocation55_spill] sm:$0xff] %v11498_v58  ;;  %v11500_v46 = vpop.f32.mrf.mxu1  ;;  %v7553_v56 = vld [vmem:[%s13293_s4 + $0x148] sm:$0xff]  ;;  %9495 = vmatpush3.msra.mxu0 %v7571_v27 }
 0x1b7   : > { %13363 = vst [vmem:[#allocation56_spill] sm:$0xff] %v11500_v46  ;;  %v8916_v33 = vpop.f32.mrf.mxu0  ;;  %9418 = vmatprep.subr.mxu1 %v7553_v56  ;;  %9496 = vmatprep.subr.mxu0 %v7570_v0 }
 0x1b8   : > { %v11506_v26 = vadd.f32 %v8916_v33, %v11285_v50  ;;  %v11508_v37 = vpop.f32.mrf.mxu1  ;;  %9419 = vmatpush3.msra.mxu1 %v7553_v56  ;;  %9497 = vmatpush3.msra.mxu0 %v7570_v0  ;;  %v7569_v50 = vld [vmem:[%s13293_s4 + $0x1c8] sm:$0xff]  ;;  %v7568_v56 = vld [vmem:[%s13293_s4 + $0x1c0] sm:$0xff] }
 0x1b9   : > { %13365 = vst [vmem:[#allocation58_spill] sm:$0xff] %v11508_v37  ;;  %v11516_v4 = vpop.f32.mrf.mxu0  ;;  %9498 = vmatprep.subr.mxu0 %v7569_v50 }
 0x1ba   : > { %13364 = vst [vmem:[#allocation57_spill] sm:$0xff] %v11506_v26  ;;  %13366 = vst [vmem:[#allocation59_spill] sm:$0xff] %v11516_v4  ;;  %v11518_v46 = vpop.f32.mrf.mxu1  ;;  %v7552_v26 = vld [vmem:[%s13293_s4 + $0x140] sm:$0xff]  ;;  %9499 = vmatpush3.msra.mxu0 %v7569_v50  ;;  %v7546_v4 = vld [vmem:[%s13293_s4 + $0x110] sm:$0xff] }
 0x1bb   : > { %13367 = vst [vmem:[#allocation60_spill] sm:$0xff] %v11518_v46  ;;  %v8919_v33 = vpop.f32.mrf.mxu0  ;;  %9420 = vmatprep.subr.mxu1 %v7552_v26  ;;  %9500 = vmatprep.subr.mxu0 %v7568_v56 }
 0x1bc   : > { %v11524_v27 = vadd.f32 %v8919_v33, %v11302_v48  ;;  %v11526_v37 = vpop.f32.mrf.mxu1  ;;  %9421 = vmatpush3.msra.mxu1 %v7552_v26  ;;  %9501 = vmatpush3.msra.mxu0 %v7568_v56  ;;  %v7567_v48 = vld [vmem:[%s13293_s4 + $0x1b8] sm:$0xff]  ;;  %v7566_v26 = vld [vmem:[%s13293_s4 + $0x1b0] sm:$0xff] }
 0x1bd   : > { %13369 = vst [vmem:[#allocation62_spill] sm:$0xff] %v11526_v37  ;;  %v11534_v0 = vpop.f32.mrf.mxu0  ;;  %9502 = vmatprep.subr.mxu0 %v7567_v48 }
 0x1be   : > { %13368 = vst [vmem:[#allocation61_spill] sm:$0xff] %v11524_v27  ;;  %13370 = vst [vmem:[#allocation63_spill] sm:$0xff] %v11534_v0  ;;  %v11536_v46 = vpop.f32.mrf.mxu1  ;;  %v7551_v27 = vld [vmem:[%s13293_s4 + $0x138] sm:$0xff]  ;;  %9503 = vmatpush3.msra.mxu0 %v7567_v48  ;;  %v7560_v0 = vld [vmem:[%s13293_s4 + $0x180] sm:$0xff] }
 0x1bf   : > { %13371 = vst [vmem:[#allocation64_spill] sm:$0xff] %v11536_v46  ;;  %v8922_v33 = vpop.f32.mrf.mxu0  ;;  %9422 = vmatprep.subr.mxu1 %v7551_v27  ;;  %9504 = vmatprep.subr.mxu0 %v7566_v26 }
 0x1c0   : > { %v11542_v50 = vadd.f32 %v8922_v33, %v11319_v25  ;;  %v11544_v37 = vpop.f32.mrf.mxu1  ;;  %9423 = vmatpush3.msra.mxu1 %v7551_v27  ;;  %9505 = vmatpush3.msra.mxu0 %v7566_v26  ;;  %v7565_v25 = vld [vmem:[%s13293_s4 + $0x1a8] sm:$0xff]  ;;  %v7564_v27 = vld [vmem:[%s13293_s4 + $0x1a0] sm:$0xff] }
 0x1c1   : > { %13373 = vst [vmem:[#allocation66_spill] sm:$0xff] %v11544_v37  ;;  %v11552_v56 = vpop.f32.mrf.mxu0  ;;  %9506 = vmatprep.subr.mxu0 %v7565_v25 }
 0x1c2   : > { %13372 = vst [vmem:[#allocation65_spill] sm:$0xff] %v11542_v50  ;;  %13374 = vst [vmem:[#allocation67_spill] sm:$0xff] %v11552_v56  ;;  %v11554_v46 = vpop.f32.mrf.mxu1  ;;  %v7550_v50 = vld [vmem:[%s13293_s4 + $0x130] sm:$0xff]  ;;  %9507 = vmatpush3.msra.mxu0 %v7565_v25  ;;  %v7548_v56 = vld [vmem:[%s13293_s4 + $0x120] sm:$0xff] }
 0x1c3   : > { %13375 = vst [vmem:[#allocation68_spill] sm:$0xff] %v11554_v46  ;;  %v8925_v33 = vpop.f32.mrf.mxu0  ;;  %9424 = vmatprep.subr.mxu1 %v7550_v50  ;;  %9508 = vmatprep.subr.mxu0 %v7564_v27 }
 0x1c4   : > { %v11560_v48 = vadd.f32 %v8925_v33, %v11335_v2  ;;  %v11562_v37 = vpop.f32.mrf.mxu1  ;;  %9425 = vmatpush3.msra.mxu1 %v7550_v50  ;;  %9509 = vmatpush3.msra.mxu0 %v7564_v27  ;;  %v7563_v2 = vld [vmem:[%s13293_s4 + $0x198] sm:$0xff] }
 0x1c5   : > { %13377 = vst [vmem:[#allocation70_spill] sm:$0xff] %v11562_v37  ;;  %v11570_v26 = vpop.f32.mrf.mxu0  ;;  %9510 = vmatprep.subr.mxu0 %v7563_v2  ;;  %v7549_v37 = vld [vmem:[%s13293_s4 + $0x128] sm:$0xff] }
 0x1c6   : > { %13376 = vst [vmem:[#allocation69_spill] sm:$0xff] %v11560_v48  ;;  %13378 = vst [vmem:[#allocation71_spill] sm:$0xff] %v11570_v26  ;;  %v11572_v46 = vpop.f32.mrf.mxu1  ;;  %9511 = vmatpush3.msra.mxu0 %v7563_v2  ;;  %9426 = vmatprep.subr.mxu1 %v7549_v37  ;;  %v7561_v48 = vld [vmem:[%s13293_s4 + $0x188] sm:$0xff] }
 0x1c7   : > { %13379 = vst [vmem:[#allocation72_spill] sm:$0xff] %v11572_v46  ;;  %v11577_v33 = vpop.f32.mrf.mxu0  ;;  %v7562_v46 = vld [vmem:[%s13293_s4 + $0x190] sm:$0xff]  ;;  %9427 = vmatpush3.msra.mxu1 %v7549_v37 }
 0x1c8   : > { %v11579_v25 = vpop.f32.mrf.mxu1  ;;  %9512 = vmatprep.subr.mxu0 %v7562_v46  ;;  %9428 = vmatprep.subr.mxu1 %v7548_v56 }
 0x1c9   : > { %v11587_v50 = vpop.f32.mrf.mxu0  ;;  %9513 = vmatpush3.msra.mxu0 %v7562_v46  ;;  %9429 = vmatpush3.msra.mxu1 %v7548_v56  ;;  %v7547_v46 = vld [vmem:[%s13293_s4 + $0x118] sm:$0xff] }
 0x1ca   : > { %v11589_v27 = vpop.f32.mrf.mxu1  ;;  %9514 = vmatprep.subr.mxu0 %v7561_v48  ;;  %9430 = vmatprep.subr.mxu1 %v7547_v46 }
 0x1cb   : > { %v11594_v26 = vpop.f32.mrf.mxu0  ;;  %9515 = vmatpush3.msra.mxu0 %v7561_v48  ;;  %9431 = vmatpush3.msra.mxu1 %v7547_v46 }
 0x1cc   : > { %v11596_v2 = vpop.f32.mrf.mxu1  ;;  %9516 = vmatprep.subr.mxu0 %v7560_v0  ;;  %9432 = vmatprep.subr.mxu1 %v7546_v4 }
 0x1cd   : > { %v11604_v37 = vpop.f32.mrf.mxu0  ;;  %9517 = vmatpush3.msra.mxu0 %v7560_v0  ;;  %9433 = vmatpush3.msra.mxu1 %v7546_v4  ;;  %v7544_v0 = vld [vmem:[%s13293_s4 + $0x100] sm:$0xff]  ;;  %v11635_v4 = vld [vmem:[%s13293_s4 + $0x278] sm:$0xff] }
 0x1ce   : > { %v11614_v48 = vpop.f32.mrf.mxu1  ;;  %9434 = vmatprep.subr.mxu1 %v7545_v32  ;;  %13383 = vst [vmem:[#allocation76_spill] sm:$0xff] %v11635_v4 }
 0x1cf   : > { %v11612_v58 = vpop.f32.mrf.mxu0  ;;  %9435 = vmatpush3.msra.mxu1 %v7545_v32 }
 0x1d0   : > { %v11626_v59 = vpop.f32.mrf.mxu1  ;;  %9436 = vmatprep.subr.mxu1 %v7544_v0 }
 0x1d1   : > { %v11619_v56 = vpop.f32.mrf.mxu0  ;;  %9437 = vmatpush3.msra.mxu1 %v7544_v0 }
 0x1d2   : > { %v11637_v17 = vpop.f32.mrf.mxu1  ;;  %9566 = vmatprep.subr.mxu1 %v11635_v4 }
 0x1d3   : > { %v11621_v16 = vpop.f32.mrf.mxu0  ;;  %13384 = vst [vmem:[#allocation77_spill] sm:$0xff] %v11637_v17 }
 0x1d4   : > { %13380 = vst [vmem:[#allocation73_spill] sm:$0xff] %v11621_v16  ;;  %v11644_v32 = vpop.f32.mrf.mxu1 }
 0x1d5   : > { %v11628_v31 = vpop.f32.mrf.mxu0  ;;  %13387 = vst [vmem:[#allocation80_spill] sm:$0xff] %v11644_v32 }
 0x1d6   : > { %13381 = vst [vmem:[#allocation74_spill] sm:$0xff] %v11628_v31 }
 0x1d7   : > { %v11630_v46 = vpop.f32.mrf.mxu0 }
 0x1d8   : > { %13382 = vst [vmem:[#allocation75_spill] sm:$0xff] %v11630_v46  ;;  %v11650_v46 = vpop.f32.mrf.mxu1 }
 0x1d9   : > { %v11640_v55 = vpop.f32.mrf.mxu0  ;;  %13390 = vst [vmem:[#allocation83_spill] sm:$0xff] %v11650_v46 }
 0x1da   : > { %13385 = vst [vmem:[#allocation78_spill] sm:$0xff] %v11640_v55  ;;  %v11656_v16 = vpop.f32.mrf.mxu1 }
 0x1db   : > { %v11642_v38 = vpop.f32.mrf.mxu0 }
 0x1dc   : > { %13386 = vst [vmem:[#allocation79_spill] sm:$0xff] %v11642_v38  ;;  %v11662_v55 = vpop.f32.mrf.mxu1 }
 0x1dd   : > { %v11646_v9 = vpop.f32.mrf.mxu0  ;;  %13395 = vst [vmem:[#allocation88_spill] sm:$0xff] %v11662_v55  ;;  %v1804_v55 = vadd.f32 %v11149_v1, %v11145_v3  ;;  %v2545_v3 = vadd.f32 %v11345_v57, %v11343_v47 }
 0x1de   : > { %13388 = vst [vmem:[#allocation81_spill] sm:$0xff] %v11646_v9  ;;  %v11668_v9 = vpop.f32.mrf.mxu1 }
 0x1df   : > { %v11648_v0 = vpop.f32.mrf.mxu0  ;;  %13398 = vst [vmem:[#allocation91_spill] sm:$0xff] %v11668_v9 }
 0x1e0   : > { %13389 = vst [vmem:[#allocation82_spill] sm:$0xff] %v11648_v0 }
 0x1e1   : > { %v11652_v31 = vpop.f32.mrf.mxu0 }
 0x1e2   : > { %13391 = vst [vmem:[#allocation84_spill] sm:$0xff] %v11652_v31  ;;  %v11674_v31 = vpop.f32.mrf.mxu1 }
 0x1e3   : > { %v11654_v7 = vpop.f32.mrf.mxu0  ;;  %13401 = vst [vmem:[#allocation94_spill] sm:$0xff] %v11674_v31 }
 0x1e4   : > { %13392 = vst [vmem:[#allocation85_spill] sm:$0xff] %v11654_v7 }
 0x1e5   : > { %v11658_v17 = vpop.f32.mrf.mxu0 }
 0x1e6   : > { %13393 = vst [vmem:[#allocation86_spill] sm:$0xff] %v11658_v17  ;;  %v11679_v17 = vld [vmem:[%s13293_s4 + $0x2f8] sm:$0xff] }
 0x1e7   : > { %v11660_v4 = vpop.f32.mrf.mxu0  ;;  %13402 = vst [vmem:[#allocation95_spill] sm:$0xff] %v11679_v17  ;;  %9646 = vmatprep.subr.mxu0 %v11679_v17 }
 0x1e8   : > { %13394 = vst [vmem:[#allocation87_spill] sm:$0xff] %v11660_v4 }
 0x1e9   : > { %v11664_v38 = vpop.f32.mrf.mxu0 }
 0x1ea   : > { %13396 = vst [vmem:[#allocation89_spill] sm:$0xff] %v11664_v38 }
 0x1eb   : > { %v11666_v32 = vpop.f32.mrf.mxu0 }
 0x1ec   : > { %13397 = vst [vmem:[#allocation90_spill] sm:$0xff] %v11666_v32  ;;  %v11686_v32 = vpop.f32.mrf.mxu1 }
 0x1ed   : > { %v11670_v0 = vpop.f32.mrf.mxu0  ;;  %13405 = vst [vmem:[#allocation98_spill] sm:$0xff] %v11686_v32 }
 0x1ee   : > { %13399 = vst [vmem:[#allocation92_spill] sm:$0xff] %v11670_v0 }
 0x1ef   : > { %v11672_v46 = vpop.f32.mrf.mxu0 }
 0x1f0   : > { %13400 = vst [vmem:[#allocation93_spill] sm:$0xff] %v11672_v46  ;;  %v11692_v46 = vpop.f32.mrf.mxu1 }
 0x1f1   : > { %v11681_v4 = vpop.f32.mrf.mxu0 }
 0x1f2   : > { %13403 = vst [vmem:[#allocation96_spill] sm:$0xff] %v11681_v4  ;;  %v11700_v4 = vpop.f32.mrf.mxu1 }
 0x1f3   : > { %v11684_v38 = vpop.f32.mrf.mxu0 }
 0x1f4   : > { %13404 = vst [vmem:[#allocation97_spill] sm:$0xff] %v11684_v38  ;;  %v2174_v38 = vadd.f32 %v11350_v18, %v1804_v55  ;;  %v11715_v1 = vpop.f32.mrf.mxu1  ;;  %v1088_v55 = vadd.f32 %v11111_v54, %v11109_v40  ;;  %v1810_v40 = vadd.f32 %v11173_v44, %v11169_v52  ;;  %v1812_v54 = vadd.f32 %v11184_v39, %v11180_v34  ;;  %v13410_v44 = vld [vmem:[#allocation9_spill] sm:$0xff]  ;;  %v13411_v39 = vld [vmem:[#allocation22_spill] sm:$0xff] }
 0x1f5   : > { %v11688_v7 = vpop.f32.mrf.mxu0  ;;  %v11759_v52 = vadd.f32 %v11217_v41, %v11213_v10  ;;  %v13416_v10 = vld [vmem:[#allocation7_spill] sm:$0xff] }
 0x1f6   : > { %13406 = vst [vmem:[#allocation99_spill] sm:$0xff] %v11688_v7  ;;  %v1084_v7 = vadd.f32 %v11093_v11, %v11091_v5  ;;  %v11729_v11 = vadd.f32 %v11141_v15, %v11138_v63  ;;  %v2547_v63 = vadd.f32 %v11360_v24, %v11358_v20  ;;  %v13417_v20 = vld [vmem:[#allocation13_spill] sm:$0xff] }
 0x1f7   : > { %v11690_v0 = vpop.f32.mrf.mxu0 }
 0x1f8   : > { %13407 = vst [vmem:[#allocation100_spill] sm:$0xff] %v11690_v0  ;;  %v1082_v0 = vadd.f32 %v11084_v49, %v11082_v21  ;;  %v1090_v21 = vadd.f32 %v11121_v29, %v11119_v43  ;;  %v1092_v49 = vadd.f32 %v11133_v12, %v11131_v13  ;;  %v11745_v13 = vadd.f32 %v11195_v35, %v11191_v14 }
 0x1f9   : > { %v11694_v31 = vpop.f32.mrf.mxu0  ;;  %v1454_v12 = vadd.f32 %v11251_v23, %v1084_v7  ;;  %v2918_v18 = vadd.f32 %v11594_v26, %v2547_v63  ;;  %v13419_v7 = vld [vmem:[#allocation21_spill] sm:$0xff]  ;;  %v13423_v63 = vld [vmem:[#allocation12_spill] sm:$0xff] }
 0x1fa   : > { %v1452_v43 = vadd.f32 %v11235_v62, %v1082_v0  ;;  %v13412_v62 = vld [vmem:[#allocation11_spill] sm:$0xff]  ;;  %v1460_v24 = vadd.f32 %v13417_v20, %v1090_v21  ;;  %v13421_v21 = vld [vmem:[#allocation10_spill] sm:$0xff]  ;;  %v2182_v20 = vadd.f32 %v11405_v42, %v1812_v54 }
 0x1fb   : > { %v11696_v9 = vpop.f32.mrf.mxu0  ;;  %v1458_v23 = vadd.f32 %v13412_v62, %v1088_v55  ;;  %v13433_v42 = vld [vmem:[#allocation74_spill] sm:$0xff] }
 0x1fc   : > { %13408 = vst [vmem:[#allocation101_spill] sm:$0xff] %v11696_v9  ;;  %v1806_v9 = vadd.f32 %v11157_v61, %v11153_v19  ;;  %v2544_v19 = vadd.f32 %v11352_v51, %v2174_v38  ;;  %v11774_v41 = vadd.f32 %v13416_v10, %v1452_v43 }
 0x1fd   : > { %v11702_v17 = vpop.f32.mrf.mxu0 }
 0x1fe   : > { %13409 = vst [vmem:[#allocation102_spill] sm:$0xff] %v11702_v17  ;;  %v1086_v17 = vadd.f32 %v11102_v36, %v11100_v30  ;;  %v2176_v61 = vadd.f32 %v11368_v28, %v1806_v9  ;;  %v2916_v30 = vadd.f32 %v11577_v33, %v2545_v3  ;;  %v1808_v36 = vadd.f32 %v11165_v8, %v11161_v22  ;;  %v11751_v22 = vpop.f32.mrf.mxu1  ;;  %v13413_v28 = vld [vmem:[#allocation19_spill] sm:$0xff]  ;;  %v13418_v9 = vld [vmem:[#allocation20_spill] sm:$0xff]  ;;  %v11782_v33 = vld [vmem:[%s13291_s2] ss:$0 sm:$0xff] }
 0x1ff   : > { %v11705_v32 = vpop.f32.mrf.mxu0  ;;  %v2915_v15 = vadd.f32 %v11587_v50, %v2544_v19  ;;  %v11755_v8 = vadd.f32 %v11206_v60, %v11202_v53  ;;  %v13414_v53 = vld [vmem:[#allocation5_spill] sm:$0xff]  ;;  %v13415_v60 = vld [vmem:[#allocation6_spill] sm:$0xff]  ;;  %v2549_v38 = vadd.f32 %v13419_v7, %v13418_v9 }
 0x200   : > { %v1456_v34 = vadd.f32 %v13410_v44, %v1086_v17  ;;  %v2178_v14 = vadd.f32 %v13411_v39, %v1808_v36  ;;  %v2546_v47 = vadd.f32 %v13413_v28, %v2176_v61  ;;  %v3286_v57 = vadd.f32 %v11579_v25, %v2916_v30  ;;  %v13420_v25 = vld [vmem:[#allocation8_spill] sm:$0xff]  ;;  %v11789_v3 = vpop.f32.mrf.mxu1  ;;  %v13422_v61 = vld [vmem:[#allocation23_spill] sm:$0xff]  ;;  %v13424_v39 = vld [vmem:[#allocation14_spill] sm:$0xff] }
 0x201   : > { %v11725_v5 = vpop.f32.mrf.mxu0  ;;  %v11771_v51 = vadd.f32 %v13415_v60, %v13414_v53  ;;  %v11785_v26 = vadd.f32 %v13420_v25, %v1454_v12  ;;  %v3285_v50 = vadd.f32 %v11589_v27, %v2915_v15  ;;  %v2180_v36 = vadd.f32 %v11395_v6, %v1810_v40  ;;  %v11800_v12 = vld [vmem:[%s13292_s3] ss:$0 sm:$0xff]  ;;  %v13425_v6 = vld [vmem:[#allocation15_spill] sm:$0xff] }
 0x202   : > { %v2917_v0 = vadd.f32 %v11604_v37, %v2546_v47  ;;  %v11792_v19 = vadd.f32 %v13421_v21, %v1456_v34  ;;  %v2548_v30 = vadd.f32 %v13422_v61, %v2178_v14  ;;  %v2920_v43 = vadd.f32 %v11612_v58, %v2549_v38  ;;  %v13426_v58 = vld [vmem:[#allocation24_spill] sm:$0xff]  ;;  %v13427_v60 = vld [vmem:[#allocation25_spill] sm:$0xff] }
 0x203   : > { %v11741_v29 = vpop.f32.mrf.mxu0  ;;  %v11803_v37 = vadd.f32 %v13423_v63, %v1458_v23  ;;  %v3288_v15 = vadd.f32 %v11596_v2, %v2918_v18  ;;  %v11808_v14 = vadd.f32 %v13424_v39, %v1460_v24  ;;  %v1462_v40 = vadd.f32 %v13425_v6, %v1092_v49  ;;  %v11815_v23 = vpop.f32.mrf.mxu1  ;;  %v13428_v24 = vld [vmem:[#allocation73_spill] sm:$0xff]  ;;  %v13436_v6 = vld [vmem:[#allocation80_spill] sm:$0xff] }
 0x204   : > { %v2551_v62 = vadd.f32 %v13426_v58, %v11391_v45  ;;  %v2919_v28 = vadd.f32 %v11619_v56, %v2548_v30  ;;  %v2550_v10 = vadd.f32 %v13427_v60, %v2180_v36  ;;  %v3290_v49 = vadd.f32 %v11626_v59, %v2920_v43  ;;  %v13432_v21 = vld [vmem:[#allocation77_spill] sm:$0xff]  ;;  %v13437_v58 = vld [vmem:[#allocation75_spill] sm:$0xff] }
 0x205   : > { %v11763_v35 = vpop.f32.mrf.mxu0  ;;  %v11832_v30 = vpop.f32.mrf.mxu1 }
 0x206   : > { %v2922_v45 = vadd.f32 %v13428_v24, %v2551_v62  ;;  %v3289_v61 = vadd.f32 %v13432_v21, %v2919_v28  ;;  %v2921_v54 = vadd.f32 %v13433_v42, %v2550_v10  ;;  %v13439_v10 = vld [vmem:[#allocation29_spill] sm:$0xff]  ;;  %v13444_v21 = vld [vmem:[#allocation35_spill] sm:$0xff] }
 0x207   : > { %v9200_v17 = vpop.f32.mrf.mxu0 }
 0x208   : > { %v3656_v55 = vadd.f32 %v9200_v17, %v3286_v57  ;;  %v3287_v57 = vadd.f32 %v11614_v48, %v2917_v0  ;;  %v13429_v17 = vld [vmem:[#allocation16_spill] sm:$0xff]  ;;  %v13431_v0 = vld [vmem:[#allocation27_spill] sm:$0xff] }
 0x209   : > { %v3464_v27 = vpop.f32.mrf.mxu0  ;;  %v11826_v25 = vadd.f32 %v13429_v17, %v1462_v40  ;;  %v3292_v40 = vadd.f32 %v13436_v6, %v2922_v45  ;;  %v13442_v45 = vld [vmem:[#allocation78_spill] sm:$0xff] }
 0x20a   : > { %v3759_v44 = vmul.f32 %v11782_v33, %v3656_v55  ;;  %v3655_v34 = vadd.f32 %v3464_v27, %v3285_v50  ;;  %v13430_v50 = vld [vmem:[#allocation26_spill] sm:$0xff] }
 0x20b   : > { %v9203_v47 = vpop.f32.mrf.mxu0  ;;  %v2553_v55 = vadd.f32 %v13431_v0, %v13430_v50 }
 0x20c   : > { %v3798_v2 = vadd.f32 %v11800_v12, %v3759_v44  ;;  %v3758_v18 = vmul.f32 %v11782_v33, %v3655_v34  ;;  %v3658_v53 = vadd.f32 %v9203_v47, %v3288_v15  ;;  %v13434_v15 = vld [vmem:[#allocation28_spill] sm:$0xff]  ;;  %v13435_v34 = vld [vmem:[#allocation31_spill] sm:$0xff] }
 0x20d   : > { %v3474_v9 = vpop.f32.mrf.mxu0  ;;  %v2552_v44 = vadd.f32 %v13434_v15, %v2182_v20  ;;  %v2184_v39 = vadd.f32 %v13435_v34, %v11745_v13  ;;  %v2924_v62 = vadd.f32 %v13437_v58, %v2553_v55  ;;  %v13440_v20 = vld [vmem:[#allocation30_spill] sm:$0xff]  ;;  %v13441_v13 = vld [vmem:[#allocation83_spill] sm:$0xff]  ;;  %v13443_v55 = vld [vmem:[#allocation32_spill] sm:$0xff] }
 0x20e   : > { %v3830_v56 = vmax.f32 %v3798_v2, 0.0  ;;  %v3797_v7 = vadd.f32 %v11800_v12, %v3758_v18  ;;  %v3761_v48 = vmul.f32 %v11782_v33, %v3658_v53  ;;  %v3657_v38 = vadd.f32 %v3474_v9, %v3287_v57  ;;  %v13438_v53 = vld [vmem:[#allocation17_spill] sm:$0xff]  ;;  %v13446_v15 = vld [vmem:[#allocation18_spill] sm:$0xff] }
 0x20f   : > { %v9206_v59 = vpop.f32.mrf.mxu0  ;;  %v1464_v60 = vadd.f32 %v13438_v53, %v11729_v11  ;;  %v3291_v24 = vadd.f32 %v13441_v13, %v2921_v54  ;;  %v2923_v9 = vadd.f32 %v13442_v45, %v2552_v44  ;;  %v2554_v11 = vadd.f32 %v13443_v55, %v2184_v39  ;;  %v13445_v54 = vld [vmem:[#allocation79_spill] sm:$0xff]  ;;  %v13447_v34 = vld [vmem:[#allocation33_spill] sm:$0xff]  ;;  %v13448_v39 = vld [vmem:[#allocation34_spill] sm:$0xff] }
 0x210   : > { %3863 = vst [vmem:[#allocation3 + $0x21] sm:$0xff] %v3830_v56  ;;  %v3829_v36 = vmax.f32 %v3797_v7, 0.0  ;;  %v3800_v43 = vadd.f32 %v11800_v12, %v3761_v48  ;;  %v3760_v27 = vmul.f32 %v11782_v33, %v3657_v38  ;;  %v3660_v63 = vadd.f32 %v9206_v59, %v3290_v49  ;;  %v11849_v48 = vpop.f32.mrf.mxu1  ;;  %v13453_v13 = vld [vmem:[#allocation91_spill] sm:$0xff]  ;;  %v13454_v45 = vld [vmem:[#allocation82_spill] sm:$0xff] }
 0x211   : > { %v3484_v28 = vpop.f32.mrf.mxu0  ;;  %v2555_v49 = vadd.f32 %v13440_v20, %v13439_v10  ;;  %v3294_v42 = vadd.f32 %v11656_v16, %v2924_v62  ;;  %v11861_v44 = vadd.f32 %v13446_v15, %v1464_v60  ;;  %v2557_v6 = vadd.f32 %v13448_v39, %v13447_v34  ;;  %v13450_v16 = vld [vmem:[#allocation81_spill] sm:$0xff]  ;;  %v13451_v60 = vld [vmem:[#allocation36_spill] sm:$0xff]  ;;  %v13452_v20 = vld [vmem:[#allocation39_spill] sm:$0xff] }
 0x212   : > { %3862 = vst [vmem:[#allocation3 + $0x19] sm:$0xff] %v3829_v36  ;;  %v3832_v47 = vmax.f32 %v3800_v43, 0.0  ;;  %v3799_v57 = vadd.f32 %v11800_v12, %v3760_v27  ;;  %v3763_v2 = vmul.f32 %v11782_v33, %v3660_v63  ;;  %v3659_v18 = vadd.f32 %v3484_v28, %v3289_v61  ;;  %9361 = vmatprep.mubr.f32.mxu0 %v3829_v36  ;;  %v11867_v28 = vpop.f32.mrf.mxu1  ;;  %v13459_v39 = vld [vmem:[#allocation40_spill] sm:$0xff] }
 0x213   : > { %v9209_v7 = vpop.f32.mrf.mxu0  ;;  %9362 = vmatmul.mubr.f32.gmra.mxu0 %v3830_v56  ;;  %v2186_v61 = vadd.f32 %v13444_v21, %v11755_v8  ;;  %v2926_v59 = vadd.f32 %v13445_v54, %v2555_v49  ;;  %v13449_v8 = vld [vmem:[#allocation88_spill] sm:$0xff]  ;;  %v2925_v58 = vadd.f32 %v13450_v16, %v2554_v11  ;;  %v2188_v49 = vadd.f32 %v13452_v20, %v11759_v52  ;;  %v13455_v52 = vld [vmem:[#allocation37_spill] sm:$0xff]  ;;  %v13456_v11 = vld [vmem:[#allocation38_spill] sm:$0xff] }
 0x214   : > { %3865 = vst [vmem:[#allocation3 + $0x39] sm:$0xff] %v3832_v47  ;;  %v3831_v38 = vmax.f32 %v3799_v57, 0.0  ;;  %v3802_v17 = vadd.f32 %v11800_v12, %v3763_v2  ;;  %v3762_v50 = vmul.f32 %v11782_v33, %v3659_v18  ;;  %v3662_v0 = vadd.f32 %v9209_v7, %v3292_v40  ;;  %v13458_v54 = vld [vmem:[#allocation84_spill] sm:$0xff]  ;;  %v13461_v16 = vld [vmem:[#allocation98_spill] sm:$0xff] }
 0x215   : > { %v3494_v36 = vpop.f32.mrf.mxu0  ;;  %v3293_v40 = vadd.f32 %v13449_v8, %v2923_v9  ;;  %v2556_v10 = vadd.f32 %v13451_v60, %v2186_v61  ;;  %v2928_v9 = vadd.f32 %v13454_v45, %v2557_v6  ;;  %v2559_v21 = vadd.f32 %v13456_v11, %v13455_v52  ;;  %v13457_v61 = vld [vmem:[#allocation94_spill] sm:$0xff]  ;;  %v13460_v8 = vld [vmem:[#allocation43_spill] sm:$0xff] }
 0x216   : > { %3864 = vst [vmem:[#allocation3 + $0x31] sm:$0xff] %v3831_v38  ;;  %v3834_v56 = vmax.f32 %v3802_v17, 0.0  ;;  %v3801_v43 = vadd.f32 %v11800_v12, %v3762_v50  ;;  %v3765_v27 = vmul.f32 %v11782_v33, %v3662_v0  ;;  %v3661_v63 = vadd.f32 %v3494_v36, %v3291_v24  ;;  %9364 = vmatprep.mubr.f32.mxu0 %v3831_v38  ;;  %v13465_v45 = vld [vmem:[#allocation86_spill] sm:$0xff] }
 0x217   : > { %v9212_v62 = vpop.f32.mrf.mxu0  ;;  %9365 = vmatmul.mubr.f32.gmra.mxu0 %v3832_v47  ;;  %v3296_v24 = vadd.f32 %v13453_v13, %v2926_v59  ;;  %v2927_v59 = vadd.f32 %v13458_v54, %v2556_v10  ;;  %v2558_v6 = vadd.f32 %v13459_v39, %v2188_v49  ;;  %v13464_v49 = vld [vmem:[#allocation42_spill] sm:$0xff] }
 0x218   : > { %3867 = vst [vmem:[#allocation3 + $0x51] sm:$0xff] %v3834_v56  ;;  %v3833_v57 = vmax.f32 %v3801_v43, 0.0  ;;  %v3804_v2 = vadd.f32 %v11800_v12, %v3765_v27  ;;  %v3764_v18 = vmul.f32 %v11782_v33, %v3661_v63  ;;  %v3664_v53 = vadd.f32 %v9212_v62, %v3294_v42  ;;  %v11888_v43 = vpop.f32.mrf.mxu1  ;;  %v13462_v62 = vld [vmem:[#allocation85_spill] sm:$0xff] }
 0x219   : > { %v3504_v7 = vpop.f32.mrf.mxu0  ;;  %v11876_v47 = vld [vmem:[#allocation3 + $0x18] sm:$0xff]  ;;  %v11878_v38 = vld [vmem:[#allocation3 + $0x20] sm:$0xff]  ;;  %v3295_v42 = vadd.f32 %v13457_v61, %v2925_v58  ;;  %v3298_v58 = vadd.f32 %v13461_v16, %v2928_v9  ;;  %v2929_v9 = vadd.f32 %v13465_v45, %v2558_v6  ;;  %v13471_v16 = vld [vmem:[#allocation89_spill] sm:$0xff] }
 0x21a   : > { %3866 = vst [vmem:[#allocation3 + $0x49] sm:$0xff] %v3833_v57  ;;  %v3836_v17 = vmax.f32 %v3804_v2, 0.0  ;;  %v3803_v50 = vadd.f32 %v11800_v12, %v3764_v18  ;;  %v3767_v0 = vmul.f32 %v11782_v33, %v3664_v53  ;;  %v3663_v55 = vadd.f32 %v3504_v7, %v3293_v40  ;;  %9281 = vmatprep.mubr.f32.mxu1 %v11876_v47  ;;  %v13474_v45 = vld [vmem:[#allocation90_spill] sm:$0xff] }
 0x21b   : > { %9367 = vmatprep.mubr.f32.mxu0 %v3833_v57  ;;  %v9215_v36 = vpop.f32.mrf.mxu0  ;;  %9282 = vmatmul.mubr.f32.gmra.mxu1 %v11878_v38  ;;  %v2190_v40 = vadd.f32 %v13460_v8, %v11771_v51  ;;  %v2930_v57 = vadd.f32 %v13462_v62, %v2559_v21  ;;  %v13463_v51 = vld [vmem:[#allocation41_spill] sm:$0xff]  ;;  %v13466_v21 = vld [vmem:[#allocation44_spill] sm:$0xff]  ;;  %v13470_v8 = vld [vmem:[#allocation46_spill] sm:$0xff] }
 0x21c   : > { %9368 = vmatmul.mubr.f32.gmra.mxu0 %v3834_v56  ;;  %3869 = vst [vmem:[#allocation3 + $0x69] sm:$0xff] %v3836_v17  ;;  %v3835_v27 = vmax.f32 %v3803_v50, 0.0  ;;  %v3806_v63 = vadd.f32 %v11800_v12, %v3767_v0  ;;  %v3766_v15 = vmul.f32 %v11782_v33, %v3663_v55  ;;  %v3666_v34 = vadd.f32 %v9215_v36, %v3296_v24  ;;  %v11909_v50 = vpop.f32.mrf.mxu1 }
 0x21d   : > { %v3514_v2 = vpop.f32.mrf.mxu0  ;;  %v11897_v56 = vld [vmem:[#allocation3 + $0x30] sm:$0xff]  ;;  %v11899_v18 = vld [vmem:[#allocation3 + $0x38] sm:$0xff]  ;;  %v2561_v13 = vadd.f32 %v13464_v49, %v13463_v51  ;;  %v3297_v24 = vadd.f32 %v11692_v46, %v2927_v59  ;;  %v2560_v61 = vadd.f32 %v13466_v21, %v2190_v40  ;;  %v3300_v54 = vadd.f32 %v11700_v4, %v2930_v57  ;;  %v13468_v59 = vld [vmem:[#allocation87_spill] sm:$0xff] }
 0x21e   : > { %3868 = vst [vmem:[#allocation3 + $0x61] sm:$0xff] %v3835_v27  ;;  %v3838_v53 = vmax.f32 %v3806_v63, 0.0  ;;  %v3805_v60 = vadd.f32 %v11800_v12, %v3766_v15  ;;  %v3769_v10 = vmul.f32 %v11782_v33, %v3666_v34  ;;  %v3665_v20 = vadd.f32 %v3514_v2, %v3295_v42  ;;  %9284 = vmatprep.mubr.f32.mxu1 %v11897_v56  ;;  %v13467_v42 = vld [vmem:[#allocation47_spill] sm:$0xff]  ;;  %v11930_v57 = vpop.f32.mrf.mxu1  ;;  %v13472_v51 = vld [vmem:[#allocation48_spill] sm:$0xff] }
 0x21f   : > { %9370 = vmatprep.mubr.f32.mxu0 %v3835_v27  ;;  %v9218_v7 = vpop.f32.mrf.mxu0  ;;  %9285 = vmatmul.mubr.f32.gmra.mxu1 %v11899_v18  ;;  %v2192_v46 = vadd.f32 %v13467_v42, %v11774_v41  ;;  %v2932_v36 = vadd.f32 %v13468_v59, %v2561_v13  ;;  %v13469_v41 = vld [vmem:[#allocation45_spill] sm:$0xff]  ;;  %v3299_v40 = vadd.f32 %v11715_v1, %v2929_v9  ;;  %v13473_v13 = vld [vmem:[#allocation51_spill] sm:$0xff] }
 0x220   : > { %9371 = vmatmul.mubr.f32.gmra.mxu0 %v3836_v17  ;;  %3871 = vst [vmem:[#allocation3 + $0x81] sm:$0xff] %v3838_v53  ;;  %v3837_v0 = vmax.f32 %v3805_v60, 0.0  ;;  %v3808_v55 = vadd.f32 %v11800_v12, %v3769_v10  ;;  %v3768_v52 = vmul.f32 %v11782_v33, %v3665_v20  ;;  %v3668_v11 = vadd.f32 %v9218_v7, %v3298_v58 }
 0x221   : > { %v3524_v27 = vpop.f32.mrf.mxu0  ;;  %v11918_v17 = vld [vmem:[#allocation3 + $0x48] sm:$0xff]  ;;  %v11920_v63 = vld [vmem:[#allocation3 + $0x50] sm:$0xff]  ;;  %v2563_v4 = vadd.f32 %v13470_v8, %v13469_v41  ;;  %v2931_v58 = vadd.f32 %v13471_v16, %v2560_v61  ;;  %v2562_v49 = vadd.f32 %v13472_v51, %v2192_v46  ;;  %v2194_v1 = vadd.f32 %v13473_v13, %v11785_v26  ;;  %v13476_v61 = vld [vmem:[#allocation50_spill] sm:$0xff] }
 0x222   : > { %3870 = vst [vmem:[#allocation3 + $0x79] sm:$0xff] %v3837_v0  ;;  %v3840_v15 = vmax.f32 %v3808_v55, 0.0  ;;  %v3807_v34 = vadd.f32 %v11800_v12, %v3768_v52  ;;  %v3771_v39 = vmul.f32 %v11782_v33, %v3668_v11  ;;  %v3667_v6 = vadd.f32 %v3524_v27, %v3297_v24  ;;  %9287 = vmatprep.mubr.f32.mxu1 %v11918_v17  ;;  %v13475_v26 = vld [vmem:[#allocation49_spill] sm:$0xff]  ;;  %v13477_v46 = vld [vmem:[#allocation92_spill] sm:$0xff] }
 0x223   : > { %9373 = vmatprep.mubr.f32.mxu0 %v3837_v0  ;;  %v9221_v62 = vpop.f32.mrf.mxu0  ;;  %9288 = vmatmul.mubr.f32.gmra.mxu1 %v11920_v63  ;;  %v3302_v24 = vadd.f32 %v11751_v22, %v2932_v36  ;;  %v2934_v9 = vadd.f32 %v13474_v45, %v2563_v4  ;;  %v2565_v22 = vadd.f32 %v13476_v61, %v13475_v26  ;;  %v11951_v36 = vpop.f32.mrf.mxu1  ;;  %v13478_v41 = vld [vmem:[#allocation52_spill] sm:$0xff]  ;;  %v13479_v4 = vld [vmem:[#allocation55_spill] sm:$0xff]  ;;  %v13480_v16 = vld [vmem:[#allocation93_spill] sm:$0xff] }
 0x224   : > { %9374 = vmatmul.mubr.f32.gmra.mxu0 %v3838_v53  ;;  %3873 = vst [vmem:[#allocation3 + $0x99] sm:$0xff] %v3840_v15  ;;  %v3839_v2 = vmax.f32 %v3807_v34, 0.0  ;;  %v3810_v60 = vadd.f32 %v11800_v12, %v3771_v39  ;;  %v3770_v10 = vmul.f32 %v11782_v33, %v3667_v6  ;;  %v3670_v20 = vadd.f32 %v9221_v62, %v3300_v54  ;;  %v13484_v26 = vld [vmem:[#allocation56_spill] sm:$0xff] }
 0x225   : > { %v3534_v7 = vpop.f32.mrf.mxu0  ;;  %v11939_v53 = vld [vmem:[#allocation3 + $0x60] sm:$0xff]  ;;  %v11941_v0 = vld [vmem:[#allocation3 + $0x68] sm:$0xff]  ;;  %v3301_v42 = vadd.f32 %v11789_v3, %v2931_v58  ;;  %v2933_v54 = vadd.f32 %v13477_v46, %v2562_v49  ;;  %v2564_v8 = vadd.f32 %v13478_v41, %v2194_v1  ;;  %v2196_v3 = vadd.f32 %v13479_v4, %v11792_v19  ;;  %v13481_v19 = vld [vmem:[#allocation53_spill] sm:$0xff] }
 0x226   : > { %3872 = vst [vmem:[#allocation3 + $0x91] sm:$0xff] %v3839_v2  ;;  %v3842_v55 = vmax.f32 %v3810_v60, 0.0  ;;  %v3809_v52 = vadd.f32 %v11800_v12, %v3770_v10  ;;  %v3773_v11 = vmul.f32 %v11782_v33, %v3670_v20  ;;  %v3669_v21 = vadd.f32 %v3534_v7, %v3299_v40  ;;  %9290 = vmatprep.mubr.f32.mxu1 %v11939_v53  ;;  %v13482_v49 = vld [vmem:[#allocation54_spill] sm:$0xff]  ;;  %v13483_v1 = vld [vmem:[#allocation96_spill] sm:$0xff]  ;;  %v13486_v46 = vld [vmem:[#allocation97_spill] sm:$0xff] }
 0x227   : > { %9376 = vmatprep.mubr.f32.mxu0 %v3839_v2  ;;  %v9224_v59 = vpop.f32.mrf.mxu0  ;;  %9291 = vmatmul.mubr.f32.gmra.mxu1 %v11941_v0  ;;  %v3304_v40 = vadd.f32 %v11815_v23, %v2934_v9  ;;  %v2936_v58 = vadd.f32 %v13480_v16, %v2565_v22  ;;  %v2567_v23 = vadd.f32 %v13482_v49, %v13481_v19  ;;  %v11972_v9 = vpop.f32.mrf.mxu1  ;;  %v13485_v22 = vld [vmem:[#allocation59_spill] sm:$0xff]  ;;  %v13490_v19 = vld [vmem:[#allocation60_spill] sm:$0xff] }
 0x228   : > { %9377 = vmatmul.mubr.f32.gmra.mxu0 %v3840_v15  ;;  %3875 = vst [vmem:[#allocation3 + $0xb1] sm:$0xff] %v3842_v55  ;;  %v3841_v27 = vmax.f32 %v3809_v52, 0.0  ;;  %v3812_v34 = vadd.f32 %v11800_v12, %v3773_v11  ;;  %v3772_v39 = vmul.f32 %v11782_v33, %v3669_v21  ;;  %v3672_v6 = vadd.f32 %v9224_v59, %v3302_v24 }
 0x229   : > { %v3544_v62 = vpop.f32.mrf.mxu0  ;;  %v11960_v15 = vld [vmem:[#allocation3 + $0x78] sm:$0xff]  ;;  %v11962_v2 = vld [vmem:[#allocation3 + $0x80] sm:$0xff]  ;;  %v3303_v13 = vadd.f32 %v11832_v30, %v2933_v54  ;;  %v2935_v24 = vadd.f32 %v13483_v1, %v2564_v8  ;;  %v2566_v61 = vadd.f32 %v13484_v26, %v2196_v3  ;;  %v2198_v30 = vadd.f32 %v13485_v22, %v11803_v37  ;;  %v13487_v37 = vld [vmem:[#allocation57_spill] sm:$0xff] }
 0x22a   : > { %3874 = vst [vmem:[#allocation3 + $0xa9] sm:$0xff] %v3841_v27  ;;  %v3844_v60 = vmax.f32 %v3812_v34, 0.0  ;;  %v3811_v10 = vadd.f32 %v11800_v12, %v3772_v39  ;;  %v3775_v20 = vmul.f32 %v11782_v33, %v3672_v6  ;;  %v3671_v51 = vadd.f32 %v3544_v62, %v3301_v42  ;;  %9293 = vmatprep.mubr.f32.mxu1 %v11960_v15  ;;  %v13488_v8 = vld [vmem:[#allocation58_spill] sm:$0xff]  ;;  %v13489_v3 = vld [vmem:[#allocation99_spill] sm:$0xff]  ;;  %v13492_v1 = vld [vmem:[#allocation100_spill] sm:$0xff] }
 0x22b   : > { %9379 = vmatprep.mubr.f32.mxu0 %v3841_v27  ;;  %v9227_v45 = vpop.f32.mrf.mxu0  ;;  %9294 = vmatmul.mubr.f32.gmra.mxu1 %v11962_v2  ;;  %v3306_v42 = vadd.f32 %v11849_v48, %v2936_v58  ;;  %v2938_v54 = vadd.f32 %v13486_v46, %v2567_v23  ;;  %v2569_v48 = vadd.f32 %v13488_v8, %v13487_v37  ;;  %v11993_v58 = vpop.f32.mrf.mxu1  ;;  %v13491_v23 = vld [vmem:[#allocation63_spill] sm:$0xff] }
 0x22c   : > { %9380 = vmatmul.mubr.f32.gmra.mxu0 %v3842_v55  ;;  %3877 = vst [vmem:[#allocation3 + $0xc9] sm:$0xff] %v3844_v60  ;;  %v3843_v7 = vmax.f32 %v3811_v10, 0.0  ;;  %v3814_v52 = vadd.f32 %v11800_v12, %v3775_v20  ;;  %v3774_v11 = vmul.f32 %v11782_v33, %v3671_v51  ;;  %v3674_v21 = vadd.f32 %v9227_v45, %v3304_v40  ;;  %v13496_v8 = vld [vmem:[#allocation67_spill] sm:$0xff] }
 0x22d   : > { %v3554_v59 = vpop.f32.mrf.mxu0  ;;  %v11981_v55 = vld [vmem:[#allocation3 + $0x90] sm:$0xff]  ;;  %v11983_v27 = vld [vmem:[#allocation3 + $0x98] sm:$0xff]  ;;  %v3305_v4 = vadd.f32 %v11867_v28, %v2935_v24  ;;  %v2937_v40 = vadd.f32 %v13489_v3, %v2566_v61  ;;  %v2568_v49 = vadd.f32 %v13490_v19, %v2198_v30  ;;  %v2200_v28 = vadd.f32 %v13491_v23, %v11808_v14  ;;  %v9162_v46 = vpop.f32.mrf.mxu1 }
 0x22e   : > { %3876 = vst [vmem:[#allocation3 + $0xc1] sm:$0xff] %v3843_v7  ;;  %v3846_v34 = vmax.f32 %v3814_v52, 0.0  ;;  %v3813_v39 = vadd.f32 %v11800_v12, %v3774_v11  ;;  %v3777_v6 = vmul.f32 %v11782_v33, %v3674_v21  ;;  %v3673_v41 = vadd.f32 %v3554_v59, %v3303_v13  ;;  %9296 = vmatprep.mubr.f32.mxu1 %v11981_v55  ;;  %v13493_v14 = vld [vmem:[#allocation61_spill] sm:$0xff]  ;;  %v13494_v61 = vld [vmem:[#allocation62_spill] sm:$0xff] }
 0x22f   : > { %9382 = vmatprep.mubr.f32.mxu0 %v3843_v7  ;;  %v9230_v16 = vpop.f32.mrf.mxu0  ;;  %9297 = vmatmul.mubr.f32.gmra.mxu1 %v11983_v27  ;;  %v3308_v13 = vadd.f32 %v11888_v43, %v2938_v54  ;;  %v2940_v24 = vadd.f32 %v13492_v1, %v2569_v48  ;;  %v2571_v43 = vadd.f32 %v13494_v61, %v13493_v14  ;;  %v13502_v14 = vld [vmem:[#allocation71_spill] sm:$0xff] }
 0x230   : > { %9383 = vmatmul.mubr.f32.gmra.mxu0 %v3844_v60  ;;  %3879 = vst [vmem:[#allocation3 + $0xe1] sm:$0xff] %v3846_v34  ;;  %v3845_v62 = vmax.f32 %v3813_v39, 0.0  ;;  %v3816_v10 = vadd.f32 %v11800_v12, %v3777_v6  ;;  %v3776_v20 = vmul.f32 %v11782_v33, %v3673_v41  ;;  %v3676_v51 = vadd.f32 %v9230_v16, %v3306_v42  ;;  %v13495_v41 = vld [vmem:[#allocation64_spill] sm:$0xff] }
 0x231   : > { %v3564_v45 = vpop.f32.mrf.mxu0  ;;  %v12002_v60 = vld [vmem:[#allocation3 + $0xa8] sm:$0xff]  ;;  %v12004_v7 = vld [vmem:[#allocation3 + $0xb0] sm:$0xff]  ;;  %v3307_v22 = vadd.f32 %v11909_v50, %v2937_v40  ;;  %v2939_v30 = vadd.f32 %v11694_v31, %v2568_v49  ;;  %v2570_v37 = vadd.f32 %v13495_v41, %v2200_v28  ;;  %v2202_v48 = vadd.f32 %v13496_v8, %v11826_v25  ;;  %v13500_v49 = vld [vmem:[#allocation102_spill] sm:$0xff] }
 0x232   : > { %3878 = vst [vmem:[#allocation3 + $0xd9] sm:$0xff] %v3845_v62  ;;  %v3848_v52 = vmax.f32 %v3816_v10, 0.0  ;;  %v3815_v11 = vadd.f32 %v11800_v12, %v3776_v20  ;;  %v3779_v21 = vmul.f32 %v11782_v33, %v3676_v51  ;;  %v3675_v26 = vadd.f32 %v3564_v45, %v3305_v4  ;;  %9299 = vmatprep.mubr.f32.mxu1 %v12002_v60  ;;  %v13497_v31 = vld [vmem:[#allocation101_spill] sm:$0xff]  ;;  %v13499_v51 = vld [vmem:[#allocation66_spill] sm:$0xff] }
 0x233   : > { %9385 = vmatprep.mubr.f32.mxu0 %v3845_v62  ;;  %v9233_v42 = vpop.f32.mrf.mxu0  ;;  %9300 = vmatmul.mubr.f32.gmra.mxu1 %v12004_v7  ;;  %v3310_v50 = vadd.f32 %v11930_v57, %v2940_v24  ;;  %v2942_v4 = vadd.f32 %v13497_v31, %v2571_v43  ;;  %v13498_v25 = vld [vmem:[#allocation65_spill] sm:$0xff]  ;;  %v3309_v19 = vadd.f32 %v11951_v36, %v2939_v30 }
 0x234   : > { %9386 = vmatmul.mubr.f32.gmra.mxu0 %v3846_v34  ;;  %3881 = vst [vmem:[#allocation3 + $0xf9] sm:$0xff] %v3848_v52  ;;  %v3847_v54 = vmax.f32 %v3815_v11, 0.0  ;;  %v3818_v59 = vadd.f32 %v11800_v12, %v3779_v21  ;;  %v3778_v39 = vmul.f32 %v11782_v33, %v3675_v26  ;;  %v3678_v6 = vadd.f32 %v9233_v42, %v3308_v13  ;;  %v3234_v13 = vpop.f32.mrf.mxu1  ;;  %v13501_v21 = vld [vmem:[#allocation68_spill] sm:$0xff] }
 0x235   : > { %v3574_v3 = vpop.f32.mrf.mxu0  ;;  %v12021_v40 = vld [vmem:[#allocation3 + $0xc0] sm:$0xff]  ;;  %v12023_v34 = vld [vmem:[#allocation3 + $0xc8] sm:$0xff]  ;;  %v2573_v57 = vadd.f32 %v13499_v51, %v13498_v25  ;;  %v2941_v23 = vadd.f32 %v13500_v49, %v2570_v37  ;;  %v2572_v26 = vadd.f32 %v13501_v21, %v2202_v48  ;;  %v2204_v61 = vadd.f32 %v13502_v14, %v11861_v44  ;;  %v13503_v44 = vld [vmem:[#allocation69_spill] sm:$0xff] }
 0x236   : > { %3880 = vst [vmem:[#allocation3 + $0xf1] sm:$0xff] %v3847_v54  ;;  %v3850_v16 = vmax.f32 %v3818_v59, 0.0  ;;  %v3817_v62 = vadd.f32 %v11800_v12, %v3778_v39  ;;  %v3781_v10 = vmul.f32 %v11782_v33, %v3678_v6  ;;  %v3677_v20 = vadd.f32 %v3574_v3, %v3307_v22  ;;  %9302 = vmatprep.mubr.f32.mxu1 %v12021_v40  ;;  %v13504_v6 = vld [vmem:[#allocation70_spill] sm:$0xff]  ;;  %v9165_v8 = vpop.f32.mrf.mxu1  ;;  %v13505_v3 = vld [vmem:[#allocation72_spill] sm:$0xff] }
 0x237   : > { %9388 = vmatprep.mubr.f32.mxu0 %v3847_v54  ;;  %v9236_v28 = vpop.f32.mrf.mxu0  ;;  %9303 = vmatmul.mubr.f32.gmra.mxu1 %v12023_v34  ;;  %v3312_v36 = vadd.f32 %v11972_v9, %v2942_v4  ;;  %v2944_v43 = vadd.f32 %v11705_v32, %v2573_v57  ;;  %v2575_v9 = vadd.f32 %v13504_v6, %v13503_v44 }
 0x238   : > { %9389 = vmatmul.mubr.f32.gmra.mxu0 %v3848_v52  ;;  %3883 = vst [vmem:[#allocation3 + $0x111] sm:$0xff] %v3850_v16  ;;  %v3849_v1 = vmax.f32 %v3817_v62, 0.0  ;;  %v3820_v24 = vadd.f32 %v11800_v12, %v3781_v10  ;;  %v3780_v45 = vmul.f32 %v11782_v33, %v3677_v20  ;;  %v3680_v11 = vadd.f32 %v9236_v28, %v3310_v50 }
 0x239   : > { %v3584_v22 = vpop.f32.mrf.mxu0  ;;  %v12040_v30 = vld [vmem:[#allocation3 + $0xd8] sm:$0xff]  ;;  %v12042_v52 = vld [vmem:[#allocation3 + $0xe0] sm:$0xff]  ;;  %v3311_v32 = vadd.f32 %v11993_v58, %v2941_v23  ;;  %v2943_v41 = vadd.f32 %v11725_v5, %v2572_v26  ;;  %v2574_v62 = vadd.f32 %v13505_v3, %v2204_v61  ;;  %v3314_v10 = vadd.f32 %v9162_v46, %v2944_v43 }
 0x23a   : > { %3882 = vst [vmem:[#allocation3 + $0x109] sm:$0xff] %v3849_v1  ;;  %v3852_v42 = vmax.f32 %v3820_v24, 0.0  ;;  %v3819_v54 = vadd.f32 %v11800_v12, %v3780_v45  ;;  %v3783_v59 = vmul.f32 %v11782_v33, %v3680_v11  ;;  %v3679_v39 = vadd.f32 %v3584_v22, %v3309_v19  ;;  %9305 = vmatprep.mubr.f32.mxu1 %v12040_v30 }
 0x23b   : > { %9391 = vmatprep.mubr.f32.mxu0 %v3849_v1  ;;  %v9239_v37 = vpop.f32.mrf.mxu0  ;;  %9306 = vmatmul.mubr.f32.gmra.mxu1 %v12042_v52  ;;  %v2946_v20 = vadd.f32 %v11741_v29, %v2575_v9  ;;  %v3313_v49 = vadd.f32 %v3234_v13, %v2943_v41  ;;  %v2945_v46 = vadd.f32 %v11763_v35, %v2574_v62  ;;  %v3244_v29 = vpop.f32.mrf.mxu1 }
 0x23c   : > { %9392 = vmatmul.mubr.f32.gmra.mxu0 %v3850_v16  ;;  %3885 = vst [vmem:[#allocation3 + $0x129] sm:$0xff] %v3852_v42  ;;  %v3851_v48 = vmax.f32 %v3819_v54, 0.0  ;;  %v3822_v50 = vadd.f32 %v11800_v12, %v3783_v59  ;;  %v3782_v31 = vmul.f32 %v11782_v33, %v3679_v39  ;;  %v3682_v4 = vadd.f32 %v9239_v37, %v3312_v36 }
 0x23d   : > { %v3594_v58 = vpop.f32.mrf.mxu0  ;;  %v12056_v25 = vld [vmem:[#allocation3 + $0xf0] sm:$0xff]  ;;  %v12058_v5 = vld [vmem:[#allocation3 + $0xf8] sm:$0xff]  ;;  %v3316_v11 = vadd.f32 %v9165_v8, %v2946_v20  ;;  %v3315_v43 = vadd.f32 %v3244_v29, %v2945_v46  ;;  %v7590_v46 = vld [vmem:[%s13293_s4 + $0x270] sm:$0xff] }
 0x23e   : > { %3884 = vst [vmem:[#allocation3 + $0x121] sm:$0xff] %v3851_v48  ;;  %v3854_v16 = vmax.f32 %v3822_v50, 0.0  ;;  %v3821_v51 = vadd.f32 %v11800_v12, %v3782_v31  ;;  %v3785_v57 = vmul.f32 %v11782_v33, %v3682_v4  ;;  %v3681_v19 = vadd.f32 %v3594_v58, %v3311_v32  ;;  %9308 = vmatprep.mubr.f32.mxu1 %v12056_v25  ;;  %v12132_v29 = vld [vmem:[#allocation3 + $0x1a] sm:$0xff] }
 0x23f   : > { %9394 = vmatprep.mubr.f32.mxu0 %v3851_v48  ;;  %v9242_v23 = vpop.f32.mrf.mxu0  ;;  %9309 = vmatmul.mubr.f32.gmra.mxu1 %v12058_v5 }
 0x240   : > { %9395 = vmatmul.mubr.f32.gmra.mxu0 %v3852_v42  ;;  %3887 = vst [vmem:[#allocation3 + $0x141] sm:$0xff] %v3854_v16  ;;  %v3853_v28 = vmax.f32 %v3821_v51, 0.0  ;;  %v3824_v1 = vadd.f32 %v11800_v12, %v3785_v57  ;;  %v3784_v24 = vmul.f32 %v11782_v33, %v3681_v19  ;;  %v3684_v45 = vadd.f32 %v9242_v23, %v3314_v10  ;;  %v4569_v57 = vld [vmem:[#allocation3 + $0x2] sm:$0xff]  ;;  %v7605_v19 = vld [vmem:[%s13293_s4 + $0x2e8] sm:$0xff] }
 0x241   : > { %v3604_v21 = vpop.f32.mrf.mxu0  ;;  %v12067_v26 = vld [vmem:[#allocation3 + $0x108] sm:$0xff]  ;;  %v12069_v14 = vld [vmem:[#allocation3 + $0x110] sm:$0xff] }
 0x242   : > { %3886 = vst [vmem:[#allocation3 + $0x139] sm:$0xff] %v3853_v28  ;;  %v3856_v35 = vmax.f32 %v3824_v1, 0.0  ;;  %v3823_v13 = vadd.f32 %v11800_v12, %v3784_v24  ;;  %v3787_v61 = vmul.f32 %v11782_v33, %v3684_v45  ;;  %v3683_v36 = vadd.f32 %v3604_v21, %v3313_v49  ;;  %9311 = vmatprep.mubr.f32.mxu1 %v12067_v26  ;;  %v12144_v1 = vld [vmem:[#allocation3 + $0x22] sm:$0xff]  ;;  %v12150_v24 = vld [vmem:[#allocation3 + $0x32] sm:$0xff]  ;;  %v12157_v45 = vld [vmem:[#allocation3 + $0x3a] sm:$0xff] }
 0x243   : > { %9397 = vmatprep.mubr.f32.mxu0 %v3853_v28  ;;  %v9245_v22 = vpop.f32.mrf.mxu0  ;;  %9312 = vmatmul.mubr.f32.gmra.mxu1 %v12069_v14  ;;  %v7589_v28 = vld [vmem:[%s13293_s4 + $0x268] sm:$0xff]  ;;  %v12164_v21 = vld [vmem:[#allocation3 + $0x4a] sm:$0xff] }
 0x244   : > { %9398 = vmatmul.mubr.f32.gmra.mxu0 %v3854_v16  ;;  %3889 = vst [vmem:[#allocation3 + $0x159] sm:$0xff] %v3856_v35  ;;  %v3855_v42 = vmax.f32 %v3823_v13, 0.0  ;;  %v3826_v54 = vadd.f32 %v11800_v12, %v3787_v61  ;;  %v3786_v59 = vmul.f32 %v11782_v33, %v3683_v36  ;;  %v3686_v39 = vadd.f32 %v9245_v22, %v3316_v11  ;;  %v7586_v11 = vld [vmem:[%s13293_s4 + $0x250] sm:$0xff]  ;;  %v12206_v22 = vld [vmem:[#allocation3 + $0x92] sm:$0xff] }
 0x245   : > { %v3614_v44 = vpop.f32.mrf.mxu0  ;;  %v12077_v6 = vld [vmem:[#allocation3 + $0x120] sm:$0xff]  ;;  %v12079_v9 = vld [vmem:[#allocation3 + $0x128] sm:$0xff] }
 0x246   : > { %3888 = vst [vmem:[#allocation3 + $0x151] sm:$0xff] %v3855_v42  ;;  %v3858_v32 = vmax.f32 %v3826_v54, 0.0  ;;  %v3825_v41 = vadd.f32 %v11800_v12, %v3786_v59  ;;  %v3789_v37 = vmul.f32 %v11782_v33, %v3686_v39  ;;  %v3685_v8 = vadd.f32 %v3614_v44, %v3315_v43  ;;  %9314 = vmatprep.mubr.f32.mxu1 %v12077_v6  ;;  %v12178_v13 = vld [vmem:[#allocation3 + $0x62] sm:$0xff]  ;;  %v12192_v36 = vld [vmem:[#allocation3 + $0x7a] sm:$0xff]  ;;  %v12220_v54 = vld [vmem:[#allocation3 + $0xaa] sm:$0xff] }
 0x247   : > { %9400 = vmatprep.mubr.f32.mxu0 %v3855_v42  ;;  %9315 = vmatmul.mubr.f32.gmra.mxu1 %v12079_v9  ;;  %v7582_v61 = vld [vmem:[%s13293_s4 + $0x230] sm:$0xff]  ;;  %v7603_v43 = vld [vmem:[%s13293_s4 + $0x2d8] sm:$0xff]  ;;  %v7580_v42 = vld [vmem:[%s13293_s4 + $0x220] sm:$0xff] }
 0x248   : > { %9401 = vmatmul.mubr.f32.gmra.mxu0 %v3856_v35  ;;  %3891 = vst [vmem:[#allocation3 + $0x171] sm:$0xff] %v3858_v32  ;;  %v12085_v48 = vmax.f32 %v3825_v41, 0.0  ;;  %v3828_v50 = vadd.f32 %v11800_v12, %v3789_v37  ;;  %v3788_v31 = vmul.f32 %v11782_v33, %v3685_v8  ;;  %v7584_v35 = vld [vmem:[%s13293_s4 + $0x240] sm:$0xff]  ;;  %v7579_v59 = vld [vmem:[%s13293_s4 + $0x218] sm:$0xff]  ;;  %v7578_v41 = vld [vmem:[%s13293_s4 + $0x210] sm:$0xff] }
 0x249   : > { %v12089_v4 = vld [vmem:[#allocation3 + $0x138] sm:$0xff]  ;;  %v12091_v3 = vld [vmem:[#allocation3 + $0x140] sm:$0xff]  ;;  %v7599_v44 = vld [vmem:[%s13293_s4 + $0x2b8] sm:$0xff] }
 0x24a   : > { %3890 = vst [vmem:[#allocation3 + $0x169] sm:$0xff] %v12085_v48  ;;  %v3860_v62 = vmax.f32 %v3828_v50, 0.0  ;;  %v12095_v10 = vadd.f32 %v11800_v12, %v3788_v31  ;;  %9317 = vmatprep.mubr.f32.mxu1 %v12089_v4  ;;  %9403 = vmatprep.mubr.f32.mxu0 %v12085_v48  ;;  %v7606_v12 = vld [vmem:[%s13293_s4 + $0x2f0] sm:$0xff]  ;;  %v12262_v37 = vld [vmem:[#allocation3 + $0xf2] sm:$0xff]  ;;  %v12276_v50 = vld [vmem:[#allocation3 + $0x10a] sm:$0xff] }
 0x24b   : > { %9318 = vmatmul.mubr.f32.gmra.mxu1 %v12091_v3  ;;  %v12234_v39 = vld [vmem:[#allocation3 + $0xc2] sm:$0xff]  ;;  %v7577_v8 = vld [vmem:[%s13293_s4 + $0x208] sm:$0xff] }
 0x24c   : > { %9404 = vmatmul.mubr.f32.gmra.mxu0 %v3858_v32  ;;  %3893 = vst [vmem:[#allocation3 + $0x189] sm:$0xff] %v3860_v62  ;;  %v3859_v33 = vmax.f32 %v12095_v10, 0.0  ;;  %v12248_v32 = vld [vmem:[#allocation3 + $0xda] sm:$0xff]  ;;  %v12283_v31 = vld [vmem:[#allocation3 + $0x112] sm:$0xff]  ;;  %v12290_v62 = vld [vmem:[#allocation3 + $0x122] sm:$0xff] }
 0x24d   : > { %9518 = vmatprep.mubr.f32.mxu0 %v11876_v47  ;;  %v12102_v20 = vld [vmem:[#allocation3 + $0x150] sm:$0xff]  ;;  %v12104_v58 = vld [vmem:[#allocation3 + $0x158] sm:$0xff]  ;;  %v13506_v47 = vld [vmem:[#allocation95_spill] sm:$0xff] }
 0x24e   : > { %3892 = vst [vmem:[#allocation3 + $0x181] sm:$0xff] %v3859_v33  ;;  %9320 = vmatprep.mubr.f32.mxu1 %v12102_v20  ;;  %v7654_v10 = vld [vmem:[%s13293_s4 + $0x470] sm:$0xff] }
 0x24f   : > { %9321 = vmatmul.mubr.f32.gmra.mxu1 %v12104_v58  ;;  %v9360_v49 = vpop.f32.mrf.mxu0 }
 0x250   : > { %9519 = vmatmul.mubr.f32.vlgmr.msra.gmra.mxu0 %v11878_v38  ;;  %v4570_v38 = vld [vmem:[#allocation3 + $0xa] sm:$0xff] }
 0x251   : > { %9521 = vmatprep.mubr.f32.mxu0 %v11897_v56  ;;  %9647 = vmatpush3.msra.mxu0 %v13506_v47  ;;  %v12116_v16 = vld [vmem:[#allocation3 + $0x168] sm:$0xff]  ;;  %v12118_v51 = vld [vmem:[#allocation3 + $0x170] sm:$0xff]  ;;  %v12304_v47 = vld [vmem:[#allocation3 + $0x13a] sm:$0xff] }
 0x252   : > { %9648 = vmatprep.subr.mxu0 %v7606_v12  ;;  %9323 = vmatprep.mubr.f32.mxu1 %v12116_v16 }
 0x253   : > { %9649 = vmatpush3.msra.mxu0 %v7606_v12  ;;  %9324 = vmatmul.mubr.f32.gmra.mxu1 %v12118_v51  ;;  %v7576_v12 = vld [vmem:[%s13293_s4 + $0x200] sm:$0xff] }
 0x254   : > { %9522 = vmatmul.mubr.f32.gmra.mxu0 %v11899_v18  ;;  %9438 = vmatprep.mubr.f32.mxu1 %v4569_v57  ;;  %v9280_v56 = vpop.f32.mrf.mxu1  ;;  %v7604_v18 = vld [vmem:[%s13293_s4 + $0x2e0] sm:$0xff]  ;;  %v12313_v57 = vld [vmem:[#allocation3 + $0x142] sm:$0xff] }
 0x255   : > { %9524 = vmatprep.mubr.f32.mxu0 %v11918_v17  ;;  %9650 = vmatprep.subr.mxu0 %v7605_v19  ;;  %v12130_v23 = vadd.f32 %v9360_v49, %v9280_v56  ;;  %v13507_v17 = vld [vmem:[#allocation76_spill] sm:$0xff]  ;;  %v7592_v56 = vld [vmem:[%s13293_s4 + $0x280] sm:$0xff]  ;;  %v12329_v49 = vld [vmem:[#allocation3 + $0x15a] sm:$0xff] }
 0x256   : > { %9651 = vmatpush3.msra.mxu0 %v7605_v19  ;;  %v7623_v19 = vld [vmem:[%s13293_s4 + $0x378] sm:$0xff] }
 0x257   : > { %9439 = vmatmul.mubr.f32.vlgmr.msra.gmra.mxu1 %v4570_v38  ;;  %9652 = vmatprep.subr.mxu0 %v7604_v18  ;;  %v12320_v38 = vld [vmem:[#allocation3 + $0x152] sm:$0xff] }
 0x258   : > { %9525 = vmatmul.mubr.f32.gmra.mxu0 %v11920_v63  ;;  %9441 = vmatprep.mubr.f32.mxu1 %v12132_v29  ;;  %v7588_v63 = vld [vmem:[%s13293_s4 + $0x260] sm:$0xff] }
 0x259   : > { %9567 = vmatpush3.msra.mxu1 %v13507_v17  ;;  %9527 = vmatprep.mubr.f32.mxu0 %v11939_v53  ;;  %v7587_v53 = vld [vmem:[%s13293_s4 + $0x258] sm:$0xff]  ;;  %v7638_v17 = vld [vmem:[%s13293_s4 + $0x3f0] sm:$0xff] }
 0x25a   : > { %9568 = vmatprep.subr.mxu1 %v7590_v46  ;;  %9653 = vmatpush3.msra.mxu0 %v7604_v18  ;;  %v12336_v18 = vld [vmem:[#allocation3 + $0x16a] sm:$0xff] }
 0x25b   : > { %9569 = vmatpush3.msra.mxu1 %v7590_v46  ;;  %9654 = vmatprep.subr.mxu0 %v7603_v43  ;;  %v7639_v46 = vld [vmem:[%s13293_s4 + $0x3f8] sm:$0xff] }
 0x25c   : > { %9442 = vmatmul.mubr.f32.gmra.mxu1 %v12144_v1  ;;  %9570 = vmatprep.subr.mxu1 %v7589_v28 }
 0x25d   : > { %9444 = vmatprep.mubr.f32.mxu1 %v12150_v24  ;;  %9571 = vmatpush3.msra.mxu1 %v7589_v28  ;;  %v7637_v28 = vld [vmem:[%s13293_s4 + $0x3e8] sm:$0xff] }
 0x25e   : > { %9528 = vmatmul.mubr.f32.gmra.mxu0 %v11941_v0  ;;  %9572 = vmatprep.subr.mxu1 %v7588_v63  ;;  %v7585_v0 = vld [vmem:[%s13293_s4 + $0x248] sm:$0xff] }
 0x25f   : > { %9530 = vmatprep.mubr.f32.mxu0 %v11960_v15  ;;  %9573 = vmatpush3.msra.mxu1 %v7588_v63  ;;  %v12171_v15 = vld [vmem:[#allocation3 + $0x52] sm:$0xff] }
 0x260   : > { %9445 = vmatmul.mubr.f32.gmra.mxu1 %v12157_v45  ;;  %9574 = vmatprep.subr.mxu1 %v7587_v53  ;;  %v5309_v63 = vld [vmem:[#allocation3 + $0x19] sm:$0xff] }
 0x261   : > { %9447 = vmatprep.mubr.f32.mxu1 %v12164_v21  ;;  %9575 = vmatpush3.msra.mxu1 %v7587_v53  ;;  %v7622_v53 = vld [vmem:[%s13293_s4 + $0x370] sm:$0xff] }
 0x262   : > { %9531 = vmatmul.mubr.f32.gmra.mxu0 %v11962_v2  ;;  %9576 = vmatprep.subr.mxu1 %v7586_v11  ;;  %v7583_v2 = vld [vmem:[%s13293_s4 + $0x238] sm:$0xff] }
 0x263   : > { %9533 = vmatprep.mubr.f32.mxu0 %v11981_v55  ;;  %9577 = vmatpush3.msra.mxu1 %v7586_v11  ;;  %v12185_v55 = vld [vmem:[#allocation3 + $0x6a] sm:$0xff] }
 0x264   : > { %9448 = vmatmul.mubr.f32.gmra.mxu1 %v12171_v15  ;;  %9578 = vmatprep.subr.mxu1 %v7585_v0  ;;  %v12360_v11 = vld [vmem:[#allocation3 + $0x31] sm:$0xff] }
 0x265   : > { %9450 = vmatprep.mubr.f32.mxu1 %v12178_v13  ;;  %9579 = vmatpush3.msra.mxu1 %v7585_v0  ;;  %v12368_v0 = vld [vmem:[#allocation3 + $0x39] sm:$0xff] }
 0x266   : > { %9534 = vmatmul.mubr.f32.gmra.mxu0 %v11983_v27  ;;  %9580 = vmatprep.subr.mxu1 %v7584_v35  ;;  %v7581_v27 = vld [vmem:[%s13293_s4 + $0x228] sm:$0xff] }
 0x267   : > { %9536 = vmatprep.mubr.f32.mxu0 %v12002_v60  ;;  %9581 = vmatpush3.msra.mxu1 %v7584_v35  ;;  %v12199_v60 = vld [vmem:[#allocation3 + $0x82] sm:$0xff] }
 0x268   : > { %9451 = vmatmul.mubr.f32.gmra.mxu1 %v12185_v55  ;;  %9582 = vmatprep.subr.mxu1 %v7583_v2  ;;  %v12375_v35 = vld [vmem:[#allocation3 + $0x49] sm:$0xff] }
 0x269   : > { %9453 = vmatprep.mubr.f32.mxu1 %v12192_v36  ;;  %9583 = vmatpush3.msra.mxu1 %v7583_v2  ;;  %v7618_v2 = vld [vmem:[%s13293_s4 + $0x350] sm:$0xff] }
 0x26a   : > { %9537 = vmatmul.mubr.f32.gmra.mxu0 %v12004_v7  ;;  %9584 = vmatprep.subr.mxu1 %v7582_v61  ;;  %v7602_v7 = vld [vmem:[%s13293_s4 + $0x2d0] sm:$0xff] }
 0x26b   : > { %9539 = vmatprep.mubr.f32.mxu0 %v12021_v40  ;;  %9585 = vmatpush3.msra.mxu1 %v7582_v61  ;;  %v12213_v40 = vld [vmem:[#allocation3 + $0x9a] sm:$0xff] }
 0x26c   : > { %9454 = vmatmul.mubr.f32.gmra.mxu1 %v12199_v60  ;;  %9586 = vmatprep.subr.mxu1 %v7581_v27  ;;  %v12389_v61 = vld [vmem:[#allocation3 + $0x61] sm:$0xff] }
 0x26d   : > { %9456 = vmatprep.mubr.f32.mxu1 %v12206_v22  ;;  %9587 = vmatpush3.msra.mxu1 %v7581_v27  ;;  %v7616_v27 = vld [vmem:[%s13293_s4 + $0x340] sm:$0xff] }
 0x26e   : > { %9540 = vmatmul.mubr.f32.gmra.mxu0 %v12023_v34  ;;  %v7601_v34 = vld [vmem:[%s13293_s4 + $0x2c8] sm:$0xff]  ;;  %9588 = vmatprep.subr.mxu1 %v7580_v42 }
 0x26f   : > { %9542 = vmatprep.mubr.f32.mxu0 %v12040_v30  ;;  %9655 = vmatpush3.msra.mxu0 %v7603_v43  ;;  %v12227_v30 = vld [vmem:[#allocation3 + $0xb2] sm:$0xff] }
 0x270   : > { %9457 = vmatmul.mubr.f32.gmra.mxu1 %v12213_v40  ;;  %9656 = vmatprep.subr.mxu0 %v7602_v7  ;;  %v12403_v43 = vld [vmem:[#allocation3 + $0x79] sm:$0xff] }
 0x271   : > { %9459 = vmatprep.mubr.f32.mxu1 %v12220_v54  ;;  %9657 = vmatpush3.msra.mxu0 %v7602_v7  ;;  %v7614_v7 = vld [vmem:[%s13293_s4 + $0x330] sm:$0xff] }
 0x272   : > { %9543 = vmatmul.mubr.f32.gmra.mxu0 %v12042_v52  ;;  %9658 = vmatprep.subr.mxu0 %v7601_v34  ;;  %v7600_v52 = vld [vmem:[%s13293_s4 + $0x2c0] sm:$0xff] }
 0x273   : > { %9545 = vmatprep.mubr.f32.mxu0 %v12056_v25  ;;  %9589 = vmatpush3.msra.mxu1 %v7580_v42  ;;  %v12241_v25 = vld [vmem:[#allocation3 + $0xca] sm:$0xff] }
 0x274   : > { %9460 = vmatmul.mubr.f32.gmra.mxu1 %v12227_v30  ;;  %9590 = vmatprep.subr.mxu1 %v7579_v59  ;;  %v12417_v42 = vld [vmem:[#allocation3 + $0x91] sm:$0xff] }
 0x275   : > { %9462 = vmatprep.mubr.f32.mxu1 %v12234_v39  ;;  %9659 = vmatpush3.msra.mxu0 %v7601_v34  ;;  %v7635_v34 = vld [vmem:[%s13293_s4 + $0x3d8] sm:$0xff] }
 0x276   : > { %9546 = vmatmul.mubr.f32.gmra.mxu0 %v12058_v5  ;;  %9660 = vmatprep.subr.mxu0 %v7600_v52  ;;  %v7598_v5 = vld [vmem:[%s13293_s4 + $0x2b0] sm:$0xff] }
 0x277   : > { %9548 = vmatprep.mubr.f32.mxu0 %v12067_v26  ;;  %9661 = vmatpush3.msra.mxu0 %v7600_v52  ;;  %v12255_v26 = vld [vmem:[#allocation3 + $0xe2] sm:$0xff]  ;;  %v7612_v52 = vld [vmem:[%s13293_s4 + $0x320] sm:$0xff] }
 0x278   : > { %9463 = vmatmul.mubr.f32.gmra.mxu1 %v12241_v25  ;;  %9662 = vmatprep.subr.mxu0 %v7599_v44 }
 0x279   : > { %9465 = vmatprep.mubr.f32.mxu1 %v12248_v32  ;;  %9591 = vmatpush3.msra.mxu1 %v7579_v59  ;;  %v12431_v59 = vld [vmem:[#allocation3 + $0xa9] sm:$0xff] }
 0x27a   : > { %9549 = vmatmul.mubr.f32.gmra.mxu0 %v12069_v14  ;;  %v7597_v14 = vld [vmem:[%s13293_s4 + $0x2a8] sm:$0xff]  ;;  %9592 = vmatprep.subr.mxu1 %v7578_v41 }
 0x27b   : > { %9551 = vmatprep.mubr.f32.mxu0 %v12077_v6  ;;  %9663 = vmatpush3.msra.mxu0 %v7599_v44  ;;  %v12269_v6 = vld [vmem:[#allocation3 + $0xfa] sm:$0xff] }
 0x27c   : > { %9466 = vmatmul.mubr.f32.gmra.mxu1 %v12255_v26  ;;  %9664 = vmatprep.subr.mxu0 %v7598_v5  ;;  %v12446_v44 = vld [vmem:[#allocation3 + $0xc1] sm:$0xff] }
 0x27d   : > { %9468 = vmatprep.mubr.f32.mxu1 %v12262_v37  ;;  %9665 = vmatpush3.msra.mxu0 %v7598_v5  ;;  %v7611_v5 = vld [vmem:[%s13293_s4 + $0x318] sm:$0xff] }
 0x27e   : > { %9552 = vmatmul.mubr.f32.gmra.mxu0 %v12079_v9  ;;  %9666 = vmatprep.subr.mxu0 %v7597_v14  ;;  %v7596_v9 = vld [vmem:[%s13293_s4 + $0x2a0] sm:$0xff] }
 0x27f   : > { %9554 = vmatprep.mubr.f32.mxu0 %v12089_v4  ;;  %9593 = vmatpush3.msra.mxu1 %v7578_v41  ;;  %v7595_v4 = vld [vmem:[%s13293_s4 + $0x298] sm:$0xff]  ;;  %v12460_v41 = vld [vmem:[#allocation3 + $0xd9] sm:$0xff] }
 0x280   : > { %9469 = vmatmul.mubr.f32.gmra.mxu1 %v12269_v6  ;;  %9594 = vmatprep.subr.mxu1 %v7577_v8 }
 0x281   : > { %9471 = vmatprep.mubr.f32.mxu1 %v12276_v50  ;;  %9667 = vmatpush3.msra.mxu0 %v7597_v14  ;;  %v7631_v14 = vld [vmem:[%s13293_s4 + $0x3b8] sm:$0xff] }
 0x282   : > { %9555 = vmatmul.mubr.f32.gmra.mxu0 %v12091_v3  ;;  %9668 = vmatprep.subr.mxu0 %v7596_v9  ;;  %v7594_v3 = vld [vmem:[%s13293_s4 + $0x290] sm:$0xff] }
 0x283   : > { %9557 = vmatprep.mubr.f32.mxu0 %v12102_v20  ;;  %9669 = vmatpush3.msra.mxu0 %v7596_v9  ;;  %v12297_v20 = vld [vmem:[#allocation3 + $0x12a] sm:$0xff]  ;;  %v7610_v9 = vld [vmem:[%s13293_s4 + $0x310] sm:$0xff] }
 0x284   : > { %9472 = vmatmul.mubr.f32.gmra.mxu1 %v12283_v31  ;;  %9670 = vmatprep.subr.mxu0 %v7595_v4 }
 0x285   : > { %9474 = vmatprep.mubr.f32.mxu1 %v12290_v62  ;;  %9595 = vmatpush3.msra.mxu1 %v7577_v8  ;;  %v12474_v8 = vld [vmem:[#allocation3 + $0xf1] sm:$0xff] }
 0x286   : > { %9558 = vmatmul.mubr.f32.gmra.mxu0 %v12104_v58  ;;  %v7593_v58 = vld [vmem:[%s13293_s4 + $0x288] sm:$0xff]  ;;  %9596 = vmatprep.subr.mxu1 %v7576_v12 }
 0x287   : > { %9560 = vmatprep.mubr.f32.mxu0 %v12116_v16  ;;  %9671 = vmatpush3.msra.mxu0 %v7595_v4  ;;  %v12311_v16 = vld [vmem:[#allocation3 + $0x180] sm:$0xff]  ;;  %v12488_v4 = vld [vmem:[#allocation3 + $0x109] sm:$0xff] }
 0x288   : > { %9475 = vmatmul.mubr.f32.gmra.mxu1 %v12297_v20  ;;  %9672 = vmatprep.subr.mxu0 %v7594_v3 }
 0x289   : > { %9477 = vmatprep.mubr.f32.mxu1 %v12304_v47  ;;  %9673 = vmatpush3.msra.mxu0 %v7594_v3  ;;  %v7609_v3 = vld [vmem:[%s13293_s4 + $0x308] sm:$0xff] }
 0x28a   : > { %9561 = vmatmul.mubr.f32.gmra.mxu0 %v12118_v51  ;;  %9674 = vmatprep.subr.mxu0 %v7593_v58  ;;  %v12323_v51 = vld [vmem:[#allocation3 + $0x188] sm:$0xff] }
 0x28b   : > { %9563 = vmatprep.mubr.f32.mxu0 %v12311_v16  ;;  %9597 = vmatpush3.msra.mxu1 %v7576_v12  ;;  %v12502_v12 = vld [vmem:[#allocation3 + $0x121] sm:$0xff] }
 0x28c   : > { %9478 = vmatmul.mubr.f32.gmra.mxu1 %v12313_v57  ;;  %9726 = vmatprep.subr.mxu1 %v7623_v19 }
 0x28d   : > { %9480 = vmatprep.mubr.f32.mxu1 %v12320_v38  ;;  %9675 = vmatpush3.msra.mxu0 %v7593_v58  ;;  %v7627_v58 = vld [vmem:[%s13293_s4 + $0x398] sm:$0xff] }
 0x28e   : > { %9564 = vmatmul.mubr.f32.gmra.mxu0 %v12323_v51  ;;  %9676 = vmatprep.subr.mxu0 %v7592_v56 }
 0x28f   : > { %9678 = vmatprep.mubr.f32.mxu0 %v12132_v29  ;;  %9677 = vmatpush3.msra.mxu0 %v7592_v56  ;;  %v12343_v29 = vld [vmem:[#allocation3 + $0x172] sm:$0xff] }
 0x290   : > { %9481 = vmatmul.mubr.f32.gmra.mxu1 %v12329_v49  ;;  %9806 = vmatprep.subr.mxu0 %v7639_v46  ;;  %v7608_v56 = vld [vmem:[%s13293_s4 + $0x300] sm:$0xff] }
 0x291   : > { %9483 = vmatprep.mubr.f32.mxu1 %v12336_v18 }
 0x292   : > { %9679 = vmatmul.mubr.f32.vlgmr.msra.gmra.mxu0 %v12144_v1  ;;  %v12353_v1 = vld [vmem:[%s13293_s4 + $0x3e0] sm:$0xff] }
 0x293   : > { %9681 = vmatprep.mubr.f32.mxu0 %v12150_v24  ;;  %9807 = vmatpush3.msra.mxu0 %v7639_v46  ;;  %v5310_v24 = vld [vmem:[#allocation3 + $0x21] sm:$0xff]  ;;  %v12530_v46 = vld [vmem:[#allocation3 + $0x151] sm:$0xff] }
 0x294   : > { %9484 = vmatmul.mubr.f32.gmra.mxu1 %v12343_v29  ;;  %9808 = vmatprep.subr.mxu0 %v7638_v17 }
 0x295   : > { %9598 = vmatprep.mubr.f32.mxu1 %v5309_v63  ;;  %9809 = vmatpush3.msra.mxu0 %v7638_v17  ;;  %v12539_v17 = vld [vmem:[#allocation3 + $0x159] sm:$0xff]  ;;  %v12547_v63 = vld [vmem:[#allocation3 + $0x18a] sm:$0xff] }
 0x296   : > { %9682 = vmatmul.mubr.f32.gmra.mxu0 %v12157_v45  ;;  %9810 = vmatprep.subr.mxu0 %v7637_v28  ;;  %v7621_v45 = vld [vmem:[%s13293_s4 + $0x368] sm:$0xff] }
 0x297   : > { %9684 = vmatprep.mubr.f32.mxu0 %v12164_v21  ;;  %9811 = vmatpush3.msra.mxu0 %v7637_v28  ;;  %v7620_v21 = vld [vmem:[%s13293_s4 + $0x360] sm:$0xff]  ;;  %v7655_v28 = vld [vmem:[%s13293_s4 + $0x478] sm:$0xff] }
 0x298   : > { %9599 = vmatmul.mubr.f32.vlgmr.msra.gmra.mxu1 %v5310_v24  ;;  %9812 = vmatprep.subr.mxu0 %v12353_v1  ;;  %v12557_v24 = vpop.f32.mrf.mxu0 }
 0x299   : > { %9601 = vmatprep.mubr.f32.mxu1 %v12360_v11  ;;  %9727 = vmatpush3.msra.mxu1 %v7623_v19  ;;  %v12516_v19 = vld [vmem:[#allocation3 + $0x139] sm:$0xff] }
 0x29a   : > { %9728 = vmatprep.subr.mxu1 %v7622_v53  ;;  %9685 = vmatmul.mubr.f32.gmra.mxu0 %v12171_v15  ;;  %v7619_v15 = vld [vmem:[%s13293_s4 + $0x358] sm:$0xff] }
 0x29b   : > { %9729 = vmatpush3.msra.mxu1 %v7622_v53  ;;  %9687 = vmatprep.mubr.f32.mxu0 %v12178_v13  ;;  %v12382_v13 = vld [vmem:[#allocation3 + $0x51] sm:$0xff] }
 0x29c   : > { %9602 = vmatmul.mubr.f32.gmra.mxu1 %v12368_v0  ;;  %9730 = vmatprep.subr.mxu1 %v7621_v45  ;;  %v6050_v53 = vld [vmem:[#allocation3 + $0x30] sm:$0xff] }
 0x29d   : > { %9604 = vmatprep.mubr.f32.mxu1 %v12375_v35  ;;  %9731 = vmatpush3.msra.mxu1 %v7621_v45 }
 0x29e   : > { %9688 = vmatmul.mubr.f32.gmra.mxu0 %v12185_v55  ;;  %9732 = vmatprep.subr.mxu1 %v7620_v21  ;;  %v7617_v55 = vld [vmem:[%s13293_s4 + $0x348] sm:$0xff] }
 0x29f   : > { %9690 = vmatprep.mubr.f32.mxu0 %v12192_v36  ;;  %9733 = vmatpush3.msra.mxu1 %v7620_v21  ;;  %v12396_v36 = vld [vmem:[#allocation3 + $0x69] sm:$0xff]  ;;  %v6051_v21 = vld [vmem:[#allocation3 + $0x38] sm:$0xff] }
 0x2a0   : > { %9605 = vmatmul.mubr.f32.gmra.mxu1 %v12382_v13  ;;  %9734 = vmatprep.subr.mxu1 %v7619_v15 }
 0x2a1   : > { %9607 = vmatprep.mubr.f32.mxu1 %v12389_v61  ;;  %9735 = vmatpush3.msra.mxu1 %v7619_v15  ;;  %v12574_v15 = vpop.f32.mrf.mxu1 }
 0x2a2   : > { %9691 = vmatmul.mubr.f32.gmra.mxu0 %v12199_v60  ;;  %9736 = vmatprep.subr.mxu1 %v7618_v2  ;;  %v7615_v60 = vld [vmem:[%s13293_s4 + $0x338] sm:$0xff] }
 0x2a3   : > { %9693 = vmatprep.mubr.f32.mxu0 %v12206_v22  ;;  %9737 = vmatpush3.msra.mxu1 %v7618_v2  ;;  %v12410_v22 = vld [vmem:[#allocation3 + $0x81] sm:$0xff]  ;;  %v6053_v2 = vld [vmem:[#allocation3 + $0x50] sm:$0xff] }
 0x2a4   : > { %9608 = vmatmul.mubr.f32.gmra.mxu1 %v12396_v36  ;;  %9738 = vmatprep.subr.mxu1 %v7617_v55 }
 0x2a5   : > { %9610 = vmatprep.mubr.f32.mxu1 %v12403_v43  ;;  %9739 = vmatpush3.msra.mxu1 %v7617_v55 }
 0x2a6   : > { %9694 = vmatmul.mubr.f32.gmra.mxu0 %v12213_v40  ;;  %9740 = vmatprep.subr.mxu1 %v7616_v27  ;;  %v7613_v40 = vld [vmem:[%s13293_s4 + $0x328] sm:$0xff] }
 0x2a7   : > { %9696 = vmatprep.mubr.f32.mxu0 %v12220_v54  ;;  %9741 = vmatpush3.msra.mxu1 %v7616_v27  ;;  %v12424_v54 = vld [vmem:[#allocation3 + $0x99] sm:$0xff] }
 0x2a8   : > { %9611 = vmatmul.mubr.f32.gmra.mxu1 %v12410_v22  ;;  %9742 = vmatprep.subr.mxu1 %v7615_v60  ;;  %v6054_v27 = vld [vmem:[#allocation3 + $0x60] sm:$0xff] }
 0x2a9   : > { %9613 = vmatprep.mubr.f32.mxu1 %v12417_v42  ;;  %9743 = vmatpush3.msra.mxu1 %v7615_v60 }
 0x2aa   : > { %9697 = vmatmul.mubr.f32.gmra.mxu0 %v12227_v30  ;;  %9744 = vmatprep.subr.mxu1 %v7614_v7  ;;  %v7634_v30 = vld [vmem:[%s13293_s4 + $0x3d0] sm:$0xff] }
 0x2ab   : > { %9699 = vmatprep.mubr.f32.mxu0 %v12234_v39  ;;  %9745 = vmatpush3.msra.mxu1 %v7614_v7  ;;  %v12439_v39 = vld [vmem:[#allocation3 + $0xb1] sm:$0xff] }
 0x2ac   : > { %9614 = vmatmul.mubr.f32.gmra.mxu1 %v12424_v54  ;;  %9813 = vmatpush3.msra.mxu0 %v12353_v1  ;;  %v12553_v1 = vld [vmem:[#allocation3 + $0x171] sm:$0xff] }
 0x2ad   : > { %9616 = vmatprep.mubr.f32.mxu1 %v12431_v59  ;;  %9746 = vmatprep.subr.mxu1 %v7613_v40 }
 0x2ae   : > { %9700 = vmatmul.mubr.f32.gmra.mxu0 %v12241_v25  ;;  %9814 = vmatprep.subr.mxu0 %v7635_v34  ;;  %v7633_v25 = vld [vmem:[%s13293_s4 + $0x3c8] sm:$0xff] }
 0x2af   : > { %9702 = vmatprep.mubr.f32.mxu0 %v12248_v32  ;;  %9747 = vmatpush3.msra.mxu1 %v7613_v40  ;;  %v12453_v32 = vld [vmem:[#allocation3 + $0xc9] sm:$0xff] }
 0x2b0   : > { %9617 = vmatmul.mubr.f32.gmra.mxu1 %v12439_v39  ;;  %9815 = vmatpush3.msra.mxu0 %v7635_v34 }
 0x2b1   : > { %9619 = vmatprep.mubr.f32.mxu1 %v12446_v44  ;;  %9816 = vmatprep.subr.mxu0 %v7634_v30 }
 0x2b2   : > { %9703 = vmatmul.mubr.f32.gmra.mxu0 %v12255_v26  ;;  %9748 = vmatprep.subr.mxu1 %v7612_v52  ;;  %v7632_v26 = vld [vmem:[%s13293_s4 + $0x3c0] sm:$0xff] }
 0x2b3   : > { %9705 = vmatprep.mubr.f32.mxu0 %v12262_v37  ;;  %9817 = vmatpush3.msra.mxu0 %v7634_v30  ;;  %v12467_v37 = vld [vmem:[#allocation3 + $0xe1] sm:$0xff] }
 0x2b4   : > { %9620 = vmatmul.mubr.f32.gmra.mxu1 %v12453_v32  ;;  %9818 = vmatprep.subr.mxu0 %v7633_v25  ;;  %v6055_v30 = vld [vmem:[#allocation3 + $0x68] sm:$0xff] }
 0x2b5   : > { %9622 = vmatprep.mubr.f32.mxu1 %v12460_v41  ;;  %9749 = vmatpush3.msra.mxu1 %v7612_v52  ;;  %v7650_v52 = vld [vmem:[%s13293_s4 + $0x450] sm:$0xff] }
 0x2b6   : > { %9706 = vmatmul.mubr.f32.gmra.mxu0 %v12269_v6  ;;  %9750 = vmatprep.subr.mxu1 %v7611_v5  ;;  %v7630_v6 = vld [vmem:[%s13293_s4 + $0x3b0] sm:$0xff] }
 0x2b7   : > { %9708 = vmatprep.mubr.f32.mxu0 %v12276_v50  ;;  %9819 = vmatpush3.msra.mxu0 %v7633_v25  ;;  %v12481_v50 = vld [vmem:[#allocation3 + $0xf9] sm:$0xff] }
 0x2b8   : > { %9623 = vmatmul.mubr.f32.gmra.mxu1 %v12467_v37  ;;  %9820 = vmatprep.subr.mxu0 %v7632_v26 }
 0x2b9   : > { %9625 = vmatprep.mubr.f32.mxu1 %v12474_v8  ;;  %9821 = vmatpush3.msra.mxu0 %v7632_v26 }
 0x2ba   : > { %9709 = vmatmul.mubr.f32.gmra.mxu0 %v12283_v31  ;;  %9822 = vmatprep.subr.mxu0 %v7631_v14  ;;  %v7629_v31 = vld [vmem:[%s13293_s4 + $0x3a8] sm:$0xff] }
 0x2bb   : > { %9711 = vmatprep.mubr.f32.mxu0 %v12290_v62  ;;  %9751 = vmatpush3.msra.mxu1 %v7611_v5  ;;  %v12495_v62 = vld [vmem:[#allocation3 + $0x111] sm:$0xff] }
 0x2bc   : > { %9626 = vmatmul.mubr.f32.gmra.mxu1 %v12481_v50  ;;  %9823 = vmatpush3.msra.mxu0 %v7631_v14  ;;  %v6056_v5 = vld [vmem:[#allocation3 + $0x78] sm:$0xff] }
 0x2bd   : > { %9628 = vmatprep.mubr.f32.mxu1 %v12488_v4  ;;  %9824 = vmatprep.subr.mxu0 %v7630_v6 }
 0x2be   : > { %9712 = vmatmul.mubr.f32.gmra.mxu0 %v12297_v20  ;;  %9752 = vmatprep.subr.mxu1 %v7610_v9  ;;  %v7628_v20 = vld [vmem:[%s13293_s4 + $0x3a0] sm:$0xff] }
 0x2bf   : > { %9714 = vmatprep.mubr.f32.mxu0 %v12304_v47  ;;  %9825 = vmatpush3.msra.mxu0 %v7630_v6  ;;  %v12509_v47 = vld [vmem:[#allocation3 + $0x129] sm:$0xff] }
 0x2c0   : > { %9629 = vmatmul.mubr.f32.gmra.mxu1 %v12495_v62  ;;  %9826 = vmatprep.subr.mxu0 %v7629_v31 }
 0x2c1   : > { %9631 = vmatprep.mubr.f32.mxu1 %v12502_v12  ;;  %9753 = vmatpush3.msra.mxu1 %v7610_v9 }
 0x2c2   : > { %9715 = vmatmul.mubr.f32.gmra.mxu0 %v12313_v57  ;;  %9754 = vmatprep.subr.mxu1 %v7609_v3  ;;  %v7626_v57 = vld [vmem:[%s13293_s4 + $0x390] sm:$0xff] }
 0x2c3   : > { %9717 = vmatprep.mubr.f32.mxu0 %v12320_v38  ;;  %9827 = vmatpush3.msra.mxu0 %v7629_v31  ;;  %v12523_v38 = vld [vmem:[#allocation3 + $0x141] sm:$0xff] }
 0x2c4   : > { %9632 = vmatmul.mubr.f32.gmra.mxu1 %v12509_v47  ;;  %9828 = vmatprep.subr.mxu0 %v7628_v20  ;;  %v6057_v31 = vld [vmem:[#allocation3 + $0x80] sm:$0xff] }
 0x2c5   : > { %9634 = vmatprep.mubr.f32.mxu1 %v12516_v19  ;;  %9829 = vmatpush3.msra.mxu0 %v7628_v20 }
 0x2c6   : > { %9718 = vmatmul.mubr.f32.gmra.mxu0 %v12329_v49  ;;  %9830 = vmatprep.subr.mxu0 %v7627_v58  ;;  %v7625_v49 = vld [vmem:[%s13293_s4 + $0x388] sm:$0xff] }
 0x2c7   : > { %9720 = vmatprep.mubr.f32.mxu0 %v12336_v18  ;;  %9755 = vmatpush3.msra.mxu1 %v7609_v3  ;;  %v12537_v18 = vld [vmem:[#allocation3 + $0x182] sm:$0xff]  ;;  %v7648_v3 = vld [vmem:[%s13293_s4 + $0x440] sm:$0xff] }
 0x2c8   : > { %9635 = vmatmul.mubr.f32.gmra.mxu1 %v12523_v38  ;;  %9831 = vmatpush3.msra.mxu0 %v7627_v58  ;;  %v6058_v58 = vld [vmem:[#allocation3 + $0x90] sm:$0xff] }
 0x2c9   : > { %9637 = vmatprep.mubr.f32.mxu1 %v12530_v46  ;;  %9832 = vmatprep.subr.mxu0 %v7626_v57 }
 0x2ca   : > { %9721 = vmatmul.mubr.f32.gmra.mxu0 %v12343_v29  ;;  %9756 = vmatprep.subr.mxu1 %v7608_v56  ;;  %v7624_v29 = vld [vmem:[%s13293_s4 + $0x380] sm:$0xff] }
 0x2cb   : > { %9723 = vmatprep.mubr.f32.mxu0 %v12537_v18  ;;  %9833 = vmatpush3.msra.mxu0 %v7626_v57 }
 0x2cc   : > { %9638 = vmatmul.mubr.f32.gmra.mxu1 %v12539_v17  ;;  %9834 = vmatprep.subr.mxu0 %v7625_v49 }
 0x2cd   : > { %9640 = vmatprep.mubr.f32.mxu1 %v12085_v48  ;;  %9757 = vmatpush3.msra.mxu1 %v7608_v56  ;;  %v12562_v48 = vld [vmem:[#allocation3 + $0x189] sm:$0xff] }
 0x2ce   : > { %9724 = vmatmul.mubr.f32.gmra.mxu0 %v12547_v63  ;;  %9886 = vmatprep.subr.mxu1 %v7655_v28 }
 0x2cf   : > { %9835 = vmatpush3.msra.mxu0 %v7625_v49  ;;  %9838 = vmatprep.mubr.f32.mxu0 %v12360_v11 }
 0x2d0   : > { %9641 = vmatmul.mubr.f32.gmra.mxu1 %v12553_v1  ;;  %9836 = vmatprep.subr.mxu0 %v7624_v29 }
 0x2d1   : > { %9643 = vmatprep.mubr.f32.mxu1 %v3859_v33  ;;  %9837 = vmatpush3.msra.mxu0 %v7624_v29  ;;  %v6052_v33 = vld [vmem:[#allocation3 + $0x48] sm:$0xff]  ;;  %v6059_v29 = vld [vmem:[#allocation3 + $0x98] sm:$0xff] }
 0x2d2   : > { %9839 = vmatmul.mubr.f32.vlgmr.msra.gmra.mxu0 %v12368_v0 }
 0x2d3   : > { %9841 = vmatprep.mubr.f32.mxu0 %v12375_v35  ;;  %v9363_v45 = vpop.f32.mrf.mxu0  ;;  %v7653_v35 = vld [vmem:[%s13293_s4 + $0x468] sm:$0xff] }
 0x2d4   : > { %9644 = vmatmul.mubr.f32.gmra.mxu1 %v12562_v48 }
 0x2d5   : > { %9758 = vmatprep.mubr.f32.mxu1 %v6050_v53  ;;  %v4324_v11 = vpop.f32.mrf.mxu0  ;;  %v7646_v53 = vld [vmem:[%s13293_s4 + $0x430] sm:$0xff] }
 0x2d6   : > { %9842 = vmatmul.mubr.f32.gmra.mxu0 %v12382_v13 }
 0x2d7   : > { %9844 = vmatprep.mubr.f32.mxu0 %v12389_v61  ;;  %v9366_v0 = vpop.f32.mrf.mxu0  ;;  %v7652_v61 = vld [vmem:[%s13293_s4 + $0x460] sm:$0xff] }
 0x2d8   : > { %9759 = vmatmul.mubr.f32.vlgmr.msra.gmra.mxu1 %v6051_v21 }
 0x2d9   : > { %9761 = vmatprep.mubr.f32.mxu1 %v6052_v33  ;;  %9887 = vmatpush3.msra.mxu1 %v7655_v28  ;;  %v4334_v13 = vpop.f32.mrf.mxu0 }
 0x2da   : > { %9888 = vmatprep.subr.mxu1 %v7654_v10  ;;  %9845 = vmatmul.mubr.f32.gmra.mxu0 %v12396_v36  ;;  %v7651_v36 = vld [vmem:[%s13293_s4 + $0x458] sm:$0xff] }
 0x2db   : > { %9889 = vmatpush3.msra.mxu1 %v7654_v10  ;;  %9847 = vmatprep.mubr.f32.mxu0 %v12403_v43  ;;  %v9283_v55 = vpop.f32.mrf.mxu1 }
 0x2dc   : > { %9762 = vmatmul.mubr.f32.gmra.mxu1 %v6053_v2  ;;  %9890 = vmatprep.subr.mxu1 %v7653_v35  ;;  %v9369_v60 = vpop.f32.mrf.mxu0  ;;  %v12581_v7 = vadd.f32 %v9363_v45, %v9283_v55 }
 0x2dd   : > { %9764 = vmatprep.mubr.f32.mxu1 %v6054_v27  ;;  %9891 = vmatpush3.msra.mxu1 %v7653_v35  ;;  %v4018_v40 = vpop.f32.mrf.mxu1  ;;  %v6061_v35 = vld [vmem:[#allocation3 + $0xb0] sm:$0xff] }
 0x2de   : > { %9848 = vmatmul.mubr.f32.gmra.mxu0 %v12410_v22  ;;  %9892 = vmatprep.subr.mxu1 %v7652_v61  ;;  %v4344_v43 = vpop.f32.mrf.mxu0  ;;  %v12587_v34 = vadd.f32 %v4324_v11, %v4018_v40  ;;  %v7649_v22 = vld [vmem:[%s13293_s4 + $0x448] sm:$0xff]  ;;  %v6060_v11 = vld [vmem:[#allocation3 + $0xa8] sm:$0xff] }
 0x2df   : > { %9850 = vmatprep.mubr.f32.mxu0 %v12417_v42  ;;  %9893 = vmatpush3.msra.mxu1 %v7652_v61  ;;  %v9286_v25 = vpop.f32.mrf.mxu1  ;;  %v6062_v61 = vld [vmem:[#allocation3 + $0xc0] sm:$0xff]  ;;  %v6063_v40 = vld [vmem:[#allocation3 + $0xc8] sm:$0xff] }
 0x2e0   : > { %9765 = vmatmul.mubr.f32.gmra.mxu1 %v6055_v30  ;;  %v9372_v26 = vpop.f32.mrf.mxu0  ;;  %9894 = vmatprep.subr.mxu1 %v7651_v36  ;;  %v12593_v14 = vadd.f32 %v9366_v0, %v9286_v25 }
 0x2e1   : > { %9767 = vmatprep.mubr.f32.mxu1 %v6056_v5  ;;  %9895 = vmatpush3.msra.mxu1 %v7651_v36  ;;  %v4028_v6 = vpop.f32.mrf.mxu1 }
 0x2e2   : > { %9851 = vmatmul.mubr.f32.gmra.mxu0 %v12424_v54  ;;  %v4354_v42 = vpop.f32.mrf.mxu0  ;;  %9896 = vmatprep.subr.mxu1 %v7650_v52  ;;  %v12599_v9 = vadd.f32 %v4334_v13, %v4028_v6  ;;  %v7647_v54 = vld [vmem:[%s13293_s4 + $0x438] sm:$0xff]  ;;  %v7644_v13 = vld [vmem:[%s13293_s4 + $0x420] sm:$0xff]  ;;  %v6065_v6 = vld [vmem:[#allocation3 + $0xe0] sm:$0xff] }
 0x2e3   : > { %9853 = vmatprep.mubr.f32.mxu0 %v12431_v59  ;;  %9897 = vmatpush3.msra.mxu1 %v7650_v52  ;;  %v9289_v20 = vpop.f32.mrf.mxu1  ;;  %v6064_v52 = vld [vmem:[#allocation3 + $0xd8] sm:$0xff] }
 0x2e4   : > { %9768 = vmatmul.mubr.f32.gmra.mxu1 %v6057_v31  ;;  %v9375_v57 = vpop.f32.mrf.mxu0  ;;  %9898 = vmatprep.subr.mxu1 %v7649_v22  ;;  %v12605_v56 = vadd.f32 %v9369_v60, %v9289_v20 }
 0x2e5   : > { %9770 = vmatprep.mubr.f32.mxu1 %v6058_v58  ;;  %9899 = vmatpush3.msra.mxu1 %v7649_v22  ;;  %v4038_v49 = vpop.f32.mrf.mxu1 }
 0x2e6   : > { %9854 = vmatmul.mubr.f32.gmra.mxu0 %v12439_v39  ;;  %v4364_v59 = vpop.f32.mrf.mxu0  ;;  %9900 = vmatprep.subr.mxu1 %v7648_v3  ;;  %v12611_v28 = vadd.f32 %v4344_v43, %v4038_v49  ;;  %v7645_v39 = vld [vmem:[%s13293_s4 + $0x428] sm:$0xff]  ;;  %v7642_v43 = vld [vmem:[%s13293_s4 + $0x410] sm:$0xff] }
 0x2e7   : > { %9856 = vmatprep.mubr.f32.mxu0 %v12446_v44  ;;  %9901 = vmatpush3.msra.mxu1 %v7648_v3  ;;  %v9292_v45 = vpop.f32.mrf.mxu1  ;;  %v6066_v3 = vld [vmem:[#allocation3 + $0xf0] sm:$0xff] }
 0x2e8   : > { %9771 = vmatmul.mubr.f32.gmra.mxu1 %v6059_v29  ;;  %v9378_v21 = vpop.f32.mrf.mxu0  ;;  %9902 = vmatprep.subr.mxu1 %v7647_v54  ;;  %v12617_v10 = vadd.f32 %v9372_v26, %v9292_v45 }
 0x2e9   : > { %9773 = vmatprep.mubr.f32.mxu1 %v6060_v11  ;;  %9903 = vmatpush3.msra.mxu1 %v7647_v54  ;;  %v4048_v33 = vpop.f32.mrf.mxu1  ;;  %v6067_v54 = vld [vmem:[#allocation3 + $0xf8] sm:$0xff] }
 0x2ea   : > { %9857 = vmatmul.mubr.f32.gmra.mxu0 %v12453_v32  ;;  %v4374_v44 = vpop.f32.mrf.mxu0  ;;  %9904 = vmatprep.subr.mxu1 %v7646_v53  ;;  %v12623_v0 = vadd.f32 %v4354_v42, %v4048_v33  ;;  %v7643_v32 = vld [vmem:[%s13293_s4 + $0x418] sm:$0xff]  ;;  %v7640_v42 = vld [vmem:[%s13293_s4 + $0x400] sm:$0xff] }
 0x2eb   : > { %9859 = vmatprep.mubr.f32.mxu0 %v12460_v41  ;;  %9905 = vmatpush3.msra.mxu1 %v7646_v53  ;;  %v9295_v2 = vpop.f32.mrf.mxu1 }
 0x2ec   : > { %9774 = vmatmul.mubr.f32.gmra.mxu1 %v6061_v35  ;;  %v9381_v55 = vpop.f32.mrf.mxu0  ;;  %9906 = vmatprep.subr.mxu1 %v7645_v39  ;;  %v12629_v27 = vadd.f32 %v9375_v57, %v9295_v2 }
 0x2ed   : > { %9776 = vmatprep.mubr.f32.mxu1 %v6062_v61  ;;  %9907 = vmatpush3.msra.mxu1 %v7645_v39  ;;  %v4058_v60 = vpop.f32.mrf.mxu1 }
 0x2ee   : > { %9860 = vmatmul.mubr.f32.gmra.mxu0 %v12467_v37  ;;  %v4384_v41 = vpop.f32.mrf.mxu0  ;;  %9908 = vmatprep.subr.mxu1 %v7644_v13  ;;  %v12635_v36 = vadd.f32 %v4364_v59, %v4058_v60  ;;  %v7641_v37 = vld [vmem:[%s13293_s4 + $0x408] sm:$0xff]  ;;  %v6068_v59 = vld [vmem:[#allocation3 + $0x108] sm:$0xff] }
 0x2ef   : > { %9862 = vmatprep.mubr.f32.mxu0 %v12474_v8  ;;  %9909 = vmatpush3.msra.mxu1 %v7644_v13  ;;  %v9298_v30 = vpop.f32.mrf.mxu1 }
 0x2f0   : > { %9777 = vmatmul.mubr.f32.gmra.mxu1 %v6063_v40  ;;  %v9384_v25 = vpop.f32.mrf.mxu0  ;;  %9910 = vmatprep.subr.mxu1 %v7643_v32  ;;  %v12641_v5 = vadd.f32 %v9378_v21, %v9298_v30  ;;  %v6069_v21 = vld [vmem:[#allocation3 + $0x110] sm:$0xff] }
 0x2f1   : > { %9779 = vmatprep.mubr.f32.mxu1 %v6064_v52  ;;  %9911 = vmatpush3.msra.mxu1 %v7643_v32  ;;  %v4068_v26 = vpop.f32.mrf.mxu1  ;;  %v6074_v52 = vld [vmem:[#allocation3 + $0x150] sm:$0xff] }
 0x2f2   : > { %9863 = vmatmul.mubr.f32.gmra.mxu0 %v12481_v50  ;;  %v4394_v8 = vpop.f32.mrf.mxu0  ;;  %9912 = vmatprep.subr.mxu1 %v7642_v43  ;;  %v12647_v22 = vadd.f32 %v4374_v44, %v4068_v26  ;;  %v6448_v26 = vld [vmem:[#allocation3 + $0x181] sm:$0xff] }
 0x2f3   : > { %9865 = vmatprep.mubr.f32.mxu0 %v12488_v4  ;;  %9913 = vmatpush3.msra.mxu1 %v7642_v43  ;;  %v9301_v31 = vpop.f32.mrf.mxu1 }
 0x2f4   : > { %9780 = vmatmul.mubr.f32.gmra.mxu1 %v6065_v6  ;;  %v9387_v20 = vpop.f32.mrf.mxu0  ;;  %9914 = vmatprep.subr.mxu1 %v7641_v37  ;;  %v12653_v58 = vadd.f32 %v9381_v55, %v9301_v31  ;;  %v6072_v55 = vld [vmem:[#allocation3 + $0x138] sm:$0xff]  ;;  %v6076_v31 = vld [vmem:[#allocation3 + $0x168] sm:$0xff] }
 0x2f5   : > { %9782 = vmatprep.mubr.f32.mxu1 %v6066_v3  ;;  %9915 = vmatpush3.msra.mxu1 %v7641_v37  ;;  %v4078_v50 = vpop.f32.mrf.mxu1 }
 0x2f6   : > { %9866 = vmatmul.mubr.f32.gmra.mxu0 %v12495_v62  ;;  %v4404_v57 = vpop.f32.mrf.mxu0  ;;  %9916 = vmatprep.subr.mxu1 %v7640_v42  ;;  %v12656_v4 = vadd.f32 %v4384_v41, %v4078_v50  ;;  %v6446_v41 = vld [vmem:[#allocation3 + $0x169] sm:$0xff] }
 0x2f7   : > { %9868 = vmatprep.mubr.f32.mxu0 %v12502_v12  ;;  %9917 = vmatpush3.msra.mxu1 %v7640_v42  ;;  %v9304_v49 = vpop.f32.mrf.mxu1  ;;  %v6070_v12 = vld [vmem:[#allocation3 + $0x120] sm:$0xff] }
 0x2f8   : > { %9783 = vmatmul.mubr.f32.gmra.mxu1 %v6067_v54  ;;  %v9390_v29 = vpop.f32.mrf.mxu0  ;;  %v12659_v53 = vadd.f32 %v9384_v25, %v9304_v49 }
 0x2f9   : > { %9785 = vmatprep.mubr.f32.mxu1 %v6068_v59  ;;  %v4088_v45 = vpop.f32.mrf.mxu1  ;;  %v6451_v59 = vld [vmem:[#allocation3 + $0x1a1] sm:$0xff] }
 0x2fa   : > { %9869 = vmatmul.mubr.f32.gmra.mxu0 %v12509_v47  ;;  %v4414_v11 = vpop.f32.mrf.mxu0  ;;  %v12662_v62 = vadd.f32 %v4394_v8, %v4088_v45  ;;  %v6071_v47 = vld [vmem:[#allocation3 + $0x128] sm:$0xff] }
 0x2fb   : > { %9871 = vmatprep.mubr.f32.mxu0 %v12516_v19  ;;  %v9307_v39 = vpop.f32.mrf.mxu1 }
 0x2fc   : > { %9786 = vmatmul.mubr.f32.gmra.mxu1 %v6069_v21  ;;  %v9393_v33 = vpop.f32.mrf.mxu0  ;;  %v12665_v44 = vadd.f32 %v9387_v20, %v9307_v39  ;;  %v6450_v20 = vld [vmem:[#allocation3 + $0x199] sm:$0xff] }
 0x2fd   : > { %9788 = vmatprep.mubr.f32.mxu1 %v6070_v12  ;;  %v4098_v35 = vpop.f32.mrf.mxu1 }
 0x2fe   : > { %9872 = vmatmul.mubr.f32.gmra.mxu0 %v12523_v38  ;;  %v4424_v13 = vpop.f32.mrf.mxu0  ;;  %v12668_v2 = vadd.f32 %v4404_v57, %v4098_v35  ;;  %v6073_v38 = vld [vmem:[#allocation3 + $0x140] sm:$0xff] }
 0x2ff   : > { %9874 = vmatprep.mubr.f32.mxu0 %v12530_v46  ;;  %v9310_v61 = vpop.f32.mrf.mxu1 }
 0x300   : > { %9789 = vmatmul.mubr.f32.gmra.mxu1 %v6071_v47  ;;  %v9396_v19 = vpop.f32.mrf.mxu0  ;;  %v12671_v32 = vadd.f32 %v9390_v29, %v9310_v61 }
 0x301   : > { %9791 = vmatprep.mubr.f32.mxu1 %v6072_v55  ;;  %v4108_v60 = vpop.f32.mrf.mxu1 }
 0x302   : > { %9875 = vmatmul.mubr.f32.gmra.mxu0 %v12539_v17  ;;  %v4434_v40 = vpop.f32.mrf.mxu0  ;;  %v12674_v43 = vadd.f32 %v4414_v11, %v4108_v60  ;;  %v6075_v17 = vld [vmem:[#allocation3 + $0x158] sm:$0xff] }
 0x303   : > { %9877 = vmatprep.mubr.f32.mxu0 %v6446_v41  ;;  %v9313_v30 = vpop.f32.mrf.mxu1 }
 0x304   : > { %9792 = vmatmul.mubr.f32.gmra.mxu1 %v6073_v38  ;;  %v9399_v46 = vpop.f32.mrf.mxu0  ;;  %v12676_v25 = vadd.f32 %v9393_v33, %v9313_v30 }
 0x305   : > { %9794 = vmatprep.mubr.f32.mxu1 %v6074_v52  ;;  %v4118_v37 = vpop.f32.mrf.mxu1 }
 0x306   : > { %9878 = vmatmul.mubr.f32.gmra.mxu0 %v12553_v1  ;;  %v4444_v8 = vpop.f32.mrf.mxu0  ;;  %v12679_v6 = vadd.f32 %v4424_v13, %v4118_v37  ;;  %v6077_v1 = vld [vmem:[#allocation3 + $0x170] sm:$0xff] }
 0x307   : > { %9880 = vmatprep.mubr.f32.mxu0 %v6448_v26  ;;  %v9316_v42 = vpop.f32.mrf.mxu1  ;;  %v9976_v13 = vld [vmem:[#allocation2] sm:$0xff]  ;;  %v4505_v26 = vadd.f32 %v12557_v24, %v12574_v15 }
 0x308   : > { %9795 = vmatmul.mubr.f32.gmra.mxu1 %v6075_v17  ;;  %v9402_v3 = vpop.f32.mrf.mxu0  ;;  %v12681_v50 = vadd.f32 %v9396_v19, %v9316_v42  ;;  %v6795_v15 = vld [vmem:[#allocation3 + $0x6a] sm:$0xff] }
 0x309   : > { %9797 = vmatprep.mubr.f32.mxu1 %v6076_v31  ;;  %v4128_v57 = vpop.f32.mrf.mxu1 }
 0x30a   : > { %9881 = vmatmul.mubr.f32.gmra.mxu0 %v12562_v48  ;;  %v4454_v54 = vpop.f32.mrf.mxu0  ;;  %v12684_v49 = vadd.f32 %v4434_v40, %v4128_v57 }
 0x30b   : > { %9883 = vmatprep.mubr.f32.mxu0 %v6450_v20  ;;  %v9319_v29 = vpop.f32.mrf.mxu1  ;;  %v6793_v20 = vld [vmem:[#allocation3 + $0x52] sm:$0xff] }
 0x30c   : > { %9798 = vmatmul.mubr.f32.gmra.mxu1 %v6077_v1  ;;  %v9405_v45 = vpop.f32.mrf.mxu0  ;;  %v12686_v11 = vadd.f32 %v9399_v46, %v9319_v29  ;;  %v6792_v46 = vld [vmem:[#allocation3 + $0x4a] sm:$0xff] }
 0x30d   : > { %9800 = vmatprep.mubr.f32.mxu1 %v12311_v16  ;;  %v4138_v21 = vpop.f32.mrf.mxu1  ;;  %v6790_v16 = vld [vmem:[#allocation3 + $0x32] sm:$0xff] }
 0x30e   : > { %v4464_v39 = vpop.f32.mrf.mxu0  ;;  %9884 = vmatmul.mubr.f32.gmra.mxu0 %v6451_v59  ;;  %v12689_v12 = vadd.f32 %v4444_v8, %v4138_v21 }
 0x30f   : > { %v9322_v33 = vpop.f32.mrf.mxu1 }
 0x310   : > { %9801 = vmatmul.mubr.f32.gmra.mxu1 %v12323_v51  ;;  %v9520_v48 = vpop.f32.mrf.mxu0  ;;  %v12692_v35 = vadd.f32 %v9402_v3, %v9322_v33  ;;  %v6791_v51 = vld [vmem:[#allocation3 + $0x3a] sm:$0xff] }
 0x311   : > { %9803 = vmatprep.mubr.f32.mxu1 %v9976_v13  ;;  %v4148_v47 = vpop.f32.mrf.mxu1 }
 0x312   : > { %v5054_v61 = vpop.f32.mrf.mxu0  ;;  %v12694_v55 = vadd.f32 %v4454_v54, %v4148_v47  ;;  %v6794_v54 = vld [vmem:[#allocation3 + $0x62] sm:$0xff] }
 0x313   : > { %v9325_v19 = vpop.f32.mrf.mxu1 }
 0x314   : > { %9804 = vmatmul.mubr.f32.gmra.mxu1 %v9976_v13  ;;  %v9523_v60 = vpop.f32.mrf.mxu0  ;;  %v12696_v41 = vadd.f32 %v9405_v45, %v9325_v19 }
 0x315   : > { %9918 = vmatprep.mubr.f32.mxu1 %v6790_v16  ;;  %v4158_v40 = vpop.f32.mrf.mxu1  ;;  %v6797_v16 = vld [vmem:[#allocation3 + $0x82] sm:$0xff] }
 0x316   : > { %v5064_v38 = vpop.f32.mrf.mxu0  ;;  %v12698_v30 = vadd.f32 %v4464_v39, %v4158_v40  ;;  %v6796_v39 = vld [vmem:[#allocation3 + $0x7a] sm:$0xff] }
 0x317   : > { %v9440_v52 = vpop.f32.mrf.mxu1 }
 0x318   : > { %9919 = vmatmul.mubr.f32.vlgmr.msra.gmra.mxu1 %v6791_v51  ;;  %v9526_v37 = vpop.f32.mrf.mxu0  ;;  %v4876_v8 = vadd.f32 %v9440_v52, %v12130_v23 }
 0x319   : > { %9921 = vmatprep.mubr.f32.mxu1 %v6792_v46  ;;  %v4684_v17 = vpop.f32.mrf.mxu1 }
 0x31a   : > { %v5074_v42 = vpop.f32.mrf.mxu0  ;;  %v12703_v31 = vadd.f32 %v9520_v48, %v4876_v8  ;;  %v4875_v3 = vadd.f32 %v4684_v17, %v4505_v26 }
 0x31c   : > { %v9443_v57 = vpop.f32.mrf.mxu1  ;;  %9922 = vmatmul.mubr.f32.gmra.mxu1 %v6793_v20  ;;  %v12705_v1 = vadd.f32 %v5054_v61, %v4875_v3 }
 0x31d   : > { %v4878_v59 = vadd.f32 %v9443_v57, %v12581_v7  ;;  %9924 = vmatprep.mubr.f32.mxu1 %v6794_v54 }
 0x31e   : > { %v4694_v29 = vpop.f32.mrf.mxu1  ;;  %v9529_v45 = vpop.f32.mrf.mxu0 }
 0x31f   : > { %v12708_v24 = vadd.f32 %v9523_v60, %v4878_v59  ;;  %v4877_v23 = vadd.f32 %v4694_v29, %v12587_v34  ;;  %v6798_v34 = vld [vmem:[#allocation3 + $0x92] sm:$0xff] }
 0x320   : > { %v9446_v21 = vpop.f32.mrf.mxu1  ;;  %9925 = vmatmul.mubr.f32.gmra.mxu1 %v6795_v15  ;;  %v5084_v33 = vpop.f32.mrf.mxu0  ;;  %v6801_v59 = vld [vmem:[#allocation3 + $0xb2] sm:$0xff] }
 0x321   : > { %v12711_v48 = vadd.f32 %v5064_v38, %v4877_v23  ;;  %v4880_v13 = vadd.f32 %v9446_v21, %v12593_v14  ;;  %9927 = vmatprep.mubr.f32.mxu1 %v6796_v39 }
 0x322   : > { %v4704_v47 = vpop.f32.mrf.mxu1  ;;  %v9532_v61 = vpop.f32.mrf.mxu0 }
 0x323   : > { %v12714_v7 = vadd.f32 %v9526_v37, %v4880_v13  ;;  %v4879_v19 = vadd.f32 %v4704_v47, %v12599_v9  ;;  %v6799_v37 = vld [vmem:[#allocation3 + $0x9a] sm:$0xff]  ;;  %v6800_v9 = vld [vmem:[#allocation3 + $0xaa] sm:$0xff] }
 0x324   : > { %v9449_v60 = vpop.f32.mrf.mxu1  ;;  %9928 = vmatmul.mubr.f32.gmra.mxu1 %v6797_v16  ;;  %v5094_v40 = vpop.f32.mrf.mxu0  ;;  %v6803_v13 = vld [vmem:[#allocation3 + $0xca] sm:$0xff] }
 0x325   : > { %v12717_v51 = vadd.f32 %v5074_v42, %v4879_v19  ;;  %v4882_v52 = vadd.f32 %v9449_v60, %v12605_v56  ;;  %9930 = vmatprep.mubr.f32.mxu1 %v6798_v34 }
 0x326   : > { %v4714_v38 = vpop.f32.mrf.mxu1  ;;  %v9535_v46 = vpop.f32.mrf.mxu0 }
 0x327   : > { %v12720_v14 = vadd.f32 %v9529_v45, %v4882_v52  ;;  %v4881_v26 = vadd.f32 %v4714_v38, %v12611_v28  ;;  %v6802_v28 = vld [vmem:[#allocation3 + $0xc2] sm:$0xff] }
 0x328   : > { %v9452_v8 = vpop.f32.mrf.mxu1  ;;  %9931 = vmatmul.mubr.f32.gmra.mxu1 %v6799_v37  ;;  %v5104_v17 = vpop.f32.mrf.mxu0  ;;  %v6805_v52 = vld [vmem:[#allocation3 + $0xe2] sm:$0xff] }
 0x329   : > { %v12723_v3 = vadd.f32 %v5084_v33, %v4881_v26  ;;  %v4884_v20 = vadd.f32 %v9452_v8, %v12617_v10  ;;  %9933 = vmatprep.mubr.f32.mxu1 %v6800_v9 }
 0x32a   : > { %v4724_v42 = vpop.f32.mrf.mxu1  ;;  %v9538_v57 = vpop.f32.mrf.mxu0 }
 0x32b   : > { %v12726_v56 = vadd.f32 %v9532_v61, %v4884_v20  ;;  %v4883_v54 = vadd.f32 %v4724_v42, %v12623_v0  ;;  %v6804_v0 = vld [vmem:[#allocation3 + $0xda] sm:$0xff] }
 0x32c   : > { %v9455_v29 = vpop.f32.mrf.mxu1  ;;  %9934 = vmatmul.mubr.f32.gmra.mxu1 %v6801_v59  ;;  %v5114_v45 = vpop.f32.mrf.mxu0  ;;  %v6807_v20 = vld [vmem:[#allocation3 + $0xfa] sm:$0xff] }
 0x32d   : > { %v12729_v23 = vadd.f32 %v5094_v40, %v4883_v54  ;;  %v4886_v15 = vadd.f32 %v9455_v29, %v12629_v27  ;;  %9936 = vmatprep.mubr.f32.mxu1 %v6802_v28 }
 0x32e   : > { %v4734_v21 = vpop.f32.mrf.mxu1  ;;  %v9541_v39 = vpop.f32.mrf.mxu0 }
 0x32f   : > { %v12732_v10 = vadd.f32 %v9535_v46, %v4886_v15  ;;  %v4885_v33 = vadd.f32 %v4734_v21, %v12635_v36  ;;  %v6806_v36 = vld [vmem:[#allocation3 + $0xf2] sm:$0xff] }
 0x330   : > { %v9458_v47 = vpop.f32.mrf.mxu1  ;;  %9937 = vmatmul.mubr.f32.gmra.mxu1 %v6803_v13  ;;  %v5124_v61 = vpop.f32.mrf.mxu0  ;;  %v6809_v15 = vld [vmem:[#allocation3 + $0x112] sm:$0xff] }
 0x331   : > { %v12735_v19 = vadd.f32 %v5104_v17, %v4885_v33  ;;  %v4888_v16 = vadd.f32 %v9458_v47, %v12641_v5  ;;  %9939 = vmatprep.mubr.f32.mxu1 %v6804_v0 }
 0x332   : > { %v4744_v60 = vpop.f32.mrf.mxu1  ;;  %v9544_v34 = vpop.f32.mrf.mxu0 }
 0x333   : > { %v12738_v27 = vadd.f32 %v9538_v57, %v4888_v16  ;;  %v4887_v40 = vadd.f32 %v4744_v60, %v12647_v22  ;;  %v6808_v22 = vld [vmem:[#allocation3 + $0x10a] sm:$0xff] }
 0x334   : > { %v9461_v38 = vpop.f32.mrf.mxu1  ;;  %9940 = vmatmul.mubr.f32.gmra.mxu1 %v6805_v52  ;;  %v5134_v46 = vpop.f32.mrf.mxu0  ;;  %v6811_v16 = vld [vmem:[#allocation3 + $0x12a] sm:$0xff] }
 0x335   : > { %v12741_v26 = vadd.f32 %v5114_v45, %v4887_v40  ;;  %v4890_v37 = vadd.f32 %v9461_v38, %v12653_v58  ;;  %9942 = vmatprep.mubr.f32.mxu1 %v6806_v36 }
 0x336   : > { %v4754_v8 = vpop.f32.mrf.mxu1  ;;  %v9547_v9 = vpop.f32.mrf.mxu0 }
 0x337   : > { %v12744_v5 = vadd.f32 %v9541_v39, %v4890_v37  ;;  %v4889_v17 = vadd.f32 %v4754_v8, %v12656_v4  ;;  %v6810_v4 = vld [vmem:[#allocation3 + $0x122] sm:$0xff] }
 0x338   : > { %v9464_v42 = vpop.f32.mrf.mxu1  ;;  %9943 = vmatmul.mubr.f32.gmra.mxu1 %v6807_v20  ;;  %v5144_v57 = vpop.f32.mrf.mxu0  ;;  %v6813_v37 = vld [vmem:[#allocation3 + $0x142] sm:$0xff] }
 0x339   : > { %v12747_v54 = vadd.f32 %v5124_v61, %v4889_v17  ;;  %v4892_v59 = vadd.f32 %v9464_v42, %v12659_v53  ;;  %9945 = vmatprep.mubr.f32.mxu1 %v6808_v22 }
 0x33a   : > { %v4764_v29 = vpop.f32.mrf.mxu1  ;;  %v9550_v28 = vpop.f32.mrf.mxu0 }
 0x33b   : > { %v12750_v58 = vadd.f32 %v9544_v34, %v4892_v59  ;;  %v4891_v45 = vadd.f32 %v4764_v29, %v12662_v62  ;;  %v6812_v62 = vld [vmem:[#allocation3 + $0x13a] sm:$0xff] }
 0x33c   : > { %v9467_v21 = vpop.f32.mrf.mxu1  ;;  %9946 = vmatmul.mubr.f32.gmra.mxu1 %v6809_v15  ;;  %v5154_v39 = vpop.f32.mrf.mxu0  ;;  %v6815_v59 = vld [vmem:[#allocation3 + $0x15a] sm:$0xff] }
 0x33d   : > { %v12753_v33 = vadd.f32 %v5134_v46, %v4891_v45  ;;  %v4894_v13 = vadd.f32 %v9467_v21, %v12665_v44  ;;  %9948 = vmatprep.mubr.f32.mxu1 %v6810_v4 }
 0x33e   : > { %v4774_v47 = vpop.f32.mrf.mxu1  ;;  %v9553_v0 = vpop.f32.mrf.mxu0 }
 0x33f   : > { %v12756_v53 = vadd.f32 %v9547_v9, %v4894_v13  ;;  %v4893_v61 = vadd.f32 %v4774_v47, %v12668_v2  ;;  %v6814_v2 = vld [vmem:[#allocation3 + $0x152] sm:$0xff] }
 0x340   : > { %v9470_v60 = vpop.f32.mrf.mxu1  ;;  %9949 = vmatmul.mubr.f32.gmra.mxu1 %v6811_v16  ;;  %v5164_v34 = vpop.f32.mrf.mxu0  ;;  %v6817_v13 = vld [vmem:[#allocation3 + $0x172] sm:$0xff] }
 0x341   : > { %v12759_v40 = vadd.f32 %v5144_v57, %v4893_v61  ;;  %v4896_v52 = vadd.f32 %v9470_v60, %v12671_v32  ;;  %9951 = vmatprep.mubr.f32.mxu1 %v6812_v62  ;;  %v6820_v60 = vld [vmem:[#allocation3 + $0x19a] sm:$0xff] }
 0x342   : > { %v4784_v38 = vpop.f32.mrf.mxu1  ;;  %v9556_v36 = vpop.f32.mrf.mxu0 }
 0x343   : > { %v12762_v44 = vadd.f32 %v9550_v28, %v4896_v52  ;;  %v4895_v46 = vadd.f32 %v4784_v38, %v12674_v43  ;;  %v6816_v43 = vld [vmem:[#allocation3 + $0x16a] sm:$0xff] }
 0x344   : > { %v9473_v8 = vpop.f32.mrf.mxu1  ;;  %9952 = vmatmul.mubr.f32.gmra.mxu1 %v6813_v37  ;;  %v5174_v9 = vpop.f32.mrf.mxu0 }
 0x345   : > { %v12765_v17 = vadd.f32 %v5154_v39, %v4895_v46  ;;  %v4898_v20 = vadd.f32 %v9473_v8, %v12676_v25  ;;  %9954 = vmatprep.mubr.f32.mxu1 %v6814_v2  ;;  %v6821_v46 = vld [vmem:[#allocation3 + $0x1a2] sm:$0xff] }
 0x346   : > { %v4794_v42 = vpop.f32.mrf.mxu1  ;;  %v9559_v22 = vpop.f32.mrf.mxu0 }
 0x347   : > { %v12768_v32 = vadd.f32 %v9553_v0, %v4898_v20  ;;  %v4897_v57 = vadd.f32 %v4794_v42, %v12679_v6 }
 0x348   : > { %v9476_v29 = vpop.f32.mrf.mxu1  ;;  %9955 = vmatmul.mubr.f32.gmra.mxu1 %v6815_v59  ;;  %v5184_v28 = vpop.f32.mrf.mxu0 }
 0x349   : > { %v12771_v45 = vadd.f32 %v5164_v34, %v4897_v57  ;;  %v4900_v15 = vadd.f32 %v9476_v29, %v12681_v50  ;;  %9957 = vmatprep.mubr.f32.mxu1 %v6816_v43 }
 0x34a   : > { %v4804_v21 = vpop.f32.mrf.mxu1  ;;  %v9562_v4 = vpop.f32.mrf.mxu0 }
 0x34b   : > { %v12774_v25 = vadd.f32 %v9556_v36, %v4900_v15  ;;  %v4899_v39 = vadd.f32 %v4804_v21, %v12684_v49 }
 0x34c   : > { %v9479_v47 = vpop.f32.mrf.mxu1  ;;  %9958 = vmatmul.mubr.f32.gmra.mxu1 %v6817_v13  ;;  %v5194_v6 = vpop.f32.mrf.mxu0 }
 0x34d   : > { %v12777_v0 = vadd.f32 %v5174_v9, %v4899_v39  ;;  %v4902_v61 = vadd.f32 %v9479_v47, %v12686_v11  ;;  %9960 = vmatprep.mubr.f32.mxu1 %v12537_v18 }
 0x34e   : > { %v4814_v16 = vpop.f32.mrf.mxu1  ;;  %v9565_v50 = vpop.f32.mrf.mxu0 }
 0x34f   : > { %v12781_v62 = vadd.f32 %v9559_v22, %v4902_v61  ;;  %v4901_v34 = vadd.f32 %v4814_v16, %v12689_v12 }
 0x350   : > { %v9482_v52 = vpop.f32.mrf.mxu1  ;;  %9961 = vmatmul.mubr.f32.gmra.mxu1 %v12547_v63  ;;  %v5204_v49 = vpop.f32.mrf.mxu0 }
 0x351   : > { %v12785_v38 = vadd.f32 %v5184_v28, %v4901_v34  ;;  %v4904_v36 = vadd.f32 %v9482_v52, %v12692_v35  ;;  %9963 = vmatprep.mubr.f32.mxu1 %v6820_v60 }
 0x352   : > { %v4824_v11 = vpop.f32.mrf.mxu1  ;;  %v12788_v37 = vpop.f32.mrf.mxu0 }
 0x353   : > { %v12790_v18 = vadd.f32 %v9562_v4, %v4904_v36  ;;  %v4903_v8 = vadd.f32 %v4824_v11, %v12694_v55 }
 0x354   : > { %v9485_v2 = vpop.f32.mrf.mxu1  ;;  %9964 = vmatmul.mubr.f32.gmra.mxu1 %v6821_v46  ;;  %v12793_v12 = vpop.f32.mrf.mxu0 }
 0x355   : > { %v12795_v9 = vadd.f32 %v5194_v6, %v4903_v8  ;;  %v4906_v63 = vadd.f32 %v9485_v2, %v12696_v41 }
 0x356   : > { %v4834_v20 = vpop.f32.mrf.mxu1  ;;  %v12798_v42 = vpop.f32.mrf.mxu0 }
 0x357   : > { %v12800_v35 = vadd.f32 %v9565_v50, %v4906_v63  ;;  %v4905_v22 = vadd.f32 %v4834_v20, %v12698_v30 }
 0x358   : > { %v9600_v57 = vpop.f32.mrf.mxu1  ;;  %v12803_v59 = vpop.f32.mrf.mxu0 }
 0x359   : > { %v12805_v29 = vadd.f32 %v5204_v49, %v4905_v22  ;;  %v12808_v55 = vadd.f32 %v9600_v57, %v12703_v31 }
 0x35a   : > { %v5424_v43 = vpop.f32.mrf.mxu1  ;;  %v12810_v28 = vpop.f32.mrf.mxu0 }
 0x35b   : > { %v12813_v41 = vadd.f32 %v5424_v43, %v12705_v1 }
 0x35c   : > { %v9603_v15 = vpop.f32.mrf.mxu1  ;;  %v12815_v21 = vpop.f32.mrf.mxu0 }
 0x35d   : > { %v12818_v4 = vadd.f32 %v9603_v15, %v12708_v24 }
 0x35e   : > { %v5434_v30 = vpop.f32.mrf.mxu1  ;;  %v12820_v39 = vpop.f32.mrf.mxu0 }
 0x35f   : > { %v12823_v13 = vadd.f32 %v5434_v30, %v12711_v48 }
 0x360   : > { %v9606_v31 = vpop.f32.mrf.mxu1  ;;  %v12825_v47 = vpop.f32.mrf.mxu0 }
 0x361   : > { %v12828_v6 = vadd.f32 %v9606_v31, %v12714_v7 }
 0x362   : > { %v5444_v1 = vpop.f32.mrf.mxu1  ;;  %v12830_v61 = vpop.f32.mrf.mxu0 }
 0x363   : > { %v12833_v16 = vadd.f32 %v5444_v1, %v12717_v51 }
 0x364   : > { %v9609_v24 = vpop.f32.mrf.mxu1  ;;  %v12835_v60 = vpop.f32.mrf.mxu0 }
 0x365   : > { %v12838_v50 = vadd.f32 %v9609_v24, %v12720_v14 }
 0x366   : > { %v5454_v48 = vpop.f32.mrf.mxu1  ;;  %v12840_v34 = vpop.f32.mrf.mxu0 }
 0x367   : > { %v12843_v52 = vadd.f32 %v5454_v48, %v12723_v3 }
 0x368   : > { %v9612_v7 = vpop.f32.mrf.mxu1  ;;  %v12845_v49 = vpop.f32.mrf.mxu0 }
 0x369   : > { %v12848_v36 = vadd.f32 %v9612_v7, %v12726_v56 }
 0x36a   : > { %v5464_v51 = vpop.f32.mrf.mxu1  ;;  %v12850_v46 = vpop.f32.mrf.mxu0 }
 0x36b   : > { %v12853_v11 = vadd.f32 %v5464_v51, %v12729_v23 }
 0x36c   : > { %v9615_v14 = vpop.f32.mrf.mxu1  ;;  %v12855_v8 = vpop.f32.mrf.mxu0 }
 0x36d   : > { %v12858_v2 = vadd.f32 %v9615_v14, %v12732_v10 }
 0x36e   : > { %v5474_v3 = vpop.f32.mrf.mxu1  ;;  %v12860_v63 = vpop.f32.mrf.mxu0 }
 0x36f   : > { %13508 = vst [vmem:[#allocation9_spill] sm:$0xff] %v12860_v63  ;;  %v12863_v20 = vadd.f32 %v5474_v3, %v12735_v19 }
 0x370   : > { %v9618_v56 = vpop.f32.mrf.mxu1  ;;  %v12865_v22 = vpop.f32.mrf.mxu0 }
 0x371   : > { %13509 = vst [vmem:[#allocation22_spill] sm:$0xff] %v12865_v22  ;;  %v12868_v57 = vadd.f32 %v9618_v56, %v12738_v27 }
 0x372   : > { %v5484_v23 = vpop.f32.mrf.mxu1  ;;  %v12870_v43 = vpop.f32.mrf.mxu0 }
 0x373   : > { %13510 = vst [vmem:[#allocation11_spill] sm:$0xff] %v12870_v43  ;;  %v12873_v15 = vadd.f32 %v5484_v23, %v12741_v26 }
 0x374   : > { %v9621_v10 = vpop.f32.mrf.mxu1  ;;  %v12875_v30 = vpop.f32.mrf.mxu0 }
 0x375   : > { %13511 = vst [vmem:[#allocation19_spill] sm:$0xff] %v12875_v30  ;;  %v12878_v31 = vadd.f32 %v9621_v10, %v12744_v5 }
 0x376   : > { %v5494_v19 = vpop.f32.mrf.mxu1  ;;  %v12880_v1 = vpop.f32.mrf.mxu0 }
 0x377   : > { %13512 = vst [vmem:[#allocation5_spill] sm:$0xff] %v12880_v1  ;;  %v12883_v24 = vadd.f32 %v5494_v19, %v12747_v54 }
 0x378   : > { %v9624_v27 = vpop.f32.mrf.mxu1  ;;  %v12885_v48 = vpop.f32.mrf.mxu0 }
 0x379   : > { %13513 = vst [vmem:[#allocation6_spill] sm:$0xff] %v12883_v24  ;;  %13514 = vst [vmem:[#allocation7_spill] sm:$0xff] %v12885_v48  ;;  %v12888_v7 = vadd.f32 %v9624_v27, %v12750_v58 }
 0x37a   : > { %v5504_v26 = vpop.f32.mrf.mxu1  ;;  %v12890_v51 = vpop.f32.mrf.mxu0 }
 0x37b   : > { %13515 = vst [vmem:[#allocation13_spill] sm:$0xff] %v12888_v7  ;;  %13516 = vst [vmem:[#allocation20_spill] sm:$0xff] %v12890_v51  ;;  %v12893_v14 = vadd.f32 %v5504_v26, %v12753_v33 }
 0x37c   : > { %v9627_v5 = vpop.f32.mrf.mxu1  ;;  %v12895_v3 = vpop.f32.mrf.mxu0 }
 0x37d   : > { %13517 = vst [vmem:[#allocation21_spill] sm:$0xff] %v12893_v14  ;;  %13518 = vst [vmem:[#allocation8_spill] sm:$0xff] %v12895_v3  ;;  %v12898_v56 = vadd.f32 %v9627_v5, %v12756_v53 }
 0x37e   : > { %v5514_v54 = vpop.f32.mrf.mxu1  ;;  %v12900_v23 = vpop.f32.mrf.mxu0 }
 0x37f   : > { %13519 = vst [vmem:[#allocation10_spill] sm:$0xff] %v12898_v56  ;;  %13520 = vst [vmem:[#allocation23_spill] sm:$0xff] %v12900_v23  ;;  %v12903_v10 = vadd.f32 %v5514_v54, %v12759_v40 }
 0x380   : > { %v9630_v58 = vpop.f32.mrf.mxu1  ;;  %v12905_v19 = vpop.f32.mrf.mxu0 }
 0x381   : > { %13521 = vst [vmem:[#allocation12_spill] sm:$0xff] %v12903_v10  ;;  %13522 = vst [vmem:[#allocation14_spill] sm:$0xff] %v12905_v19  ;;  %v12908_v27 = vadd.f32 %v9630_v58, %v12762_v44 }
 0x382   : > { %v5524_v33 = vpop.f32.mrf.mxu1  ;;  %v12910_v26 = vpop.f32.mrf.mxu0 }
 0x383   : > { %13523 = vst [vmem:[#allocation15_spill] sm:$0xff] %v12908_v27  ;;  %13524 = vst [vmem:[#allocation24_spill] sm:$0xff] %v12910_v26  ;;  %v12913_v3 = vadd.f32 %v5524_v33, %v12765_v17 }
 0x384   : > { %v9633_v53 = vpop.f32.mrf.mxu1  ;;  %v12915_v5 = vpop.f32.mrf.mxu0 }
 0x385   : > { %13525 = vst [vmem:[#allocation25_spill] sm:$0xff] %v12913_v3  ;;  %13526 = vst [vmem:[#allocation73_spill] sm:$0xff] %v12915_v5  ;;  %v12918_v23 = vadd.f32 %v9633_v53, %v12768_v32 }
 0x386   : > { %v5534_v40 = vpop.f32.mrf.mxu1  ;;  %v12920_v54 = vpop.f32.mrf.mxu0 }
 0x387   : > { %13527 = vst [vmem:[#allocation16_spill] sm:$0xff] %v12918_v23  ;;  %13528 = vst [vmem:[#allocation26_spill] sm:$0xff] %v12920_v54  ;;  %v12923_v19 = vadd.f32 %v5534_v40, %v12771_v45 }
 0x388   : > { %v9636_v44 = vpop.f32.mrf.mxu1  ;;  %v12925_v58 = vpop.f32.mrf.mxu0 }
 0x389   : > { %13529 = vst [vmem:[#allocation27_spill] sm:$0xff] %v12923_v19  ;;  %13530 = vst [vmem:[#allocation77_spill] sm:$0xff] %v12925_v58  ;;  %v12928_v26 = vadd.f32 %v9636_v44, %v12774_v25 }
 0x38a   : > { %v5544_v17 = vpop.f32.mrf.mxu1  ;;  %v12930_v33 = vpop.f32.mrf.mxu0 }
 0x38b   : > { %13531 = vst [vmem:[#allocation74_spill] sm:$0xff] %v12928_v26  ;;  %13532 = vst [vmem:[#allocation28_spill] sm:$0xff] %v12930_v33  ;;  %v12933_v5 = vadd.f32 %v5544_v17, %v12777_v0 }
 0x38c   : > { %v9639_v32 = vpop.f32.mrf.mxu1  ;;  %v12935_v53 = vpop.f32.mrf.mxu0 }
 0x38d   : > { %13533 = vst [vmem:[#allocation31_spill] sm:$0xff] %v12933_v5  ;;  %13534 = vst [vmem:[#allocation80_spill] sm:$0xff] %v12935_v53  ;;  %v12938_v54 = vadd.f32 %v9639_v32, %v12781_v62 }
 0x38e   : > { %v5554_v45 = vpop.f32.mrf.mxu1  ;;  %v12943_v58 = vpop.f32.mrf.mxu0 }
 0x38f   : > { %13535 = vst [vmem:[#allocation75_spill] sm:$0xff] %v12938_v54  ;;  %v12941_v40 = vadd.f32 %v5554_v45, %v12785_v38  ;;  %13537 = vst [vmem:[#allocation29_spill] sm:$0xff] %v12943_v58 }
 0x390   : > { %v9642_v25 = vpop.f32.mrf.mxu1  ;;  %v12951_v17 = vpop.f32.mrf.mxu0 }
 0x391   : > { %13536 = vst [vmem:[#allocation17_spill] sm:$0xff] %v12941_v40  ;;  %v12946_v44 = vadd.f32 %v9642_v25, %v12790_v18  ;;  %13540 = vst [vmem:[#allocation78_spill] sm:$0xff] %v12951_v17 }
 0x392   : > { %v5564_v33 = vpop.f32.mrf.mxu1  ;;  %v9840_v45 = vpop.f32.mrf.mxu0 }
 0x393   : > { %13538 = vst [vmem:[#allocation30_spill] sm:$0xff] %v12946_v44  ;;  %v12949_v0 = vadd.f32 %v5564_v33, %v12795_v9 }
 0x394   : > { %v9645_v53 = vpop.f32.mrf.mxu1  ;;  %v6535_v54 = vpop.f32.mrf.mxu0 }
 0x395   : > { %13539 = vst [vmem:[#allocation83_spill] sm:$0xff] %v12949_v0  ;;  %v12954_v62 = vadd.f32 %v9645_v53, %v12800_v35 }
 0x396   : > { %v5574_v32 = vpop.f32.mrf.mxu1  ;;  %v9843_v44 = vpop.f32.mrf.mxu0 }
 0x397   : > { %13541 = vst [vmem:[#allocation32_spill] sm:$0xff] %v12954_v62  ;;  %v12957_v38 = vadd.f32 %v5574_v32, %v12805_v29 }
 0x398   : > { %v9760_v58 = vpop.f32.mrf.mxu1  ;;  %v12961_v33 = vpop.f32.mrf.mxu0 }
 0x399   : > { %13542 = vst [vmem:[#allocation35_spill] sm:$0xff] %v12957_v38 }
 0x39a   : > { %v6165_v40 = vpop.f32.mrf.mxu1  ;;  %v12967_v53 = vpop.f32.mrf.mxu0 }
 0x39c   : > { %v9763_v18 = vpop.f32.mrf.mxu1  ;;  %v12973_v38 = vpop.f32.mrf.mxu0 }
 0x39e   : > { %v6175_v25 = vpop.f32.mrf.mxu1  ;;  %v12979_v26 = vpop.f32.mrf.mxu0 }
 0x3a0   : > { %v9766_v5 = vpop.f32.mrf.mxu1  ;;  %v12985_v3 = vpop.f32.mrf.mxu0 }
 0x3a2   : > { %v12959_v9 = vpop.f32.mrf.mxu1  ;;  %v12991_v48 = vpop.f32.mrf.mxu0 }
 0x3a4   : > { %v12963_v17 = vpop.f32.mrf.mxu1  ;;  %v12997_v56 = vpop.f32.mrf.mxu0 }
 0x3a6   : > { %v12965_v35 = vpop.f32.mrf.mxu1  ;;  %v13003_v43 = vpop.f32.mrf.mxu0 }
 0x3a8   : > { %v12969_v29 = vpop.f32.mrf.mxu1 }
 0x3aa   : > { %v12971_v32 = vpop.f32.mrf.mxu1 }
 0x3ac   : > { %v12975_v62 = vpop.f32.mrf.mxu1 }
 0x3ae   : > { %v12977_v0 = vpop.f32.mrf.mxu1 }
 0x3b0   : > { %v12981_v19 = vpop.f32.mrf.mxu1 }
 0x3b2   : > { %v12983_v23 = vpop.f32.mrf.mxu1 }
 0x3b3   : > { %13543 = vst [vmem:[#allocation79_spill] sm:$0xff] %v12983_v23 }
 0x3b4   : > { %v12987_v51 = vpop.f32.mrf.mxu1 }
 0x3b5   : > { %13544 = vst [vmem:[#allocation18_spill] sm:$0xff] %v12987_v51  ;;  %v13009_v51 = vpop.f32.mrf.mxu0 }
 0x3b6   : > { %v12989_v27 = vpop.f32.mrf.mxu1 }
 0x3b7   : > { %13545 = vst [vmem:[#allocation33_spill] sm:$0xff] %v12989_v27 }
 0x3b8   : > { %v12993_v10 = vpop.f32.mrf.mxu1 }
 0x3b9   : > { %13546 = vst [vmem:[#allocation34_spill] sm:$0xff] %v12993_v10  ;;  %v13015_v10 = vpop.f32.mrf.mxu0 }
 0x3ba   : > { %v12995_v1 = vpop.f32.mrf.mxu1  ;;  %13554 = vst [vmem:[#allocation38_spill] sm:$0xff] %v13015_v10 }
 0x3bb   : > { %13547 = vst [vmem:[#allocation88_spill] sm:$0xff] %v12995_v1 }
 0x3bc   : > { %v12999_v30 = vpop.f32.mrf.mxu1 }
 0x3bd   : > { %13548 = vst [vmem:[#allocation81_spill] sm:$0xff] %v12999_v30  ;;  %v13021_v30 = vpop.f32.mrf.mxu0 }
 0x3be   : > { %v13001_v14 = vpop.f32.mrf.mxu1  ;;  %13557 = vst [vmem:[#allocation40_spill] sm:$0xff] %v13021_v30 }
 0x3bf   : > { %13549 = vst [vmem:[#allocation36_spill] sm:$0xff] %v13001_v14 }
 0x3c0   : > { %v13005_v7 = vpop.f32.mrf.mxu1 }
 0x3c1   : > { %13550 = vst [vmem:[#allocation39_spill] sm:$0xff] %v13005_v7  ;;  %v13027_v7 = vpop.f32.mrf.mxu0 }
 0x3c2   : > { %v13007_v22 = vpop.f32.mrf.mxu1  ;;  %13560 = vst [vmem:[#allocation85_spill] sm:$0xff] %v13027_v7 }
 0x3c3   : > { %13551 = vst [vmem:[#allocation91_spill] sm:$0xff] %v13007_v22 }
 0x3c4   : > { %v13011_v27 = vpop.f32.mrf.mxu1 }
 0x3c5   : > { %13552 = vst [vmem:[#allocation82_spill] sm:$0xff] %v13011_v27  ;;  %v5986_v27 = vadd.f32 %v12788_v37, %v12808_v55 }
 0x3c6   : > { %v13013_v24 = vpop.f32.mrf.mxu1 }
 0x3c7   : > { %13553 = vst [vmem:[#allocation37_spill] sm:$0xff] %v13013_v24  ;;  %v6357_v10 = vadd.f32 %v9760_v58, %v5986_v27  ;;  %v13054_v27 = vld [vmem:[%s13294_s5] ss:$0 sm:$0xff]  ;;  %v5989_v58 = vadd.f32 %v12815_v21, %v12833_v16 }
 0x3c8   : > { %v13017_v1 = vpop.f32.mrf.mxu1 }
 0x3c9   : > { %13555 = vst [vmem:[#allocation94_spill] sm:$0xff] %v13017_v1  ;;  %v5985_v1 = vadd.f32 %v12793_v12, %v12813_v41  ;;  %v6727_v37 = vadd.f32 %v9840_v45, %v6357_v10  ;;  %v5990_v12 = vadd.f32 %v12810_v28, %v12828_v6 }
 0x3ca   : > { %v13019_v23 = vpop.f32.mrf.mxu1 }
 0x3cb   : > { %13556 = vst [vmem:[#allocation84_spill] sm:$0xff] %v13019_v23  ;;  %v13037_v23 = vpop.f32.mrf.mxu0 }
 0x3cc   : > { %v13023_v14 = vpop.f32.mrf.mxu1 }
 0x3cd   : > { %13558 = vst [vmem:[#allocation43_spill] sm:$0xff] %v13023_v14  ;;  %v6356_v14 = vadd.f32 %v6165_v40, %v5985_v1 }
 0x3ce   : > { %v13025_v63 = vpop.f32.mrf.mxu1 }
 0x3cf   : > { %13559 = vst [vmem:[#allocation98_spill] sm:$0xff] %v13025_v63  ;;  %v5988_v63 = vadd.f32 %v12798_v42, %v12818_v4  ;;  %v6726_v42 = vadd.f32 %v6535_v54, %v6356_v14  ;;  %v6360_v14 = vadd.f32 %v12959_v9, %v5989_v58 }
 0x3d0   : > { %v13029_v22 = vpop.f32.mrf.mxu1 }
 0x3d1   : > { %13561 = vst [vmem:[#allocation41_spill] sm:$0xff] %v13029_v22  ;;  %v5987_v22 = vadd.f32 %v12803_v59, %v12823_v13  ;;  %v6359_v55 = vadd.f32 %v9763_v18, %v5988_v63  ;;  %v6361_v59 = vadd.f32 %v9766_v5, %v5990_v12  ;;  %v13061_v13 = vld [vmem:[%s13295_s6] ss:$0 sm:$0xff] }
 0x3d2   : > { %v13033_v24 = vpop.f32.mrf.mxu1 }
 0x3d3   : > { %13562 = vst [vmem:[#allocation42_spill] sm:$0xff] %v13033_v24  ;;  %v13047_v24 = vpop.f32.mrf.mxu0  ;;  %v6358_v4 = vadd.f32 %v6175_v25, %v5987_v22  ;;  %v6729_v6 = vadd.f32 %v9843_v44, %v6359_v55  ;;  %v5992_v22 = vadd.f32 %v12820_v39, %v12838_v50  ;;  %v5991_v44 = vadd.f32 %v12825_v47, %v12843_v52 }
 0x3d4   : > { %v13039_v30 = vpop.f32.mrf.mxu1  ;;  %v6731_v18 = vadd.f32 %v12967_v53, %v6361_v59  ;;  %v5994_v52 = vadd.f32 %v12830_v61, %v12848_v36 }
 0x3d5   : > { %v13063_v63 = vpop.f32.mrf.mxu0  ;;  %v6728_v16 = vadd.f32 %v12961_v33, %v6358_v4  ;;  %v6363_v25 = vadd.f32 %v12963_v17, %v5992_v22  ;;  %v6730_v17 = vadd.f32 %v12973_v38, %v6360_v14  ;;  %v6362_v53 = vadd.f32 %v12965_v35, %v5991_v44 }
 0x3d6   : > { %v13043_v7 = vpop.f32.mrf.mxu1  ;;  %v6365_v61 = vadd.f32 %v12969_v29, %v5994_v52  ;;  %v5998_v44 = vadd.f32 %v12850_v46, %v12868_v57 }
 0x3d7   : > { %v13083_v50 = vpop.f32.mrf.mxu0  ;;  %v6733_v58 = vadd.f32 %v12979_v26, %v6363_v25 }
 0x3d8   : > { %v9920_v41 = vpop.f32.mrf.mxu1  ;;  %v6369_v46 = vadd.f32 %v12981_v19, %v5998_v44 }
 0x3d9   : > { %v7097_v1 = vadd.f32 %v9920_v41, %v6727_v37  ;;  %v13098_v38 = vpop.f32.mrf.mxu0 }
 0x3da   : > { %v6905_v28 = vpop.f32.mrf.mxu1 }
 0x3db   : > { %v7200_v10 = vmul.f32 %v13054_v27, %v7097_v1  ;;  %v7096_v40 = vadd.f32 %v6905_v28, %v6726_v42  ;;  %v5993_v1 = vadd.f32 %v12835_v60, %v12853_v11  ;;  %v6732_v60 = vadd.f32 %v12985_v3, %v6362_v53  ;;  %v13114_v3 = vpop.f32.mrf.mxu0 }
 0x3dc   : > { %v9923_v21 = vpop.f32.mrf.mxu1 }
 0x3dd   : > { %v7239_v5 = vadd.f32 %v13061_v13, %v7200_v10  ;;  %v7199_v54 = vmul.f32 %v13054_v27, %v7096_v40  ;;  %v7099_v45 = vadd.f32 %v9923_v21, %v6729_v6  ;;  %v5996_v10 = vadd.f32 %v12840_v34, %v12858_v2 }
 0x3de   : > { %v6915_v39 = vpop.f32.mrf.mxu1  ;;  %v6364_v11 = vadd.f32 %v12971_v32, %v5993_v1  ;;  %v5995_v21 = vadd.f32 %v12845_v49, %v12863_v20  ;;  %v13566_v1 = vld [vmem:[#allocation22_spill] sm:$0xff] }
 0x3df   : > { %v7271_v9 = vmax.f32 %v7239_v5, 0.0  ;;  %v7238_v33 = vadd.f32 %v13061_v13, %v7199_v54  ;;  %v7202_v37 = vmul.f32 %v13054_v27, %v7099_v45  ;;  %v7098_v47 = vadd.f32 %v6915_v39, %v6728_v16 }
 0x3e0   : > { %v9926_v55 = vpop.f32.mrf.mxu1  ;;  %v6735_v16 = vadd.f32 %v12991_v48, %v6365_v61  ;;  %v6367_v34 = vadd.f32 %v12975_v62, %v5996_v10  ;;  %v6734_v49 = vadd.f32 %v12997_v56, %v6364_v11  ;;  %v6366_v20 = vadd.f32 %v12977_v0, %v5995_v21  ;;  %v13130_v56 = vpop.f32.mrf.mxu0  ;;  %v13567_v61 = vld [vmem:[#allocation38_spill] sm:$0xff]  ;;  %v13569_v11 = vld [vmem:[#allocation13_spill] sm:$0xff] }
 0x3e1   : > { %7303 = vst [vmem:[%s13081_s17 + $0x8] sm:$0xff] %v7271_v9  ;;  %v7270_v12 = vmax.f32 %v7238_v33, 0.0  ;;  %v7241_v41 = vadd.f32 %v13061_v13, %v7202_v37  ;;  %v7201_v42 = vmul.f32 %v13054_v27, %v7098_v47  ;;  %v7101_v4 = vadd.f32 %v9926_v55, %v6731_v18 }
 0x3e2   : > { %v6925_v36 = vpop.f32.mrf.mxu1  ;;  %v5997_v9 = vadd.f32 %v12855_v8, %v12873_v15  ;;  %v6737_v33 = vadd.f32 %v13003_v43, %v6367_v34  ;;  %v6736_v8 = vadd.f32 %v13009_v51, %v6366_v20  ;;  %v13564_v15 = vld [vmem:[#allocation79_spill] sm:$0xff]  ;;  %v13146_v51 = vpop.f32.mrf.mxu0 }
 0x3e3   : > { %7302 = vst [vmem:[%s13081_s17] sm:$0xff] %v7270_v12  ;;  %v7273_v35 = vmax.f32 %v7241_v41, 0.0  ;;  %v7240_v59 = vadd.f32 %v13061_v13, %v7201_v42  ;;  %v7204_v28 = vmul.f32 %v13054_v27, %v7101_v4  ;;  %v7100_v6 = vadd.f32 %v6925_v36, %v6730_v17  ;;  %v13563_v17 = vld [vmem:[#allocation9_spill] sm:$0xff]  ;;  %v13565_v4 = vld [vmem:[#allocation6_spill] sm:$0xff] }
 0x3e4   : > { %v9929_v26 = vpop.f32.mrf.mxu1  ;;  %v6000_v53 = vadd.f32 %v13563_v17, %v12878_v31  ;;  %v6368_v43 = vadd.f32 %v13564_v15, %v5997_v9  ;;  %v6739_v36 = vadd.f32 %v13567_v61, %v6369_v46 }
 0x3e5   : > { %7305 = vst [vmem:[%s13081_s17 + $0x18] sm:$0xff] %v7273_v35  ;;  %v7272_v29 = vmax.f32 %v7240_v59, 0.0  ;;  %v7243_v40 = vadd.f32 %v13061_v13, %v7204_v28  ;;  %v7203_v22 = vmul.f32 %v13054_v27, %v7100_v6  ;;  %v7103_v14 = vadd.f32 %v9929_v26, %v6733_v58  ;;  %v13568_v35 = vld [vmem:[#allocation18_spill] sm:$0xff]  ;;  %v13570_v26 = vld [vmem:[#allocation11_spill] sm:$0xff] }
 0x3e6   : > { %v6935_v2 = vpop.f32.mrf.mxu1  ;;  %v5999_v58 = vadd.f32 %v13566_v1, %v13565_v4  ;;  %v6371_v31 = vadd.f32 %v13568_v35, %v6000_v53  ;;  %v13582_v4 = vld [vmem:[#allocation81_spill] sm:$0xff] }
 0x3e7   : > { %7304 = vst [vmem:[%s13081_s17 + $0x10] sm:$0xff] %v7272_v29  ;;  %v7275_v32 = vmax.f32 %v7243_v40, 0.0  ;;  %v7242_v5 = vadd.f32 %v13061_v13, %v7203_v22  ;;  %v7206_v54 = vmul.f32 %v13054_v27, %v7103_v14  ;;  %v7102_v45 = vadd.f32 %v6935_v2, %v6732_v60  ;;  %v13571_v40 = vld [vmem:[#allocation40_spill] sm:$0xff]  ;;  %v13572_v14 = vld [vmem:[#allocation33_spill] sm:$0xff] }
 0x3e8   : > { %v9932_v48 = vpop.f32.mrf.mxu1  ;;  %v6002_v29 = vadd.f32 %v13570_v26, %v13569_v11  ;;  %v6738_v22 = vadd.f32 %v13571_v40, %v6368_v43  ;;  %v6370_v21 = vadd.f32 %v13572_v14, %v5999_v58  ;;  %v13586_v14 = vld [vmem:[#allocation25_spill] sm:$0xff] }
 0x3e9   : > { %7307 = vst [vmem:[%s13081_s17 + $0x28] sm:$0xff] %v7275_v32  ;;  %v7274_v62 = vmax.f32 %v7242_v5, 0.0  ;;  %v7245_v18 = vadd.f32 %v13061_v13, %v7206_v54  ;;  %v7205_v25 = vmul.f32 %v13054_v27, %v7102_v45  ;;  %v7105_v39 = vadd.f32 %v9932_v48, %v6735_v16  ;;  %v13573_v54 = vld [vmem:[#allocation21_spill] sm:$0xff]  ;;  %v13574_v45 = vld [vmem:[#allocation19_spill] sm:$0xff]  ;;  %v13576_v48 = vld [vmem:[#allocation34_spill] sm:$0xff] }
 0x3ea   : > { %v6945_v57 = vpop.f32.mrf.mxu1  ;;  %v6001_v44 = vadd.f32 %v13574_v45, %v13573_v54 }
 0x3eb   : > { %7306 = vst [vmem:[%s13081_s17 + $0x20] sm:$0xff] %v7274_v62  ;;  %v7277_v0 = vmax.f32 %v7245_v18, 0.0  ;;  %v7244_v37 = vadd.f32 %v13061_v13, %v7205_v25  ;;  %v7208_v47 = vmul.f32 %v13054_v27, %v7105_v39  ;;  %v7104_v52 = vadd.f32 %v6945_v57, %v6734_v49  ;;  %v13575_v49 = vld [vmem:[#allocation85_spill] sm:$0xff]  ;;  %v13162_v25 = vpop.f32.mrf.mxu0  ;;  %v13577_v57 = vld [vmem:[#allocation10_spill] sm:$0xff] }
 0x3ec   : > { %v9935_v55 = vpop.f32.mrf.mxu1  ;;  %v6741_v20 = vadd.f32 %v13575_v49, %v6371_v31  ;;  %v6373_v62 = vadd.f32 %v13576_v48, %v6002_v29  ;;  %v13590_v48 = vld [vmem:[#allocation23_spill] sm:$0xff] }
 0x3ed   : > { %7309 = vst [vmem:[%s13081_s17 + $0x38] sm:$0xff] %v7277_v0  ;;  %v7276_v19 = vmax.f32 %v7244_v37, 0.0  ;;  %v7247_v12 = vadd.f32 %v13061_v13, %v7208_v47  ;;  %v7207_v41 = vmul.f32 %v13054_v27, %v7104_v52  ;;  %v7107_v42 = vadd.f32 %v9935_v55, %v6737_v33  ;;  %v13578_v0 = vld [vmem:[#allocation5_spill] sm:$0xff]  ;;  %v13579_v52 = vld [vmem:[#allocation88_spill] sm:$0xff] }
 0x3ee   : > { %v6955_v59 = vpop.f32.mrf.mxu1  ;;  %v6004_v37 = vadd.f32 %v13578_v0, %v13577_v57  ;;  %v6740_v47 = vadd.f32 %v13037_v23, %v6370_v21  ;;  %v6372_v17 = vadd.f32 %v13579_v52, %v6001_v44  ;;  %v13178_v23 = vpop.f32.mrf.mxu0  ;;  %v13587_v21 = vld [vmem:[#allocation8_spill] sm:$0xff] }
 0x3ef   : > { %7308 = vst [vmem:[%s13081_s17 + $0x30] sm:$0xff] %v7276_v19  ;;  %v7279_v28 = vmax.f32 %v7247_v12, 0.0  ;;  %v7246_v6 = vadd.f32 %v13061_v13, %v7207_v41  ;;  %v7210_v10 = vmul.f32 %v13054_v27, %v7107_v42  ;;  %v7106_v60 = vadd.f32 %v6955_v59, %v6736_v8  ;;  %v13580_v19 = vld [vmem:[#allocation12_spill] sm:$0xff]  ;;  %v13581_v12 = vld [vmem:[#allocation7_spill] sm:$0xff] }
 0x3f0   : > { %v9938_v16 = vpop.f32.mrf.mxu1  ;;  %v6003_v41 = vadd.f32 %v13581_v12, %v13580_v19  ;;  %v6743_v42 = vadd.f32 %v13047_v24, %v6373_v62  ;;  %v6375_v1 = vadd.f32 %v13582_v4, %v6004_v37  ;;  %v13583_v59 = vld [vmem:[#allocation15_spill] sm:$0xff] }
 0x3f1   : > { %7311 = vst [vmem:[%s13081_s17 + $0x48] sm:$0xff] %v7279_v28  ;;  %v7278_v34 = vmax.f32 %v7246_v6, 0.0  ;;  %v7249_v2 = vadd.f32 %v13061_v13, %v7210_v10  ;;  %v7209_v32 = vmul.f32 %v13054_v27, %v7106_v60  ;;  %v7109_v5 = vadd.f32 %v9938_v16, %v6739_v36  ;;  %v13584_v28 = vld [vmem:[#allocation20_spill] sm:$0xff]  ;;  %v13592_v37 = vld [vmem:[#allocation27_spill] sm:$0xff] }
 0x3f2   : > { %v6965_v18 = vpop.f32.mrf.mxu1  ;;  %v6006_v6 = vadd.f32 %v13584_v28, %v13583_v59  ;;  %v6742_v10 = vadd.f32 %v13063_v63, %v6372_v17  ;;  %v13585_v60 = vld [vmem:[#allocation36_spill] sm:$0xff]  ;;  %v6005_v16 = vadd.f32 %v13587_v21, %v13586_v14  ;;  %v13194_v63 = vpop.f32.mrf.mxu0  ;;  %v13598_v28 = vld [vmem:[#allocation31_spill] sm:$0xff] }
 0x3f3   : > { %7310 = vst [vmem:[%s13081_s17 + $0x40] sm:$0xff] %v7278_v34  ;;  %v7281_v39 = vmax.f32 %v7249_v2, 0.0  ;;  %v7248_v9 = vadd.f32 %v13061_v13, %v7209_v32  ;;  %v7212_v33 = vmul.f32 %v13054_v27, %v7109_v5  ;;  %v7108_v46 = vadd.f32 %v6965_v18, %v6738_v22  ;;  %v13588_v2 = vld [vmem:[#allocation39_spill] sm:$0xff] }
 0x3f4   : > { %v9941_v53 = vpop.f32.mrf.mxu1  ;;  %v6374_v24 = vadd.f32 %v13585_v60, %v6003_v41  ;;  %v6745_v34 = vadd.f32 %v13083_v50, %v6375_v1  ;;  %v6377_v32 = vadd.f32 %v13588_v2, %v6006_v6  ;;  %v13595_v41 = vld [vmem:[#allocation74_spill] sm:$0xff]  ;;  %v13599_v6 = vld [vmem:[#allocation73_spill] sm:$0xff]  ;;  %v13601_v21 = vld [vmem:[#allocation75_spill] sm:$0xff] }
 0x3f5   : > { %7313 = vst [vmem:[%s13081_s17 + $0x58] sm:$0xff] %v7281_v39  ;;  %v7280_v8 = vmax.f32 %v7248_v9, 0.0  ;;  %v7251_v15 = vadd.f32 %v13061_v13, %v7212_v33  ;;  %v7211_v43 = vmul.f32 %v13054_v27, %v7108_v46  ;;  %v7111_v55 = vadd.f32 %v9941_v53, %v6741_v20  ;;  %v13589_v20 = vld [vmem:[#allocation16_spill] sm:$0xff]  ;;  %v13591_v39 = vld [vmem:[#allocation91_spill] sm:$0xff]  ;;  %v13594_v53 = vld [vmem:[#allocation82_spill] sm:$0xff] }
 0x3f6   : > { %v6975_v58 = vpop.f32.mrf.mxu1  ;;  %v6008_v62 = vadd.f32 %v13590_v48, %v13589_v20  ;;  %v6744_v18 = vadd.f32 %v13098_v38, %v6374_v24  ;;  %v6376_v50 = vadd.f32 %v13591_v39, %v6005_v16  ;;  %v6747_v17 = vadd.f32 %v13114_v3, %v6377_v32  ;;  %v9879_v38 = vpop.f32.mrf.mxu0  ;;  %v13600_v24 = vld [vmem:[#allocation94_spill] sm:$0xff]  ;;  %v13603_v32 = vld [vmem:[#allocation84_spill] sm:$0xff]  ;;  %v13604_v20 = vld [vmem:[#allocation17_spill] sm:$0xff] }
 0x3f7   : > { %7312 = vst [vmem:[%s13081_s17 + $0x50] sm:$0xff] %v7280_v8  ;;  %v7283_v61 = vmax.f32 %v7251_v15, 0.0  ;;  %v7250_v36 = vadd.f32 %v13061_v13, %v7211_v43  ;;  %v7214_v35 = vmul.f32 %v13054_v27, %v7111_v55  ;;  %v7110_v31 = vadd.f32 %v6975_v58, %v6740_v47  ;;  %v13593_v47 = vld [vmem:[#allocation14_spill] sm:$0xff]  ;;  %v13597_v58 = vld [vmem:[#allocation37_spill] sm:$0xff]  ;;  %v13606_v39 = vld [vmem:[#allocation43_spill] sm:$0xff] }
 0x3f8   : > { %v9944_v11 = vpop.f32.mrf.mxu1  ;;  %v6007_v52 = vadd.f32 %v13593_v47, %v13592_v37  ;;  %v6379_v8 = vadd.f32 %v13594_v53, %v6008_v62  ;;  %v6746_v1 = vadd.f32 %v13130_v56, %v6376_v50  ;;  %v6665_v56 = vpop.f32.mrf.mxu0  ;;  %v13602_v16 = vld [vmem:[#allocation26_spill] sm:$0xff]  ;;  %v13605_v48 = vld [vmem:[#allocation77_spill] sm:$0xff]  ;;  %v13608_v47 = vld [vmem:[#allocation28_spill] sm:$0xff] }
 0x3f9   : > { %7315 = vst [vmem:[%s13081_s17 + $0x68] sm:$0xff] %v7283_v61  ;;  %v7282_v26 = vmax.f32 %v7250_v36, 0.0  ;;  %v7253_v29 = vadd.f32 %v13061_v13, %v7214_v35  ;;  %v7213_v40 = vmul.f32 %v13054_v27, %v7110_v31  ;;  %v7113_v22 = vadd.f32 %v9944_v11, %v6743_v42  ;;  %v13596_v42 = vld [vmem:[#allocation24_spill] sm:$0xff]  ;;  %v13607_v37 = vld [vmem:[#allocation30_spill] sm:$0xff] }
 0x3fa   : > { %v6985_v5 = vpop.f32.mrf.mxu1  ;;  %v6010_v4 = vadd.f32 %v13596_v42, %v13595_v41  ;;  %v6378_v61 = vadd.f32 %v13597_v58, %v6007_v52  ;;  %v6749_v60 = vadd.f32 %v13146_v51, %v6379_v8  ;;  %v6011_v62 = vadd.f32 %v13605_v48, %v13604_v20  ;;  %v13609_v53 = vld [vmem:[#allocation98_spill] sm:$0xff]  ;;  %v13611_v41 = vld [vmem:[#allocation80_spill] sm:$0xff] }
 0x3fb   : > { %7314 = vst [vmem:[%s13081_s17 + $0x60] sm:$0xff] %v7282_v26  ;;  %v7285_v54 = vmax.f32 %v7253_v29, 0.0  ;;  %v7252_v45 = vadd.f32 %v13061_v13, %v7213_v40  ;;  %v7216_v44 = vmul.f32 %v13054_v27, %v7113_v22  ;;  %v7112_v49 = vadd.f32 %v6985_v5, %v6742_v10 }
 0x3fc   : > { %v9947_v9 = vpop.f32.mrf.mxu1  ;;  %v6009_v10 = vadd.f32 %v13599_v6, %v13598_v28  ;;  %v6381_v11 = vadd.f32 %v13600_v24, %v6010_v4  ;;  %v6748_v2 = vadd.f32 %v13162_v25, %v6378_v61  ;;  %v9882_v25 = vpop.f32.mrf.mxu0  ;;  %v6014_v52 = vadd.f32 %v13608_v47, %v13607_v37  ;;  %v13614_v28 = vld [vmem:[#allocation29_spill] sm:$0xff] }
 0x3fd   : > { %7317 = vst [vmem:[%s13081_s17 + $0x78] sm:$0xff] %v7285_v54  ;;  %v7284_v33 = vmax.f32 %v7252_v45, 0.0  ;;  %v7255_v46 = vadd.f32 %v13061_v13, %v7216_v44  ;;  %v7215_v57 = vmul.f32 %v13054_v27, %v7112_v49  ;;  %v7115_v0 = vadd.f32 %v9947_v9, %v6745_v34 }
 0x3fe   : > { %v6995_v15 = vpop.f32.mrf.mxu1  ;;  %v6012_v34 = vadd.f32 %v13602_v16, %v13601_v21  ;;  %v6380_v5 = vadd.f32 %v13603_v32, %v6009_v10  ;;  %v6382_v8 = vadd.f32 %v13609_v53, %v6011_v62  ;;  %v13617_v21 = vld [vmem:[#allocation78_spill] sm:$0xff] }
 0x3ff   : > { %7316 = vst [vmem:[%s13081_s17 + $0x70] sm:$0xff] %v7284_v33  ;;  %v7287_v43 = vmax.f32 %v7255_v46, 0.0  ;;  %v7254_v55 = vadd.f32 %v13061_v13, %v7215_v57  ;;  %v7218_v19 = vmul.f32 %v13054_v27, %v7115_v0  ;;  %v7114_v12 = vadd.f32 %v6995_v15, %v6744_v18 }
 0x400   : > { %v9950_v3 = vpop.f32.mrf.mxu1  ;;  %v6751_v18 = vadd.f32 %v13178_v23, %v6381_v11  ;;  %v6383_v50 = vadd.f32 %v13606_v39, %v6012_v34  ;;  %v6752_v10 = vadd.f32 %v6665_v56, %v6382_v8 }
 0x401   : > { %7319 = vst [vmem:[%s13081_s17 + $0x88] sm:$0xff] %v7287_v43  ;;  %v7286_v36 = vmax.f32 %v7254_v55, 0.0  ;;  %v7257_v35 = vadd.f32 %v13061_v13, %v7218_v19  ;;  %v7217_v31 = vmul.f32 %v13054_v27, %v7114_v12  ;;  %v7117_v59 = vadd.f32 %v9950_v3, %v6747_v17  ;;  %v13610_v12 = vld [vmem:[#allocation83_spill] sm:$0xff]  ;;  %v6675_v3 = vpop.f32.mrf.mxu0 }
 0x402   : > { %v7005_v26 = vpop.f32.mrf.mxu1  ;;  %v6750_v17 = vadd.f32 %v13194_v63, %v6380_v5  ;;  %v6013_v42 = vadd.f32 %v13611_v41, %v13610_v12  ;;  %v6753_v4 = vadd.f32 %v9879_v38, %v6383_v50 }
 0x403   : > { %7318 = vst [vmem:[%s13081_s17 + $0x80] sm:$0xff] %v7286_v36  ;;  %v7289_v29 = vmax.f32 %v7257_v35, 0.0  ;;  %v7256_v40 = vadd.f32 %v13061_v13, %v7217_v31  ;;  %v7220_v22 = vmul.f32 %v13054_v27, %v7117_v59  ;;  %v7116_v14 = vadd.f32 %v7005_v26, %v6746_v1  ;;  %v13612_v1 = vld [vmem:[#allocation41_spill] sm:$0xff]  ;;  %v13613_v59 = vld [vmem:[#allocation32_spill] sm:$0xff]  ;;  %v9885_v38 = vpop.f32.mrf.mxu0 }
 0x404   : > { %v9953_v51 = vpop.f32.mrf.mxu1  ;;  %v6385_v58 = vadd.f32 %v13612_v1, %v6014_v52  ;;  %v6016_v6 = vadd.f32 %v13614_v28, %v13613_v59 }
 0x405   : > { %7321 = vst [vmem:[%s13081_s17 + $0x98] sm:$0xff] %v7289_v29  ;;  %v7288_v54 = vmax.f32 %v7256_v40, 0.0  ;;  %v7259_v45 = vadd.f32 %v13061_v13, %v7220_v22  ;;  %v7219_v44 = vmul.f32 %v13054_v27, %v7116_v14  ;;  %v7119_v49 = vadd.f32 %v9953_v51, %v6749_v60  ;;  %v13615_v60 = vld [vmem:[#allocation42_spill] sm:$0xff]  ;;  %v13616_v14 = vld [vmem:[#allocation35_spill] sm:$0xff]  ;;  %v6685_v20 = vpop.f32.mrf.mxu0 }
 0x406   : > { %v7015_v9 = vpop.f32.mrf.mxu1  ;;  %v6384_v24 = vadd.f32 %v13615_v60, %v6013_v42  ;;  %v6015_v16 = vadd.f32 %v13617_v21, %v13616_v14  ;;  %v6755_v34 = vadd.f32 %v9882_v25, %v6385_v58 }
 0x407   : > { %7320 = vst [vmem:[%s13081_s17 + $0x90] sm:$0xff] %v7288_v54  ;;  %v7291_v33 = vmax.f32 %v7259_v45, 0.0  ;;  %v7258_v46 = vadd.f32 %v13061_v13, %v7219_v44  ;;  %v7222_v57 = vmul.f32 %v13054_v27, %v7119_v49  ;;  %v7118_v0 = vadd.f32 %v7015_v9, %v6748_v2 }
 0x408   : > { %v9956_v23 = vpop.f32.mrf.mxu1  ;;  %v6387_v2 = vadd.f32 %v13039_v30, %v6016_v6  ;;  %v6754_v45 = vadd.f32 %v6675_v3, %v6384_v24  ;;  %v6386_v44 = vadd.f32 %v13043_v7, %v6015_v16 }
 0x409   : > { %7323 = vst [vmem:[%s13081_s17 + $0xa8] sm:$0xff] %v7291_v33  ;;  %v7290_v15 = vmax.f32 %v7258_v46, 0.0  ;;  %v7261_v43 = vadd.f32 %v13061_v13, %v7222_v57  ;;  %v7221_v55 = vmul.f32 %v13054_v27, %v7118_v0  ;;  %v7121_v19 = vadd.f32 %v9956_v23, %v6751_v18 }
 0x40a   : > { %v7025_v61 = vpop.f32.mrf.mxu1  ;;  %v6757_v39 = vadd.f32 %v9885_v38, %v6387_v2  ;;  %v6756_v46 = vadd.f32 %v6685_v20, %v6386_v44 }
 0x40b   : > { %7322 = vst [vmem:[%s13081_s17 + $0xa0] sm:$0xff] %v7290_v15  ;;  %v7293_v63 = vmax.f32 %v7261_v43, 0.0  ;;  %v7260_v36 = vadd.f32 %v13061_v13, %v7221_v55  ;;  %v7224_v35 = vmul.f32 %v13054_v27, %v7121_v19  ;;  %v7120_v31 = vadd.f32 %v7025_v61, %v6750_v17 }
 0x40c   : > { %v9959_v11 = vpop.f32.mrf.mxu1 }
 0x40d   : > { %7325 = vst [vmem:[%s13081_s17 + $0xb8] sm:$0xff] %v7293_v63  ;;  %v7292_v26 = vmax.f32 %v7260_v36, 0.0  ;;  %v7263_v29 = vadd.f32 %v13061_v13, %v7224_v35  ;;  %v7223_v40 = vmul.f32 %v13054_v27, %v7120_v31  ;;  %v7123_v22 = vadd.f32 %v9959_v11, %v6753_v4 }
 0x40e   : > { %v7035_v32 = vpop.f32.mrf.mxu1 }
 0x40f   : > { %7324 = vst [vmem:[%s13081_s17 + $0xb0] sm:$0xff] %v7292_v26  ;;  %v7295_v56 = vmax.f32 %v7263_v29, 0.0  ;;  %v7262_v5 = vadd.f32 %v13061_v13, %v7223_v40  ;;  %v7226_v51 = vmul.f32 %v13054_v27, %v7123_v22  ;;  %v7122_v54 = vadd.f32 %v7035_v32, %v6752_v10 }
 0x410   : > { %v9962_v49 = vpop.f32.mrf.mxu1 }
 0x411   : > { %7327 = vst [vmem:[%s13081_s17 + $0xc8] sm:$0xff] %v7295_v56  ;;  %v7294_v48 = vmax.f32 %v7262_v5, 0.0  ;;  %v7265_v62 = vadd.f32 %v13061_v13, %v7226_v51  ;;  %v7225_v30 = vmul.f32 %v13054_v27, %v7122_v54  ;;  %v7125_v18 = vadd.f32 %v9962_v49, %v6755_v34 }
 0x412   : > { %v7045_v50 = vpop.f32.mrf.mxu1 }
 0x413   : > { %7326 = vst [vmem:[%s13081_s17 + $0xc0] sm:$0xff] %v7294_v48  ;;  %v7297_v9 = vmax.f32 %v7265_v62, 0.0  ;;  %v7264_v25 = vadd.f32 %v13061_v13, %v7225_v30  ;;  %v7228_v7 = vmul.f32 %v13054_v27, %v7125_v18  ;;  %v7124_v33 = vadd.f32 %v7045_v50, %v6754_v45 }
 0x414   : > { %v9965_v57 = vpop.f32.mrf.mxu1 }
 0x415   : > { %7329 = vst [vmem:[%s13081_s17 + $0xd8] sm:$0xff] %v7297_v9  ;;  %v7296_v0 = vmax.f32 %v7264_v25, 0.0  ;;  %v7267_v37 = vadd.f32 %v13061_v13, %v7228_v7  ;;  %v7227_v47 = vmul.f32 %v13054_v27, %v7124_v33  ;;  %v7127_v52 = vadd.f32 %v9965_v57, %v6757_v39 }
 0x416   : > { %v7055_v17 = vpop.f32.mrf.mxu1 }
 0x417   : > { %7328 = vst [vmem:[%s13081_s17 + $0xd0] sm:$0xff] %v7296_v0  ;;  %v7299_v53 = vmax.f32 %v7267_v37, 0.0  ;;  %v7266_v8 = vadd.f32 %v13061_v13, %v7227_v47  ;;  %v7230_v23 = vmul.f32 %v13054_v27, %v7127_v52  ;;  %v7126_v15 = vadd.f32 %v7055_v17, %v6756_v46 }
 0x419   : > { %7331 = vst [vmem:[%s13081_s17 + $0xe8] sm:$0xff] %v7299_v53  ;;  %v7298_v43 = vmax.f32 %v7266_v8, 0.0  ;;  %v7269_v55 = vadd.f32 %v13061_v13, %v7230_v23  ;;  %v7229_v19 = vmul.f32 %v13054_v27, %v7126_v15 }
 0x41b   : > { %7330 = vst [vmem:[%s13081_s17 + $0xe0] sm:$0xff] %v7298_v43  ;;  %v7301_v12 = vmax.f32 %v7269_v55, 0.0  ;;  %v7268_v41 = vadd.f32 %v13061_v13, %v7229_v19 }
 0x41d   : > { %7333 = vst [vmem:[%s13081_s17 + $0xf8] sm:$0xff] %v7301_v12  ;;  %v7300_v42 = vmax.f32 %v7268_v41, 0.0 }
 0x41f   : > { %7332 = vst [vmem:[%s13081_s17 + $0xf0] sm:$0xff] %v7300_v42 }
 0x420 PF: > { %s17_s24 = sadd.s32 1, %s9983_s24  }
 0x421   : > { %p14_p4 = scmp.ge.s32.totalorder %s17_s24, 4  }
 0x423   :  { %16 = sbr.rel (!%p14_p4) target bundleno = 1 (0x1), region = 98 }

</bundles_post_ra>
